<compile_context>
chip_gen: v5e
topology: v5e:2x2
jax: 0.10.0
libtpu: 0.0.40
codegen_flags: <defaults>
</compile_context>

<pallas_src>
import jax
import jax.numpy as jnp
from jax.experimental import pallas as pl
from jax.experimental.pallas import tpu as pltpu

EPS = 1e-5
VMEM_LIMIT = 48 * 1024 * 1024   # under v7x's 64 MiB physical VMEM; ample on v5e/v6e
ROW_CHUNK = 256                 # fp32 accumulator tile over the flattened-plane rows


def _plan_chunks(minner, chunk):
    return [(s, min(chunk, minner - s)) for s in range(0, minner, chunk)]


def _conv_chunk(xs, w_ref, cs, clen, Wp, Cpad):
    """3x3x3 conv for rows [cs, cs+clen) of the flattened padded plane.

    xs = (x_d, x_{d+1}, x_{d+2}): three (Q, Cin) bf16 padded depth slices.
    Returns the fp32 accumulator (clen, Cpad).
    TODO(synk): fold the 27 taps into a single K=27*Cin matmul (needs an in-kernel
    lane-concat of the shifted slabs); left as 27 small dots since the kernel is
    HBM/overhead bound at these channel counts, not MXU bound.
    """
    acc = jnp.zeros((clen, Cpad), jnp.float32)
    for kd in range(3):
        xk = xs[kd]
        for kh in range(3):
            for kw in range(3):
                start = cs + kh * Wp + kw              # static flat-plane shift
                slab = xk[start:start + clen, :]       # (clen, Cin) bf16
                acc = acc + jnp.dot(slab, w_ref[kd * 9 + kh * 3 + kw],
                                    preferred_element_type=jnp.float32)
    return acc


def _make_stats_kernel(D, W, Cin, Cout, Cpad, Minner):
    """Pass 1: per-batch-element per-channel sum / sum-of-squares of the conv output."""
    Wp = W + 2
    chunks = _plan_chunks(Minner, ROW_CHUNK)

    def kernel(x_ref, w_ref, s_ref, q_ref):
        # x_ref : (1, D+2, Q, Cin) bf16     q = (H+2)*(W+2) flattened padded plane
        # w_ref : (27, Cin, Cpad) bf16      tap order t = kd*9 + kh*3 + kw
        # s_ref, q_ref : (1, 1, Cout) f32   partial sums (reduced over N in XLA)
        # Hoisted once per grid step: row-validity masks (overlap-and-discard rows whose
        # flat-plane column falls inside the W padding are not real outputs).
        masks = []
        for cs, clen in chunks:
            r = jax.lax.broadcasted_iota(jnp.int32, (clen, 1), 0) + cs
            masks.append(((r % Wp) < W).astype(jnp.float32))

        def body(d, carry):
            s, q = carry
            x0 = x_ref[0, d]        # halo reuse: three padded depth slices per output d
            x1 = x_ref[0, d + 1]
            x2 = x_ref[0, d + 2]
            for (cs, clen), mask in zip(chunks, masks):
                acc = _conv_chunk((x0, x1, x2), w_ref, cs, clen, Wp, Cpad)[:, :Cout]
                masked = acc * mask
                s = s + jnp.sum(masked, axis=0, keepdims=True)
                q = q + jnp.sum(masked * acc, axis=0, keepdims=True)
            return s, q

        init = (jnp.zeros((1, Cout), jnp.float32), jnp.zeros((1, Cout), jnp.float32))
        s, q = jax.lax.fori_loop(0, D, body, init)
        s_ref[0] = s
        q_ref[0] = q

    return kernel


def _make_conv_bn_relu_kernel(D, W, Cin, Cout, Cpad, Minner):
    """Pass 2: recompute conv, apply folded scale/shift + ReLU, compact Cout-lane store."""
    Wp = W + 2
    chunks = _plan_chunks(Minner, ROW_CHUNK)

    def kernel(x_ref, w_ref, scale_ref, shift_ref, o_ref):
        # o_ref : (1, D, Minner, Cout) f32  -- only Cout channels hit HBM
        scale = scale_ref[...]              # (1, Cout) f32, hoisted out of the loop
        shift = shift_ref[...]

        def body(d, carry):
            x0 = x_ref[0, d]
            x1 = x_ref[0, d + 1]
            x2 = x_ref[0, d + 2]
            for cs, clen in chunks:
                acc = _conv_chunk((x0, x1, x2), w_ref, cs, clen, Wp, Cpad)[:, :Cout]
                o_ref[0, d, cs:cs + clen, :] = jnp.maximum(acc * scale + shift, 0.0)
            return carry

        jax.lax.fori_loop(0, D, body, jnp.int32(0))

    return kernel


def conv_bn_relu(x_ncdhw, weight_oidhw, gamma, beta):
    """x_ncdhw: (N, Cin, D, H, W) fp32; weight_oidhw: (Cout, Cin, 3, 3, 3) fp32."""
    N, Cin, D, H, W = x_ncdhw.shape
    Cout = weight_oidhw.shape[0]
    Cpad = ((Cout + 127) // 128) * 128          # MXU output width only (never stored)
    Wp = W + 2
    Q = (H + 2) * Wp                            # flattened padded-plane size
    Minner = H * W + 2 * H - 2                  # overlap-and-discard rows per (n, d)

    # ---- XLA glue in: channels-last, spatial pad, flatten each padded depth slice ----
    x = jnp.transpose(x_ncdhw, (0, 2, 3, 4, 1))                  # (N, D, H, W, Cin)
    x = jnp.pad(x, ((0, 0), (1, 1), (1, 1), (1, 1), (0, 0)))     # (N, D+2, H+2, W+2, Cin)
    x_flat = x.reshape(N, D + 2, Q, Cin).astype(jnp.bfloat16)

    # weights (Cout,Cin,3,3,3) -> (27, Cin, Cpad); tap order t = kd*9 + kh*3 + kw
    w_mat = jnp.transpose(weight_oidhw, (2, 3, 4, 1, 0)).reshape(27, Cin, Cout)
    w_mat = jnp.pad(w_mat, ((0, 0), (0, 0), (0, Cpad - Cout))).astype(jnp.bfloat16)

    x_spec = pl.BlockSpec((1, D + 2, Q, Cin), lambda n: (n, 0, 0, 0))
    w_spec = pl.BlockSpec((27, Cin, Cpad), lambda n: (0, 0, 0))
    cparams = pltpu.CompilerParams(dimension_semantics=("parallel",),
                                   vmem_limit_bytes=VMEM_LIMIT)

    # ---- pass 1: BN partial statistics only (no conv intermediate in HBM) ----
    s_sum, s_sq = pl.pallas_call(
        _make_stats_kernel(D, W, Cin, Cout, Cpad, Minner),
        grid=(N,),
        in_specs=[x_spec, w_spec],
        out_specs=[pl.BlockSpec((1, 1, Cout), lambda n: (n, 0, 0)),
                   pl.BlockSpec((1, 1, Cout), lambda n: (n, 0, 0))],
        out_shape=[jax.ShapeDtypeStruct((N, 1, Cout), jnp.float32),
                   jax.ShapeDtypeStruct((N, 1, Cout), jnp.float32)],
        compiler_params=cparams,
    )(x_flat, w_mat)

    # ---- tiny XLA reduction: fold batch stats + gamma/beta into scale/shift ----
    cnt = float(N * D * H * W)
    mean = jnp.sum(s_sum, axis=(0, 1)) / cnt
    var = jnp.maximum(jnp.sum(s_sq, axis=(0, 1)) / cnt - mean * mean, 0.0)
    scale = gamma.astype(jnp.float32) * jax.lax.rsqrt(var + EPS)
    shift = beta.astype(jnp.float32) - mean * scale

    # ---- pass 2: conv recompute fused with BN + ReLU, compact Cout-channel output ----
    out_flat = pl.pallas_call(
        _make_conv_bn_relu_kernel(D, W, Cin, Cout, Cpad, Minner),
        grid=(N,),
        in_specs=[x_spec, w_spec,
                  pl.BlockSpec((1, Cout), lambda n: (0, 0)),
                  pl.BlockSpec((1, Cout), lambda n: (0, 0))],
        out_specs=pl.BlockSpec((1, D, Minner, Cout), lambda n: (n, 0, 0, 0)),
        out_shape=jax.ShapeDtypeStruct((N, D, Minner, Cout), jnp.float32),
        compiler_params=cparams,
    )(x_flat, w_mat, scale.reshape(1, Cout), shift.reshape(1, Cout))

    # ---- XLA glue out: drop the 2H-2 overlap rows, back to NCDHW ----
    out = jnp.pad(out_flat, ((0, 0), (0, 0), (0, H * Wp - Minner), (0, 0)))
    out = out.reshape(N, D, H, Wp, Cout)[:, :, :, :W, :]
    return jnp.transpose(out, (0, 4, 1, 2, 3))


def reference(x_ncdhw, weight_oidhw, gamma, beta):
    y = jax.lax.conv_general_dilated(
        x_ncdhw, weight_oidhw, window_strides=(1, 1, 1),
        padding=((1, 1), (1, 1), (1, 1)),
        dimension_numbers=("NCDHW", "OIDHW", "NCDHW"))
    mean = jnp.mean(y, axis=(0, 2, 3, 4), keepdims=True)
    var = jnp.mean(jnp.square(y - mean), axis=(0, 2, 3, 4), keepdims=True)
    yhat = (y - mean) * jax.lax.rsqrt(var + EPS)
    out = yhat * gamma.reshape(1, -1, 1, 1, 1) + beta.reshape(1, -1, 1, 1, 1)
    return jnp.maximum(out, 0.0)


if __name__ == "__main__":
    # TODO(synk): BatchNorm running-stat (momentum) buffer updates are training-time
    # bookkeeping with no effect on this forward output; not implemented.
    key = jax.random.PRNGKey(0)
    k_x, k_w = jax.random.split(key)

    N, Cin, Cout, D, H, W = 2, 4, 8, 8, 8, 8
    x = jax.random.normal(k_x, (N, Cin, D, H, W), dtype=jnp.float32)
    weight = jax.random.normal(k_w, (Cout, Cin, 3, 3, 3), dtype=jnp.float32) * 0.1
    gamma = jnp.ones((Cout,), dtype=jnp.float32)   # PyTorch BN default init
    beta = jnp.zeros((Cout,), dtype=jnp.float32)

    fwd = jax.jit(conv_bn_relu)
    out = fwd(x, weight, gamma, beta)
    jax.block_until_ready(out)

    ref = reference(x, weight, gamma, beta)
    assert out.shape == (N, Cout, D, H, W)
    err = float(jnp.max(jnp.abs(out - ref)))
    # bf16 matmul operands with fp32 accumulation / fp32 BN epilogue.
    assert err < 5e-2, f"max abs err {err}"

    print("KERNEL_OK")
</pallas_src>

<mosaic_0001>
module attributes {stable_mosaic.version = 11 : i64} {
  func.func @kernel(%arg0: i32, %arg1: memref<1x10x100x4xbf16, #tpu.memory_space<vmem>>, %arg2: memref<27x4x128xbf16, #tpu.memory_space<vmem>>, %arg3: memref<1x1x8xf32, #tpu.memory_space<vmem>>, %arg4: memref<1x1x8xf32, #tpu.memory_space<vmem>>) attributes {dimension_semantics = [#tpu.dimension_semantics<parallel>], iteration_bounds = array<i64: 2>, scalar_prefetch = 0 : i64, scratch_operands = 0 : i64, tpu.core_type = #tpu.core_type<tc>, window_params = [{transform_indices = @transform_0, window_bounds = array<i64: 1, 10, 100, 4>}, {pipeline_mode = #tpu.pipeline_mode<synchronous>, transform_indices = @transform_1, window_bounds = array<i64: 27, 4, 128>}, {transform_indices = @transform_2, window_bounds = array<i64: 1, 1, 8>}, {transform_indices = @transform_3, window_bounds = array<i64: 1, 1, 8>}]} {
    %0 = tpu.iota {dimensions = array<i32: 0>} : vector<78x1xi32>
    %c0_i32 = arith.constant 0 : i32
    %1 = vector.broadcast %c0_i32 : i32 to vector<78x1xi32>
    %2 = arith.addi %0, %1 : vector<78x1xi32>
    %c10_i32 = arith.constant 10 : i32
    %c0_i32_0 = arith.constant 0 : i32
    %3 = arith.cmpi eq, %c10_i32, %c0_i32_0 : i32
    %c1_i32 = arith.constant 1 : i32
    %4 = arith.select %3, %c1_i32, %c10_i32 : i32
    %5 = vector.broadcast %4 : i32 to vector<78x1xi32>
    %6 = arith.remsi %2, %5 : vector<78x1xi32>
    %c0_i32_1 = arith.constant 0 : i32
    %7 = vector.broadcast %c0_i32_1 : i32 to vector<78x1xi32>
    %8 = arith.cmpi ne, %6, %7 : vector<78x1xi32>
    %c0_i32_2 = arith.constant 0 : i32
    %9 = vector.broadcast %c0_i32_2 : i32 to vector<78x1xi32>
    %10 = arith.cmpi slt, %6, %9 : vector<78x1xi32>
    %c0_i32_3 = arith.constant 0 : i32
    %11 = arith.cmpi slt, %4, %c0_i32_3 : i32
    %12 = vector.broadcast %11 : i1 to vector<78x1xi1>
    %13 = vector.broadcast %12 : vector<78x1xi1> to vector<78x1xi1>
    %14 = arith.xori %10, %13 : vector<78x1xi1>
    %15 = arith.andi %14, %8 : vector<78x1xi1>
    %16 = vector.broadcast %4 : i32 to vector<78x1xi32>
    %17 = arith.addi %6, %16 : vector<78x1xi32>
    %18 = arith.select %15, %17, %6 : vector<78x1xi1>, vector<78x1xi32>
    %c8_i32 = arith.constant 8 : i32
    %19 = vector.broadcast %c8_i32 : i32 to vector<78x1xi32>
    %20 = arith.cmpi slt, %18, %19 : vector<78x1xi32>
    %21 = arith.extui %20 : vector<78x1xi1> to vector<78x1xi32>
    %22 = arith.sitofp %21 : vector<78x1xi32> to vector<78x1xf32>
    %cst = arith.constant 0.000000e+00 : f32
    %23 = vector.broadcast %cst : f32 to vector<1x8xf32>
    %cst_4 = arith.constant 0.000000e+00 : f32
    %24 = vector.broadcast %cst_4 : f32 to vector<1x8xf32>
    %c0_i32_5 = arith.constant 0 : i32
    %c8_i32_6 = arith.constant 8 : i32
    %25 = arith.addi %c0_i32_5, %c8_i32_6 : i32
    %c1_i32_7 = arith.constant 1 : i32
    %26:2 = scf.for %arg5 = %c0_i32_5 to %25 step %c1_i32_7 iter_args(%arg6 = %23, %arg7 = %24) -> (vector<1x8xf32>, vector<1x8xf32>)  : i32 {
      %c0_14 = arith.constant 0 : index
      %33 = arith.index_cast %arg5 : i32 to index
      %c0_15 = arith.constant 0 : index
      %c0_16 = arith.constant 0 : index
      %34 = vector.load %arg1[%c0_14, %33, %c0_15, %c0_16] : memref<1x10x100x4xbf16, #tpu.memory_space<vmem>>, vector<1x1x100x4xbf16>
      %35 = vector.shape_cast %34 : vector<1x1x100x4xbf16> to vector<100x4xbf16>
      %c1_i32_17 = arith.constant 1 : i32
      %36 = arith.addi %arg5, %c1_i32_17 : i32
      %c0_18 = arith.constant 0 : index
      %37 = arith.index_cast %36 : i32 to index
      %c0_19 = arith.constant 0 : index
      %c0_20 = arith.constant 0 : index
      %38 = vector.load %arg1[%c0_18, %37, %c0_19, %c0_20] : memref<1x10x100x4xbf16, #tpu.memory_space<vmem>>, vector<1x1x100x4xbf16>
      %39 = vector.shape_cast %38 : vector<1x1x100x4xbf16> to vector<100x4xbf16>
      %c2_i32 = arith.constant 2 : i32
      %40 = arith.addi %arg5, %c2_i32 : i32
      %c0_21 = arith.constant 0 : index
      %41 = arith.index_cast %40 : i32 to index
      %c0_22 = arith.constant 0 : index
      %c0_23 = arith.constant 0 : index
      %42 = vector.load %arg1[%c0_21, %41, %c0_22, %c0_23] : memref<1x10x100x4xbf16, #tpu.memory_space<vmem>>, vector<1x1x100x4xbf16>
      %43 = vector.shape_cast %42 : vector<1x1x100x4xbf16> to vector<100x4xbf16>
      %cst_24 = arith.constant 0.000000e+00 : f32
      %44 = vector.broadcast %cst_24 : f32 to vector<78x128xf32>
      %45 = vector.extract_strided_slice %35 {offsets = [0, 0], sizes = [78, 4], strides = [1, 1]} : vector<100x4xbf16> to vector<78x4xbf16>
      %c0_25 = arith.constant 0 : index
      %c0_26 = arith.constant 0 : index
      %c0_27 = arith.constant 0 : index
      %46 = vector.load %arg2[%c0_25, %c0_26, %c0_27] : memref<27x4x128xbf16, #tpu.memory_space<vmem>>, vector<1x4x128xbf16>
      %47 = vector.shape_cast %46 : vector<1x4x128xbf16> to vector<4x128xbf16>
      %cst_28 = arith.constant dense<0.000000e+00> : vector<78x128xf32>
      %48 = tpu.matmul %45, %47, %cst_28 {dimension_numbers = #tpu.dot_dimension_numbers<[1], [0], [0], [1], [0, 0, 1, 1], [], []>} : vector<78x4xbf16>, vector<4x128xbf16>, vector<78x128xf32> -> vector<78x128xf32>
      %49 = arith.addf %44, %48 : vector<78x128xf32>
      %50 = vector.extract_strided_slice %35 {offsets = [1, 0], sizes = [78, 4], strides = [1, 1]} : vector<100x4xbf16> to vector<78x4xbf16>
      %c1 = arith.constant 1 : index
      %c0_29 = arith.constant 0 : index
      %c0_30 = arith.constant 0 : index
      %51 = vector.load %arg2[%c1, %c0_29, %c0_30] : memref<27x4x128xbf16, #tpu.memory_space<vmem>>, vector<1x4x128xbf16>
      %52 = vector.shape_cast %51 : vector<1x4x128xbf16> to vector<4x128xbf16>
      %cst_31 = arith.constant dense<0.000000e+00> : vector<78x128xf32>
      %53 = tpu.matmul %50, %52, %cst_31 {dimension_numbers = #tpu.dot_dimension_numbers<[1], [0], [0], [1], [0, 0, 1, 1], [], []>} : vector<78x4xbf16>, vector<4x128xbf16>, vector<78x128xf32> -> vector<78x128xf32>
      %54 = arith.addf %49, %53 : vector<78x128xf32>
      %55 = vector.extract_strided_slice %35 {offsets = [2, 0], sizes = [78, 4], strides = [1, 1]} : vector<100x4xbf16> to vector<78x4xbf16>
      %c2 = arith.constant 2 : index
      %c0_32 = arith.constant 0 : index
      %c0_33 = arith.constant 0 : index
      %56 = vector.load %arg2[%c2, %c0_32, %c0_33] : memref<27x4x128xbf16, #tpu.memory_space<vmem>>, vector<1x4x128xbf16>
      %57 = vector.shape_cast %56 : vector<1x4x128xbf16> to vector<4x128xbf16>
      %cst_34 = arith.constant dense<0.000000e+00> : vector<78x128xf32>
      %58 = tpu.matmul %55, %57, %cst_34 {dimension_numbers = #tpu.dot_dimension_numbers<[1], [0], [0], [1], [0, 0, 1, 1], [], []>} : vector<78x4xbf16>, vector<4x128xbf16>, vector<78x128xf32> -> vector<78x128xf32>
      %59 = arith.addf %54, %58 : vector<78x128xf32>
      %60 = vector.extract_strided_slice %35 {offsets = [10, 0], sizes = [78, 4], strides = [1, 1]} : vector<100x4xbf16> to vector<78x4xbf16>
      %c3 = arith.constant 3 : index
      %c0_35 = arith.constant 0 : index
      %c0_36 = arith.constant 0 : index
      %61 = vector.load %arg2[%c3, %c0_35, %c0_36] : memref<27x4x128xbf16, #tpu.memory_space<vmem>>, vector<1x4x128xbf16>
      %62 = vector.shape_cast %61 : vector<1x4x128xbf16> to vector<4x128xbf16>
      %cst_37 = arith.constant dense<0.000000e+00> : vector<78x128xf32>
      %63 = tpu.matmul %60, %62, %cst_37 {dimension_numbers = #tpu.dot_dimension_numbers<[1], [0], [0], [1], [0, 0, 1, 1], [], []>} : vector<78x4xbf16>, vector<4x128xbf16>, vector<78x128xf32> -> vector<78x128xf32>
      %64 = arith.addf %59, %63 : vector<78x128xf32>
      %65 = vector.extract_strided_slice %35 {offsets = [11, 0], sizes = [78, 4], strides = [1, 1]} : vector<100x4xbf16> to vector<78x4xbf16>
      %c4 = arith.constant 4 : index
      %c0_38 = arith.constant 0 : index
      %c0_39 = arith.constant 0 : index
      %66 = vector.load %arg2[%c4, %c0_38, %c0_39] : memref<27x4x128xbf16, #tpu.memory_space<vmem>>, vector<1x4x128xbf16>
      %67 = vector.shape_cast %66 : vector<1x4x128xbf16> to vector<4x128xbf16>
      %cst_40 = arith.constant dense<0.000000e+00> : vector<78x128xf32>
      %68 = tpu.matmul %65, %67, %cst_40 {dimension_numbers = #tpu.dot_dimension_numbers<[1], [0], [0], [1], [0, 0, 1, 1], [], []>} : vector<78x4xbf16>, vector<4x128xbf16>, vector<78x128xf32> -> vector<78x128xf32>
      %69 = arith.addf %64, %68 : vector<78x128xf32>
      %70 = vector.extract_strided_slice %35 {offsets = [12, 0], sizes = [78, 4], strides = [1, 1]} : vector<100x4xbf16> to vector<78x4xbf16>
      %c5 = arith.constant 5 : index
      %c0_41 = arith.constant 0 : index
      %c0_42 = arith.constant 0 : index
      %71 = vector.load %arg2[%c5, %c0_41, %c0_42] : memref<27x4x128xbf16, #tpu.memory_space<vmem>>, vector<1x4x128xbf16>
      %72 = vector.shape_cast %71 : vector<1x4x128xbf16> to vector<4x128xbf16>
      %cst_43 = arith.constant dense<0.000000e+00> : vector<78x128xf32>
      %73 = tpu.matmul %70, %72, %cst_43 {dimension_numbers = #tpu.dot_dimension_numbers<[1], [0], [0], [1], [0, 0, 1, 1], [], []>} : vector<78x4xbf16>, vector<4x128xbf16>, vector<78x128xf32> -> vector<78x128xf32>
      %74 = arith.addf %69, %73 : vector<78x128xf32>
      %75 = vector.extract_strided_slice %35 {offsets = [20, 0], sizes = [78, 4], strides = [1, 1]} : vector<100x4xbf16> to vector<78x4xbf16>
      %c6 = arith.constant 6 : index
      %c0_44 = arith.constant 0 : index
      %c0_45 = arith.constant 0 : index
      %76 = vector.load %arg2[%c6, %c0_44, %c0_45] : memref<27x4x128xbf16, #tpu.memory_space<vmem>>, vector<1x4x128xbf16>
      %77 = vector.shape_cast %76 : vector<1x4x128xbf16> to vector<4x128xbf16>
      %cst_46 = arith.constant dense<0.000000e+00> : vector<78x128xf32>
      %78 = tpu.matmul %75, %77, %cst_46 {dimension_numbers = #tpu.dot_dimension_numbers<[1], [0], [0], [1], [0, 0, 1, 1], [], []>} : vector<78x4xbf16>, vector<4x128xbf16>, vector<78x128xf32> -> vector<78x128xf32>
      %79 = arith.addf %74, %78 : vector<78x128xf32>
      %80 = vector.extract_strided_slice %35 {offsets = [21, 0], sizes = [78, 4], strides = [1, 1]} : vector<100x4xbf16> to vector<78x4xbf16>
      %c7 = arith.constant 7 : index
      %c0_47 = arith.constant 0 : index
      %c0_48 = arith.constant 0 : index
      %81 = vector.load %arg2[%c7, %c0_47, %c0_48] : memref<27x4x128xbf16, #tpu.memory_space<vmem>>, vector<1x4x128xbf16>
      %82 = vector.shape_cast %81 : vector<1x4x128xbf16> to vector<4x128xbf16>
      %cst_49 = arith.constant dense<0.000000e+00> : vector<78x128xf32>
      %83 = tpu.matmul %80, %82, %cst_49 {dimension_numbers = #tpu.dot_dimension_numbers<[1], [0], [0], [1], [0, 0, 1, 1], [], []>} : vector<78x4xbf16>, vector<4x128xbf16>, vector<78x128xf32> -> vector<78x128xf32>
      %84 = arith.addf %79, %83 : vector<78x128xf32>
      %85 = vector.extract_strided_slice %35 {offsets = [22, 0], sizes = [78, 4], strides = [1, 1]} : vector<100x4xbf16> to vector<78x4xbf16>
      %c8 = arith.constant 8 : index
      %c0_50 = arith.constant 0 : index
      %c0_51 = arith.constant 0 : index
      %86 = vector.load %arg2[%c8, %c0_50, %c0_51] : memref<27x4x128xbf16, #tpu.memory_space<vmem>>, vector<1x4x128xbf16>
      %87 = vector.shape_cast %86 : vector<1x4x128xbf16> to vector<4x128xbf16>
      %cst_52 = arith.constant dense<0.000000e+00> : vector<78x128xf32>
      %88 = tpu.matmul %85, %87, %cst_52 {dimension_numbers = #tpu.dot_dimension_numbers<[1], [0], [0], [1], [0, 0, 1, 1], [], []>} : vector<78x4xbf16>, vector<4x128xbf16>, vector<78x128xf32> -> vector<78x128xf32>
      %89 = arith.addf %84, %88 : vector<78x128xf32>
      %90 = vector.extract_strided_slice %39 {offsets = [0, 0], sizes = [78, 4], strides = [1, 1]} : vector<100x4xbf16> to vector<78x4xbf16>
      %c9 = arith.constant 9 : index
      %c0_53 = arith.constant 0 : index
      %c0_54 = arith.constant 0 : index
      %91 = vector.load %arg2[%c9, %c0_53, %c0_54] : memref<27x4x128xbf16, #tpu.memory_space<vmem>>, vector<1x4x128xbf16>
      %92 = vector.shape_cast %91 : vector<1x4x128xbf16> to vector<4x128xbf16>
      %cst_55 = arith.constant dense<0.000000e+00> : vector<78x128xf32>
      %93 = tpu.matmul %90, %92, %cst_55 {dimension_numbers = #tpu.dot_dimension_numbers<[1], [0], [0], [1], [0, 0, 1, 1], [], []>} : vector<78x4xbf16>, vector<4x128xbf16>, vector<78x128xf32> -> vector<78x128xf32>
      %94 = arith.addf %89, %93 : vector<78x128xf32>
      %95 = vector.extract_strided_slice %39 {offsets = [1, 0], sizes = [78, 4], strides = [1, 1]} : vector<100x4xbf16> to vector<78x4xbf16>
      %c10 = arith.constant 10 : index
      %c0_56 = arith.constant 0 : index
      %c0_57 = arith.constant 0 : index
      %96 = vector.load %arg2[%c10, %c0_56, %c0_57] : memref<27x4x128xbf16, #tpu.memory_space<vmem>>, vector<1x4x128xbf16>
      %97 = vector.shape_cast %96 : vector<1x4x128xbf16> to vector<4x128xbf16>
      %cst_58 = arith.constant dense<0.000000e+00> : vector<78x128xf32>
      %98 = tpu.matmul %95, %97, %cst_58 {dimension_numbers = #tpu.dot_dimension_numbers<[1], [0], [0], [1], [0, 0, 1, 1], [], []>} : vector<78x4xbf16>, vector<4x128xbf16>, vector<78x128xf32> -> vector<78x128xf32>
      %99 = arith.addf %94, %98 : vector<78x128xf32>
      %100 = vector.extract_strided_slice %39 {offsets = [2, 0], sizes = [78, 4], strides = [1, 1]} : vector<100x4xbf16> to vector<78x4xbf16>
      %c11 = arith.constant 11 : index
      %c0_59 = arith.constant 0 : index
      %c0_60 = arith.constant 0 : index
      %101 = vector.load %arg2[%c11, %c0_59, %c0_60] : memref<27x4x128xbf16, #tpu.memory_space<vmem>>, vector<1x4x128xbf16>
      %102 = vector.shape_cast %101 : vector<1x4x128xbf16> to vector<4x128xbf16>
      %cst_61 = arith.constant dense<0.000000e+00> : vector<78x128xf32>
      %103 = tpu.matmul %100, %102, %cst_61 {dimension_numbers = #tpu.dot_dimension_numbers<[1], [0], [0], [1], [0, 0, 1, 1], [], []>} : vector<78x4xbf16>, vector<4x128xbf16>, vector<78x128xf32> -> vector<78x128xf32>
      %104 = arith.addf %99, %103 : vector<78x128xf32>
      %105 = vector.extract_strided_slice %39 {offsets = [10, 0], sizes = [78, 4], strides = [1, 1]} : vector<100x4xbf16> to vector<78x4xbf16>
      %c12 = arith.constant 12 : index
      %c0_62 = arith.constant 0 : index
      %c0_63 = arith.constant 0 : index
      %106 = vector.load %arg2[%c12, %c0_62, %c0_63] : memref<27x4x128xbf16, #tpu.memory_space<vmem>>, vector<1x4x128xbf16>
      %107 = vector.shape_cast %106 : vector<1x4x128xbf16> to vector<4x128xbf16>
      %cst_64 = arith.constant dense<0.000000e+00> : vector<78x128xf32>
      %108 = tpu.matmul %105, %107, %cst_64 {dimension_numbers = #tpu.dot_dimension_numbers<[1], [0], [0], [1], [0, 0, 1, 1], [], []>} : vector<78x4xbf16>, vector<4x128xbf16>, vector<78x128xf32> -> vector<78x128xf32>
      %109 = arith.addf %104, %108 : vector<78x128xf32>
      %110 = vector.extract_strided_slice %39 {offsets = [11, 0], sizes = [78, 4], strides = [1, 1]} : vector<100x4xbf16> to vector<78x4xbf16>
      %c13 = arith.constant 13 : index
      %c0_65 = arith.constant 0 : index
      %c0_66 = arith.constant 0 : index
      %111 = vector.load %arg2[%c13, %c0_65, %c0_66] : memref<27x4x128xbf16, #tpu.memory_space<vmem>>, vector<1x4x128xbf16>
      %112 = vector.shape_cast %111 : vector<1x4x128xbf16> to vector<4x128xbf16>
      %cst_67 = arith.constant dense<0.000000e+00> : vector<78x128xf32>
      %113 = tpu.matmul %110, %112, %cst_67 {dimension_numbers = #tpu.dot_dimension_numbers<[1], [0], [0], [1], [0, 0, 1, 1], [], []>} : vector<78x4xbf16>, vector<4x128xbf16>, vector<78x128xf32> -> vector<78x128xf32>
      %114 = arith.addf %109, %113 : vector<78x128xf32>
      %115 = vector.extract_strided_slice %39 {offsets = [12, 0], sizes = [78, 4], strides = [1, 1]} : vector<100x4xbf16> to vector<78x4xbf16>
      %c14 = arith.constant 14 : index
      %c0_68 = arith.constant 0 : index
      %c0_69 = arith.constant 0 : index
      %116 = vector.load %arg2[%c14, %c0_68, %c0_69] : memref<27x4x128xbf16, #tpu.memory_space<vmem>>, vector<1x4x128xbf16>
      %117 = vector.shape_cast %116 : vector<1x4x128xbf16> to vector<4x128xbf16>
      %cst_70 = arith.constant dense<0.000000e+00> : vector<78x128xf32>
      %118 = tpu.matmul %115, %117, %cst_70 {dimension_numbers = #tpu.dot_dimension_numbers<[1], [0], [0], [1], [0, 0, 1, 1], [], []>} : vector<78x4xbf16>, vector<4x128xbf16>, vector<78x128xf32> -> vector<78x128xf32>
      %119 = arith.addf %114, %118 : vector<78x128xf32>
      %120 = vector.extract_strided_slice %39 {offsets = [20, 0], sizes = [78, 4], strides = [1, 1]} : vector<100x4xbf16> to vector<78x4xbf16>
      %c15 = arith.constant 15 : index
      %c0_71 = arith.constant 0 : index
      %c0_72 = arith.constant 0 : index
      %121 = vector.load %arg2[%c15, %c0_71, %c0_72] : memref<27x4x128xbf16, #tpu.memory_space<vmem>>, vector<1x4x128xbf16>
      %122 = vector.shape_cast %121 : vector<1x4x128xbf16> to vector<4x128xbf16>
      %cst_73 = arith.constant dense<0.000000e+00> : vector<78x128xf32>
      %123 = tpu.matmul %120, %122, %cst_73 {dimension_numbers = #tpu.dot_dimension_numbers<[1], [0], [0], [1], [0, 0, 1, 1], [], []>} : vector<78x4xbf16>, vector<4x128xbf16>, vector<78x128xf32> -> vector<78x128xf32>
      %124 = arith.addf %119, %123 : vector<78x128xf32>
      %125 = vector.extract_strided_slice %39 {offsets = [21, 0], sizes = [78, 4], strides = [1, 1]} : vector<100x4xbf16> to vector<78x4xbf16>
      %c16 = arith.constant 16 : index
      %c0_74 = arith.constant 0 : index
      %c0_75 = arith.constant 0 : index
      %126 = vector.load %arg2[%c16, %c0_74, %c0_75] : memref<27x4x128xbf16, #tpu.memory_space<vmem>>, vector<1x4x128xbf16>
      %127 = vector.shape_cast %126 : vector<1x4x128xbf16> to vector<4x128xbf16>
      %cst_76 = arith.constant dense<0.000000e+00> : vector<78x128xf32>
      %128 = tpu.matmul %125, %127, %cst_76 {dimension_numbers = #tpu.dot_dimension_numbers<[1], [0], [0], [1], [0, 0, 1, 1], [], []>} : vector<78x4xbf16>, vector<4x128xbf16>, vector<78x128xf32> -> vector<78x128xf32>
      %129 = arith.addf %124, %128 : vector<78x128xf32>
      %130 = vector.extract_strided_slice %39 {offsets = [22, 0], sizes = [78, 4], strides = [1, 1]} : vector<100x4xbf16> to vector<78x4xbf16>
      %c17 = arith.constant 17 : index
      %c0_77 = arith.constant 0 : index
      %c0_78 = arith.constant 0 : index
      %131 = vector.load %arg2[%c17, %c0_77, %c0_78] : memref<27x4x128xbf16, #tpu.memory_space<vmem>>, vector<1x4x128xbf16>
      %132 = vector.shape_cast %131 : vector<1x4x128xbf16> to vector<4x128xbf16>
      %cst_79 = arith.constant dense<0.000000e+00> : vector<78x128xf32>
      %133 = tpu.matmul %130, %132, %cst_79 {dimension_numbers = #tpu.dot_dimension_numbers<[1], [0], [0], [1], [0, 0, 1, 1], [], []>} : vector<78x4xbf16>, vector<4x128xbf16>, vector<78x128xf32> -> vector<78x128xf32>
      %134 = arith.addf %129, %133 : vector<78x128xf32>
      %135 = vector.extract_strided_slice %43 {offsets = [0, 0], sizes = [78, 4], strides = [1, 1]} : vector<100x4xbf16> to vector<78x4xbf16>
      %c18 = arith.constant 18 : index
      %c0_80 = arith.constant 0 : index
      %c0_81 = arith.constant 0 : index
      %136 = vector.load %arg2[%c18, %c0_80, %c0_81] : memref<27x4x128xbf16, #tpu.memory_space<vmem>>, vector<1x4x128xbf16>
      %137 = vector.shape_cast %136 : vector<1x4x128xbf16> to vector<4x128xbf16>
      %cst_82 = arith.constant dense<0.000000e+00> : vector<78x128xf32>
      %138 = tpu.matmul %135, %137, %cst_82 {dimension_numbers = #tpu.dot_dimension_numbers<[1], [0], [0], [1], [0, 0, 1, 1], [], []>} : vector<78x4xbf16>, vector<4x128xbf16>, vector<78x128xf32> -> vector<78x128xf32>
      %139 = arith.addf %134, %138 : vector<78x128xf32>
      %140 = vector.extract_strided_slice %43 {offsets = [1, 0], sizes = [78, 4], strides = [1, 1]} : vector<100x4xbf16> to vector<78x4xbf16>
      %c19 = arith.constant 19 : index
      %c0_83 = arith.constant 0 : index
      %c0_84 = arith.constant 0 : index
      %141 = vector.load %arg2[%c19, %c0_83, %c0_84] : memref<27x4x128xbf16, #tpu.memory_space<vmem>>, vector<1x4x128xbf16>
      %142 = vector.shape_cast %141 : vector<1x4x128xbf16> to vector<4x128xbf16>
      %cst_85 = arith.constant dense<0.000000e+00> : vector<78x128xf32>
      %143 = tpu.matmul %140, %142, %cst_85 {dimension_numbers = #tpu.dot_dimension_numbers<[1], [0], [0], [1], [0, 0, 1, 1], [], []>} : vector<78x4xbf16>, vector<4x128xbf16>, vector<78x128xf32> -> vector<78x128xf32>
      %144 = arith.addf %139, %143 : vector<78x128xf32>
      %145 = vector.extract_strided_slice %43 {offsets = [2, 0], sizes = [78, 4], strides = [1, 1]} : vector<100x4xbf16> to vector<78x4xbf16>
      %c20 = arith.constant 20 : index
      %c0_86 = arith.constant 0 : index
      %c0_87 = arith.constant 0 : index
      %146 = vector.load %arg2[%c20, %c0_86, %c0_87] : memref<27x4x128xbf16, #tpu.memory_space<vmem>>, vector<1x4x128xbf16>
      %147 = vector.shape_cast %146 : vector<1x4x128xbf16> to vector<4x128xbf16>
      %cst_88 = arith.constant dense<0.000000e+00> : vector<78x128xf32>
      %148 = tpu.matmul %145, %147, %cst_88 {dimension_numbers = #tpu.dot_dimension_numbers<[1], [0], [0], [1], [0, 0, 1, 1], [], []>} : vector<78x4xbf16>, vector<4x128xbf16>, vector<78x128xf32> -> vector<78x128xf32>
      %149 = arith.addf %144, %148 : vector<78x128xf32>
      %150 = vector.extract_strided_slice %43 {offsets = [10, 0], sizes = [78, 4], strides = [1, 1]} : vector<100x4xbf16> to vector<78x4xbf16>
      %c21 = arith.constant 21 : index
      %c0_89 = arith.constant 0 : index
      %c0_90 = arith.constant 0 : index
      %151 = vector.load %arg2[%c21, %c0_89, %c0_90] : memref<27x4x128xbf16, #tpu.memory_space<vmem>>, vector<1x4x128xbf16>
      %152 = vector.shape_cast %151 : vector<1x4x128xbf16> to vector<4x128xbf16>
      %cst_91 = arith.constant dense<0.000000e+00> : vector<78x128xf32>
      %153 = tpu.matmul %150, %152, %cst_91 {dimension_numbers = #tpu.dot_dimension_numbers<[1], [0], [0], [1], [0, 0, 1, 1], [], []>} : vector<78x4xbf16>, vector<4x128xbf16>, vector<78x128xf32> -> vector<78x128xf32>
      %154 = arith.addf %149, %153 : vector<78x128xf32>
      %155 = vector.extract_strided_slice %43 {offsets = [11, 0], sizes = [78, 4], strides = [1, 1]} : vector<100x4xbf16> to vector<78x4xbf16>
      %c22 = arith.constant 22 : index
      %c0_92 = arith.constant 0 : index
      %c0_93 = arith.constant 0 : index
      %156 = vector.load %arg2[%c22, %c0_92, %c0_93] : memref<27x4x128xbf16, #tpu.memory_space<vmem>>, vector<1x4x128xbf16>
      %157 = vector.shape_cast %156 : vector<1x4x128xbf16> to vector<4x128xbf16>
      %cst_94 = arith.constant dense<0.000000e+00> : vector<78x128xf32>
      %158 = tpu.matmul %155, %157, %cst_94 {dimension_numbers = #tpu.dot_dimension_numbers<[1], [0], [0], [1], [0, 0, 1, 1], [], []>} : vector<78x4xbf16>, vector<4x128xbf16>, vector<78x128xf32> -> vector<78x128xf32>
      %159 = arith.addf %154, %158 : vector<78x128xf32>
      %160 = vector.extract_strided_slice %43 {offsets = [12, 0], sizes = [78, 4], strides = [1, 1]} : vector<100x4xbf16> to vector<78x4xbf16>
      %c23 = arith.constant 23 : index
      %c0_95 = arith.constant 0 : index
      %c0_96 = arith.constant 0 : index
      %161 = vector.load %arg2[%c23, %c0_95, %c0_96] : memref<27x4x128xbf16, #tpu.memory_space<vmem>>, vector<1x4x128xbf16>
      %162 = vector.shape_cast %161 : vector<1x4x128xbf16> to vector<4x128xbf16>
      %cst_97 = arith.constant dense<0.000000e+00> : vector<78x128xf32>
      %163 = tpu.matmul %160, %162, %cst_97 {dimension_numbers = #tpu.dot_dimension_numbers<[1], [0], [0], [1], [0, 0, 1, 1], [], []>} : vector<78x4xbf16>, vector<4x128xbf16>, vector<78x128xf32> -> vector<78x128xf32>
      %164 = arith.addf %159, %163 : vector<78x128xf32>
      %165 = vector.extract_strided_slice %43 {offsets = [20, 0], sizes = [78, 4], strides = [1, 1]} : vector<100x4xbf16> to vector<78x4xbf16>
      %c24 = arith.constant 24 : index
      %c0_98 = arith.constant 0 : index
      %c0_99 = arith.constant 0 : index
      %166 = vector.load %arg2[%c24, %c0_98, %c0_99] : memref<27x4x128xbf16, #tpu.memory_space<vmem>>, vector<1x4x128xbf16>
      %167 = vector.shape_cast %166 : vector<1x4x128xbf16> to vector<4x128xbf16>
      %cst_100 = arith.constant dense<0.000000e+00> : vector<78x128xf32>
      %168 = tpu.matmul %165, %167, %cst_100 {dimension_numbers = #tpu.dot_dimension_numbers<[1], [0], [0], [1], [0, 0, 1, 1], [], []>} : vector<78x4xbf16>, vector<4x128xbf16>, vector<78x128xf32> -> vector<78x128xf32>
      %169 = arith.addf %164, %168 : vector<78x128xf32>
      %170 = vector.extract_strided_slice %43 {offsets = [21, 0], sizes = [78, 4], strides = [1, 1]} : vector<100x4xbf16> to vector<78x4xbf16>
      %c25 = arith.constant 25 : index
      %c0_101 = arith.constant 0 : index
      %c0_102 = arith.constant 0 : index
      %171 = vector.load %arg2[%c25, %c0_101, %c0_102] : memref<27x4x128xbf16, #tpu.memory_space<vmem>>, vector<1x4x128xbf16>
      %172 = vector.shape_cast %171 : vector<1x4x128xbf16> to vector<4x128xbf16>
      %cst_103 = arith.constant dense<0.000000e+00> : vector<78x128xf32>
      %173 = tpu.matmul %170, %172, %cst_103 {dimension_numbers = #tpu.dot_dimension_numbers<[1], [0], [0], [1], [0, 0, 1, 1], [], []>} : vector<78x4xbf16>, vector<4x128xbf16>, vector<78x128xf32> -> vector<78x128xf32>
      %174 = arith.addf %169, %173 : vector<78x128xf32>
      %175 = vector.extract_strided_slice %43 {offsets = [22, 0], sizes = [78, 4], strides = [1, 1]} : vector<100x4xbf16> to vector<78x4xbf16>
      %c26 = arith.constant 26 : index
      %c0_104 = arith.constant 0 : index
      %c0_105 = arith.constant 0 : index
      %176 = vector.load %arg2[%c26, %c0_104, %c0_105] : memref<27x4x128xbf16, #tpu.memory_space<vmem>>, vector<1x4x128xbf16>
      %177 = vector.shape_cast %176 : vector<1x4x128xbf16> to vector<4x128xbf16>
      %cst_106 = arith.constant dense<0.000000e+00> : vector<78x128xf32>
      %178 = tpu.matmul %175, %177, %cst_106 {dimension_numbers = #tpu.dot_dimension_numbers<[1], [0], [0], [1], [0, 0, 1, 1], [], []>} : vector<78x4xbf16>, vector<4x128xbf16>, vector<78x128xf32> -> vector<78x128xf32>
      %179 = arith.addf %174, %178 : vector<78x128xf32>
      %180 = vector.extract_strided_slice %179 {offsets = [0, 0], sizes = [78, 8], strides = [1, 1]} : vector<78x128xf32> to vector<78x8xf32>
      %181 = vector.broadcast %22 : vector<78x1xf32> to vector<78x8xf32>
      %182 = arith.mulf %180, %181 : vector<78x8xf32>
      %cst_107 = arith.constant dense<0.000000e+00> : vector<8xf32>
      %183 = vector.multi_reduction <add>, %182, %cst_107 [0] : vector<78x8xf32> to vector<8xf32>
      %184 = vector.shape_cast %183 : vector<8xf32> to vector<1x8xf32>
      %185 = arith.addf %arg6, %184 : vector<1x8xf32>
      %186 = arith.mulf %182, %180 : vector<78x8xf32>
      %cst_108 = arith.constant dense<0.000000e+00> : vector<8xf32>
      %187 = vector.multi_reduction <add>, %186, %cst_108 [0] : vector<78x8xf32> to vector<8xf32>
      %188 = vector.shape_cast %187 : vector<8xf32> to vector<1x8xf32>
      %189 = arith.addf %arg7, %188 : vector<1x8xf32>
      scf.yield %185, %189 : vector<1x8xf32>, vector<1x8xf32>
    }
    %c8_i32_8 = arith.constant 8 : i32
    %c0 = arith.constant 0 : index
    %c0_9 = arith.constant 0 : index
    %c0_10 = arith.constant 0 : index
    %27 = vector.load %arg3[%c0, %c0_9, %c0_10] : memref<1x1x8xf32, #tpu.memory_space<vmem>>, vector<1x1x8xf32>
    %28 = vector.shape_cast %27 : vector<1x1x8xf32> to vector<1x8xf32>
    %29 = vector.shape_cast %26#0 : vector<1x8xf32> to vector<1x1x8xf32>
    tpu.vector_store %arg3[%c0, %c0_9, %c0_10], %29 {strides = array<i32>} : memref<1x1x8xf32, #tpu.memory_space<vmem>>, vector<1x1x8xf32>,
    %c0_11 = arith.constant 0 : index
    %c0_12 = arith.constant 0 : index
    %c0_13 = arith.constant 0 : index
    %30 = vector.load %arg4[%c0_11, %c0_12, %c0_13] : memref<1x1x8xf32, #tpu.memory_space<vmem>>, vector<1x1x8xf32>
    %31 = vector.shape_cast %30 : vector<1x1x8xf32> to vector<1x8xf32>
    %32 = vector.shape_cast %26#1 : vector<1x8xf32> to vector<1x1x8xf32>
    tpu.vector_store %arg4[%c0_11, %c0_12, %c0_13], %32 {strides = array<i32>} : memref<1x1x8xf32, #tpu.memory_space<vmem>>, vector<1x1x8xf32>,
    return
  }
  func.func @transform_0(%arg0: i32) -> (i32, i32, i32, i32) {
    %c0_i32 = arith.constant 0 : i32
    %c0_i32_0 = arith.constant 0 : i32
    %c0_i32_1 = arith.constant 0 : i32
    %c0_i32_2 = arith.constant 0 : i32
    return %arg0, %c0_i32, %c0_i32_0, %c0_i32_1 : i32, i32, i32, i32
  }
  func.func @transform_1(%arg0: i32) -> (i32, i32, i32) {
    %c0_i32 = arith.constant 0 : i32
    %c0_i32_0 = arith.constant 0 : i32
    %c0_i32_1 = arith.constant 0 : i32
    %c0_i32_2 = arith.constant 0 : i32
    return %c0_i32, %c0_i32_0, %c0_i32_1 : i32, i32, i32
  }
  func.func @transform_2(%arg0: i32) -> (i32, i32, i32) {
    %c0_i32 = arith.constant 0 : i32
    %c0_i32_0 = arith.constant 0 : i32
    %c0_i32_1 = arith.constant 0 : i32
    return %arg0, %c0_i32, %c0_i32_0 : i32, i32, i32
  }
  func.func @transform_3(%arg0: i32) -> (i32, i32, i32) {
    %c0_i32 = arith.constant 0 : i32
    %c0_i32_0 = arith.constant 0 : i32
    %c0_i32_1 = arith.constant 0 : i32
    return %arg0, %c0_i32, %c0_i32_0 : i32, i32, i32
  }
}

module attributes {stable_mosaic.version = 11 : i64} {
  func.func @kernel(%arg0: i32, %arg1: memref<1x10x100x4xbf16, #tpu.memory_space<vmem>>, %arg2: memref<27x4x128xbf16, #tpu.memory_space<vmem>>, %arg3: memref<1x8xf32, #tpu.memory_space<vmem>>, %arg4: memref<1x8xf32, #tpu.memory_space<vmem>>, %arg5: memref<1x8x78x8xf32, #tpu.memory_space<vmem>>) attributes {dimension_semantics = [#tpu.dimension_semantics<parallel>], iteration_bounds = array<i64: 2>, scalar_prefetch = 0 : i64, scratch_operands = 0 : i64, tpu.core_type = #tpu.core_type<tc>, window_params = [{transform_indices = @transform_0, window_bounds = array<i64: 1, 10, 100, 4>}, {pipeline_mode = #tpu.pipeline_mode<synchronous>, transform_indices = @transform_1, window_bounds = array<i64: 27, 4, 128>}, {pipeline_mode = #tpu.pipeline_mode<synchronous>, transform_indices = @transform_2, window_bounds = array<i64: 1, 8>}, {pipeline_mode = #tpu.pipeline_mode<synchronous>, transform_indices = @transform_3, window_bounds = array<i64: 1, 8>}, {transform_indices = @transform_4, window_bounds = array<i64: 1, 8, 78, 8>}]} {
    %c0 = arith.constant 0 : index
    %c0_0 = arith.constant 0 : index
    %0 = vector.load %arg3[%c0, %c0_0] : memref<1x8xf32, #tpu.memory_space<vmem>>, vector<1x8xf32>
    %c0_1 = arith.constant 0 : index
    %c0_2 = arith.constant 0 : index
    %1 = vector.load %arg4[%c0_1, %c0_2] : memref<1x8xf32, #tpu.memory_space<vmem>>, vector<1x8xf32>
    %c0_i32 = arith.constant 0 : i32
    %c8_i32 = arith.constant 8 : i32
    %2 = arith.addi %c0_i32, %c8_i32 : i32
    %c1_i32 = arith.constant 1 : i32
    scf.for %arg6 = %c0_i32 to %2 step %c1_i32  : i32 {
      %c0_4 = arith.constant 0 : index
      %3 = arith.index_cast %arg6 : i32 to index
      %c0_5 = arith.constant 0 : index
      %c0_6 = arith.constant 0 : index
      %4 = vector.load %arg1[%c0_4, %3, %c0_5, %c0_6] : memref<1x10x100x4xbf16, #tpu.memory_space<vmem>>, vector<1x1x100x4xbf16>
      %5 = vector.shape_cast %4 : vector<1x1x100x4xbf16> to vector<100x4xbf16>
      %c1_i32_7 = arith.constant 1 : i32
      %6 = arith.addi %arg6, %c1_i32_7 : i32
      %c0_8 = arith.constant 0 : index
      %7 = arith.index_cast %6 : i32 to index
      %c0_9 = arith.constant 0 : index
      %c0_10 = arith.constant 0 : index
      %8 = vector.load %arg1[%c0_8, %7, %c0_9, %c0_10] : memref<1x10x100x4xbf16, #tpu.memory_space<vmem>>, vector<1x1x100x4xbf16>
      %9 = vector.shape_cast %8 : vector<1x1x100x4xbf16> to vector<100x4xbf16>
      %c2_i32 = arith.constant 2 : i32
      %10 = arith.addi %arg6, %c2_i32 : i32
      %c0_11 = arith.constant 0 : index
      %11 = arith.index_cast %10 : i32 to index
      %c0_12 = arith.constant 0 : index
      %c0_13 = arith.constant 0 : index
      %12 = vector.load %arg1[%c0_11, %11, %c0_12, %c0_13] : memref<1x10x100x4xbf16, #tpu.memory_space<vmem>>, vector<1x1x100x4xbf16>
      %13 = vector.shape_cast %12 : vector<1x1x100x4xbf16> to vector<100x4xbf16>
      %cst = arith.constant 0.000000e+00 : f32
      %14 = vector.broadcast %cst : f32 to vector<78x128xf32>
      %15 = vector.extract_strided_slice %5 {offsets = [0, 0], sizes = [78, 4], strides = [1, 1]} : vector<100x4xbf16> to vector<78x4xbf16>
      %c0_14 = arith.constant 0 : index
      %c0_15 = arith.constant 0 : index
      %c0_16 = arith.constant 0 : index
      %16 = vector.load %arg2[%c0_14, %c0_15, %c0_16] : memref<27x4x128xbf16, #tpu.memory_space<vmem>>, vector<1x4x128xbf16>
      %17 = vector.shape_cast %16 : vector<1x4x128xbf16> to vector<4x128xbf16>
      %cst_17 = arith.constant dense<0.000000e+00> : vector<78x128xf32>
      %18 = tpu.matmul %15, %17, %cst_17 {dimension_numbers = #tpu.dot_dimension_numbers<[1], [0], [0], [1], [0, 0, 1, 1], [], []>} : vector<78x4xbf16>, vector<4x128xbf16>, vector<78x128xf32> -> vector<78x128xf32>
      %19 = arith.addf %14, %18 : vector<78x128xf32>
      %20 = vector.extract_strided_slice %5 {offsets = [1, 0], sizes = [78, 4], strides = [1, 1]} : vector<100x4xbf16> to vector<78x4xbf16>
      %c1 = arith.constant 1 : index
      %c0_18 = arith.constant 0 : index
      %c0_19 = arith.constant 0 : index
      %21 = vector.load %arg2[%c1, %c0_18, %c0_19] : memref<27x4x128xbf16, #tpu.memory_space<vmem>>, vector<1x4x128xbf16>
      %22 = vector.shape_cast %21 : vector<1x4x128xbf16> to vector<4x128xbf16>
      %cst_20 = arith.constant dense<0.000000e+00> : vector<78x128xf32>
      %23 = tpu.matmul %20, %22, %cst_20 {dimension_numbers = #tpu.dot_dimension_numbers<[1], [0], [0], [1], [0, 0, 1, 1], [], []>} : vector<78x4xbf16>, vector<4x128xbf16>, vector<78x128xf32> -> vector<78x128xf32>
      %24 = arith.addf %19, %23 : vector<78x128xf32>
      %25 = vector.extract_strided_slice %5 {offsets = [2, 0], sizes = [78, 4], strides = [1, 1]} : vector<100x4xbf16> to vector<78x4xbf16>
      %c2 = arith.constant 2 : index
      %c0_21 = arith.constant 0 : index
      %c0_22 = arith.constant 0 : index
      %26 = vector.load %arg2[%c2, %c0_21, %c0_22] : memref<27x4x128xbf16, #tpu.memory_space<vmem>>, vector<1x4x128xbf16>
      %27 = vector.shape_cast %26 : vector<1x4x128xbf16> to vector<4x128xbf16>
      %cst_23 = arith.constant dense<0.000000e+00> : vector<78x128xf32>
      %28 = tpu.matmul %25, %27, %cst_23 {dimension_numbers = #tpu.dot_dimension_numbers<[1], [0], [0], [1], [0, 0, 1, 1], [], []>} : vector<78x4xbf16>, vector<4x128xbf16>, vector<78x128xf32> -> vector<78x128xf32>
      %29 = arith.addf %24, %28 : vector<78x128xf32>
      %30 = vector.extract_strided_slice %5 {offsets = [10, 0], sizes = [78, 4], strides = [1, 1]} : vector<100x4xbf16> to vector<78x4xbf16>
      %c3 = arith.constant 3 : index
      %c0_24 = arith.constant 0 : index
      %c0_25 = arith.constant 0 : index
      %31 = vector.load %arg2[%c3, %c0_24, %c0_25] : memref<27x4x128xbf16, #tpu.memory_space<vmem>>, vector<1x4x128xbf16>
      %32 = vector.shape_cast %31 : vector<1x4x128xbf16> to vector<4x128xbf16>
      %cst_26 = arith.constant dense<0.000000e+00> : vector<78x128xf32>
      %33 = tpu.matmul %30, %32, %cst_26 {dimension_numbers = #tpu.dot_dimension_numbers<[1], [0], [0], [1], [0, 0, 1, 1], [], []>} : vector<78x4xbf16>, vector<4x128xbf16>, vector<78x128xf32> -> vector<78x128xf32>
      %34 = arith.addf %29, %33 : vector<78x128xf32>
      %35 = vector.extract_strided_slice %5 {offsets = [11, 0], sizes = [78, 4], strides = [1, 1]} : vector<100x4xbf16> to vector<78x4xbf16>
      %c4 = arith.constant 4 : index
      %c0_27 = arith.constant 0 : index
      %c0_28 = arith.constant 0 : index
      %36 = vector.load %arg2[%c4, %c0_27, %c0_28] : memref<27x4x128xbf16, #tpu.memory_space<vmem>>, vector<1x4x128xbf16>
      %37 = vector.shape_cast %36 : vector<1x4x128xbf16> to vector<4x128xbf16>
      %cst_29 = arith.constant dense<0.000000e+00> : vector<78x128xf32>
      %38 = tpu.matmul %35, %37, %cst_29 {dimension_numbers = #tpu.dot_dimension_numbers<[1], [0], [0], [1], [0, 0, 1, 1], [], []>} : vector<78x4xbf16>, vector<4x128xbf16>, vector<78x128xf32> -> vector<78x128xf32>
      %39 = arith.addf %34, %38 : vector<78x128xf32>
      %40 = vector.extract_strided_slice %5 {offsets = [12, 0], sizes = [78, 4], strides = [1, 1]} : vector<100x4xbf16> to vector<78x4xbf16>
      %c5 = arith.constant 5 : index
      %c0_30 = arith.constant 0 : index
      %c0_31 = arith.constant 0 : index
      %41 = vector.load %arg2[%c5, %c0_30, %c0_31] : memref<27x4x128xbf16, #tpu.memory_space<vmem>>, vector<1x4x128xbf16>
      %42 = vector.shape_cast %41 : vector<1x4x128xbf16> to vector<4x128xbf16>
      %cst_32 = arith.constant dense<0.000000e+00> : vector<78x128xf32>
      %43 = tpu.matmul %40, %42, %cst_32 {dimension_numbers = #tpu.dot_dimension_numbers<[1], [0], [0], [1], [0, 0, 1, 1], [], []>} : vector<78x4xbf16>, vector<4x128xbf16>, vector<78x128xf32> -> vector<78x128xf32>
      %44 = arith.addf %39, %43 : vector<78x128xf32>
      %45 = vector.extract_strided_slice %5 {offsets = [20, 0], sizes = [78, 4], strides = [1, 1]} : vector<100x4xbf16> to vector<78x4xbf16>
      %c6 = arith.constant 6 : index
      %c0_33 = arith.constant 0 : index
      %c0_34 = arith.constant 0 : index
      %46 = vector.load %arg2[%c6, %c0_33, %c0_34] : memref<27x4x128xbf16, #tpu.memory_space<vmem>>, vector<1x4x128xbf16>
      %47 = vector.shape_cast %46 : vector<1x4x128xbf16> to vector<4x128xbf16>
      %cst_35 = arith.constant dense<0.000000e+00> : vector<78x128xf32>
      %48 = tpu.matmul %45, %47, %cst_35 {dimension_numbers = #tpu.dot_dimension_numbers<[1], [0], [0], [1], [0, 0, 1, 1], [], []>} : vector<78x4xbf16>, vector<4x128xbf16>, vector<78x128xf32> -> vector<78x128xf32>
      %49 = arith.addf %44, %48 : vector<78x128xf32>
      %50 = vector.extract_strided_slice %5 {offsets = [21, 0], sizes = [78, 4], strides = [1, 1]} : vector<100x4xbf16> to vector<78x4xbf16>
      %c7 = arith.constant 7 : index
      %c0_36 = arith.constant 0 : index
      %c0_37 = arith.constant 0 : index
      %51 = vector.load %arg2[%c7, %c0_36, %c0_37] : memref<27x4x128xbf16, #tpu.memory_space<vmem>>, vector<1x4x128xbf16>
      %52 = vector.shape_cast %51 : vector<1x4x128xbf16> to vector<4x128xbf16>
      %cst_38 = arith.constant dense<0.000000e+00> : vector<78x128xf32>
      %53 = tpu.matmul %50, %52, %cst_38 {dimension_numbers = #tpu.dot_dimension_numbers<[1], [0], [0], [1], [0, 0, 1, 1], [], []>} : vector<78x4xbf16>, vector<4x128xbf16>, vector<78x128xf32> -> vector<78x128xf32>
      %54 = arith.addf %49, %53 : vector<78x128xf32>
      %55 = vector.extract_strided_slice %5 {offsets = [22, 0], sizes = [78, 4], strides = [1, 1]} : vector<100x4xbf16> to vector<78x4xbf16>
      %c8 = arith.constant 8 : index
      %c0_39 = arith.constant 0 : index
      %c0_40 = arith.constant 0 : index
      %56 = vector.load %arg2[%c8, %c0_39, %c0_40] : memref<27x4x128xbf16, #tpu.memory_space<vmem>>, vector<1x4x128xbf16>
      %57 = vector.shape_cast %56 : vector<1x4x128xbf16> to vector<4x128xbf16>
      %cst_41 = arith.constant dense<0.000000e+00> : vector<78x128xf32>
      %58 = tpu.matmul %55, %57, %cst_41 {dimension_numbers = #tpu.dot_dimension_numbers<[1], [0], [0], [1], [0, 0, 1, 1], [], []>} : vector<78x4xbf16>, vector<4x128xbf16>, vector<78x128xf32> -> vector<78x128xf32>
      %59 = arith.addf %54, %58 : vector<78x128xf32>
      %60 = vector.extract_strided_slice %9 {offsets = [0, 0], sizes = [78, 4], strides = [1, 1]} : vector<100x4xbf16> to vector<78x4xbf16>
      %c9 = arith.constant 9 : index
      %c0_42 = arith.constant 0 : index
      %c0_43 = arith.constant 0 : index
      %61 = vector.load %arg2[%c9, %c0_42, %c0_43] : memref<27x4x128xbf16, #tpu.memory_space<vmem>>, vector<1x4x128xbf16>
      %62 = vector.shape_cast %61 : vector<1x4x128xbf16> to vector<4x128xbf16>
      %cst_44 = arith.constant dense<0.000000e+00> : vector<78x128xf32>
      %63 = tpu.matmul %60, %62, %cst_44 {dimension_numbers = #tpu.dot_dimension_numbers<[1], [0], [0], [1], [0, 0, 1, 1], [], []>} : vector<78x4xbf16>, vector<4x128xbf16>, vector<78x128xf32> -> vector<78x128xf32>
      %64 = arith.addf %59, %63 : vector<78x128xf32>
      %65 = vector.extract_strided_slice %9 {offsets = [1, 0], sizes = [78, 4], strides = [1, 1]} : vector<100x4xbf16> to vector<78x4xbf16>
      %c10 = arith.constant 10 : index
      %c0_45 = arith.constant 0 : index
      %c0_46 = arith.constant 0 : index
      %66 = vector.load %arg2[%c10, %c0_45, %c0_46] : memref<27x4x128xbf16, #tpu.memory_space<vmem>>, vector<1x4x128xbf16>
      %67 = vector.shape_cast %66 : vector<1x4x128xbf16> to vector<4x128xbf16>
      %cst_47 = arith.constant dense<0.000000e+00> : vector<78x128xf32>
      %68 = tpu.matmul %65, %67, %cst_47 {dimension_numbers = #tpu.dot_dimension_numbers<[1], [0], [0], [1], [0, 0, 1, 1], [], []>} : vector<78x4xbf16>, vector<4x128xbf16>, vector<78x128xf32> -> vector<78x128xf32>
      %69 = arith.addf %64, %68 : vector<78x128xf32>
      %70 = vector.extract_strided_slice %9 {offsets = [2, 0], sizes = [78, 4], strides = [1, 1]} : vector<100x4xbf16> to vector<78x4xbf16>
      %c11 = arith.constant 11 : index
      %c0_48 = arith.constant 0 : index
      %c0_49 = arith.constant 0 : index
      %71 = vector.load %arg2[%c11, %c0_48, %c0_49] : memref<27x4x128xbf16, #tpu.memory_space<vmem>>, vector<1x4x128xbf16>
      %72 = vector.shape_cast %71 : vector<1x4x128xbf16> to vector<4x128xbf16>
      %cst_50 = arith.constant dense<0.000000e+00> : vector<78x128xf32>
      %73 = tpu.matmul %70, %72, %cst_50 {dimension_numbers = #tpu.dot_dimension_numbers<[1], [0], [0], [1], [0, 0, 1, 1], [], []>} : vector<78x4xbf16>, vector<4x128xbf16>, vector<78x128xf32> -> vector<78x128xf32>
      %74 = arith.addf %69, %73 : vector<78x128xf32>
      %75 = vector.extract_strided_slice %9 {offsets = [10, 0], sizes = [78, 4], strides = [1, 1]} : vector<100x4xbf16> to vector<78x4xbf16>
      %c12 = arith.constant 12 : index
      %c0_51 = arith.constant 0 : index
      %c0_52 = arith.constant 0 : index
      %76 = vector.load %arg2[%c12, %c0_51, %c0_52] : memref<27x4x128xbf16, #tpu.memory_space<vmem>>, vector<1x4x128xbf16>
      %77 = vector.shape_cast %76 : vector<1x4x128xbf16> to vector<4x128xbf16>
      %cst_53 = arith.constant dense<0.000000e+00> : vector<78x128xf32>
      %78 = tpu.matmul %75, %77, %cst_53 {dimension_numbers = #tpu.dot_dimension_numbers<[1], [0], [0], [1], [0, 0, 1, 1], [], []>} : vector<78x4xbf16>, vector<4x128xbf16>, vector<78x128xf32> -> vector<78x128xf32>
      %79 = arith.addf %74, %78 : vector<78x128xf32>
      %80 = vector.extract_strided_slice %9 {offsets = [11, 0], sizes = [78, 4], strides = [1, 1]} : vector<100x4xbf16> to vector<78x4xbf16>
      %c13 = arith.constant 13 : index
      %c0_54 = arith.constant 0 : index
      %c0_55 = arith.constant 0 : index
      %81 = vector.load %arg2[%c13, %c0_54, %c0_55] : memref<27x4x128xbf16, #tpu.memory_space<vmem>>, vector<1x4x128xbf16>
      %82 = vector.shape_cast %81 : vector<1x4x128xbf16> to vector<4x128xbf16>
      %cst_56 = arith.constant dense<0.000000e+00> : vector<78x128xf32>
      %83 = tpu.matmul %80, %82, %cst_56 {dimension_numbers = #tpu.dot_dimension_numbers<[1], [0], [0], [1], [0, 0, 1, 1], [], []>} : vector<78x4xbf16>, vector<4x128xbf16>, vector<78x128xf32> -> vector<78x128xf32>
      %84 = arith.addf %79, %83 : vector<78x128xf32>
      %85 = vector.extract_strided_slice %9 {offsets = [12, 0], sizes = [78, 4], strides = [1, 1]} : vector<100x4xbf16> to vector<78x4xbf16>
      %c14 = arith.constant 14 : index
      %c0_57 = arith.constant 0 : index
      %c0_58 = arith.constant 0 : index
      %86 = vector.load %arg2[%c14, %c0_57, %c0_58] : memref<27x4x128xbf16, #tpu.memory_space<vmem>>, vector<1x4x128xbf16>
      %87 = vector.shape_cast %86 : vector<1x4x128xbf16> to vector<4x128xbf16>
      %cst_59 = arith.constant dense<0.000000e+00> : vector<78x128xf32>
      %88 = tpu.matmul %85, %87, %cst_59 {dimension_numbers = #tpu.dot_dimension_numbers<[1], [0], [0], [1], [0, 0, 1, 1], [], []>} : vector<78x4xbf16>, vector<4x128xbf16>, vector<78x128xf32> -> vector<78x128xf32>
      %89 = arith.addf %84, %88 : vector<78x128xf32>
      %90 = vector.extract_strided_slice %9 {offsets = [20, 0], sizes = [78, 4], strides = [1, 1]} : vector<100x4xbf16> to vector<78x4xbf16>
      %c15 = arith.constant 15 : index
      %c0_60 = arith.constant 0 : index
      %c0_61 = arith.constant 0 : index
      %91 = vector.load %arg2[%c15, %c0_60, %c0_61] : memref<27x4x128xbf16, #tpu.memory_space<vmem>>, vector<1x4x128xbf16>
      %92 = vector.shape_cast %91 : vector<1x4x128xbf16> to vector<4x128xbf16>
      %cst_62 = arith.constant dense<0.000000e+00> : vector<78x128xf32>
      %93 = tpu.matmul %90, %92, %cst_62 {dimension_numbers = #tpu.dot_dimension_numbers<[1], [0], [0], [1], [0, 0, 1, 1], [], []>} : vector<78x4xbf16>, vector<4x128xbf16>, vector<78x128xf32> -> vector<78x128xf32>
      %94 = arith.addf %89, %93 : vector<78x128xf32>
      %95 = vector.extract_strided_slice %9 {offsets = [21, 0], sizes = [78, 4], strides = [1, 1]} : vector<100x4xbf16> to vector<78x4xbf16>
      %c16 = arith.constant 16 : index
      %c0_63 = arith.constant 0 : index
      %c0_64 = arith.constant 0 : index
      %96 = vector.load %arg2[%c16, %c0_63, %c0_64] : memref<27x4x128xbf16, #tpu.memory_space<vmem>>, vector<1x4x128xbf16>
      %97 = vector.shape_cast %96 : vector<1x4x128xbf16> to vector<4x128xbf16>
      %cst_65 = arith.constant dense<0.000000e+00> : vector<78x128xf32>
      %98 = tpu.matmul %95, %97, %cst_65 {dimension_numbers = #tpu.dot_dimension_numbers<[1], [0], [0], [1], [0, 0, 1, 1], [], []>} : vector<78x4xbf16>, vector<4x128xbf16>, vector<78x128xf32> -> vector<78x128xf32>
      %99 = arith.addf %94, %98 : vector<78x128xf32>
      %100 = vector.extract_strided_slice %9 {offsets = [22, 0], sizes = [78, 4], strides = [1, 1]} : vector<100x4xbf16> to vector<78x4xbf16>
      %c17 = arith.constant 17 : index
      %c0_66 = arith.constant 0 : index
      %c0_67 = arith.constant 0 : index
      %101 = vector.load %arg2[%c17, %c0_66, %c0_67] : memref<27x4x128xbf16, #tpu.memory_space<vmem>>, vector<1x4x128xbf16>
      %102 = vector.shape_cast %101 : vector<1x4x128xbf16> to vector<4x128xbf16>
      %cst_68 = arith.constant dense<0.000000e+00> : vector<78x128xf32>
      %103 = tpu.matmul %100, %102, %cst_68 {dimension_numbers = #tpu.dot_dimension_numbers<[1], [0], [0], [1], [0, 0, 1, 1], [], []>} : vector<78x4xbf16>, vector<4x128xbf16>, vector<78x128xf32> -> vector<78x128xf32>
      %104 = arith.addf %99, %103 : vector<78x128xf32>
      %105 = vector.extract_strided_slice %13 {offsets = [0, 0], sizes = [78, 4], strides = [1, 1]} : vector<100x4xbf16> to vector<78x4xbf16>
      %c18 = arith.constant 18 : index
      %c0_69 = arith.constant 0 : index
      %c0_70 = arith.constant 0 : index
      %106 = vector.load %arg2[%c18, %c0_69, %c0_70] : memref<27x4x128xbf16, #tpu.memory_space<vmem>>, vector<1x4x128xbf16>
      %107 = vector.shape_cast %106 : vector<1x4x128xbf16> to vector<4x128xbf16>
      %cst_71 = arith.constant dense<0.000000e+00> : vector<78x128xf32>
      %108 = tpu.matmul %105, %107, %cst_71 {dimension_numbers = #tpu.dot_dimension_numbers<[1], [0], [0], [1], [0, 0, 1, 1], [], []>} : vector<78x4xbf16>, vector<4x128xbf16>, vector<78x128xf32> -> vector<78x128xf32>
      %109 = arith.addf %104, %108 : vector<78x128xf32>
      %110 = vector.extract_strided_slice %13 {offsets = [1, 0], sizes = [78, 4], strides = [1, 1]} : vector<100x4xbf16> to vector<78x4xbf16>
      %c19 = arith.constant 19 : index
      %c0_72 = arith.constant 0 : index
      %c0_73 = arith.constant 0 : index
      %111 = vector.load %arg2[%c19, %c0_72, %c0_73] : memref<27x4x128xbf16, #tpu.memory_space<vmem>>, vector<1x4x128xbf16>
      %112 = vector.shape_cast %111 : vector<1x4x128xbf16> to vector<4x128xbf16>
      %cst_74 = arith.constant dense<0.000000e+00> : vector<78x128xf32>
      %113 = tpu.matmul %110, %112, %cst_74 {dimension_numbers = #tpu.dot_dimension_numbers<[1], [0], [0], [1], [0, 0, 1, 1], [], []>} : vector<78x4xbf16>, vector<4x128xbf16>, vector<78x128xf32> -> vector<78x128xf32>
      %114 = arith.addf %109, %113 : vector<78x128xf32>
      %115 = vector.extract_strided_slice %13 {offsets = [2, 0], sizes = [78, 4], strides = [1, 1]} : vector<100x4xbf16> to vector<78x4xbf16>
      %c20 = arith.constant 20 : index
      %c0_75 = arith.constant 0 : index
      %c0_76 = arith.constant 0 : index
      %116 = vector.load %arg2[%c20, %c0_75, %c0_76] : memref<27x4x128xbf16, #tpu.memory_space<vmem>>, vector<1x4x128xbf16>
      %117 = vector.shape_cast %116 : vector<1x4x128xbf16> to vector<4x128xbf16>
      %cst_77 = arith.constant dense<0.000000e+00> : vector<78x128xf32>
      %118 = tpu.matmul %115, %117, %cst_77 {dimension_numbers = #tpu.dot_dimension_numbers<[1], [0], [0], [1], [0, 0, 1, 1], [], []>} : vector<78x4xbf16>, vector<4x128xbf16>, vector<78x128xf32> -> vector<78x128xf32>
      %119 = arith.addf %114, %118 : vector<78x128xf32>
      %120 = vector.extract_strided_slice %13 {offsets = [10, 0], sizes = [78, 4], strides = [1, 1]} : vector<100x4xbf16> to vector<78x4xbf16>
      %c21 = arith.constant 21 : index
      %c0_78 = arith.constant 0 : index
      %c0_79 = arith.constant 0 : index
      %121 = vector.load %arg2[%c21, %c0_78, %c0_79] : memref<27x4x128xbf16, #tpu.memory_space<vmem>>, vector<1x4x128xbf16>
      %122 = vector.shape_cast %121 : vector<1x4x128xbf16> to vector<4x128xbf16>
      %cst_80 = arith.constant dense<0.000000e+00> : vector<78x128xf32>
      %123 = tpu.matmul %120, %122, %cst_80 {dimension_numbers = #tpu.dot_dimension_numbers<[1], [0], [0], [1], [0, 0, 1, 1], [], []>} : vector<78x4xbf16>, vector<4x128xbf16>, vector<78x128xf32> -> vector<78x128xf32>
      %124 = arith.addf %119, %123 : vector<78x128xf32>
      %125 = vector.extract_strided_slice %13 {offsets = [11, 0], sizes = [78, 4], strides = [1, 1]} : vector<100x4xbf16> to vector<78x4xbf16>
      %c22 = arith.constant 22 : index
      %c0_81 = arith.constant 0 : index
      %c0_82 = arith.constant 0 : index
      %126 = vector.load %arg2[%c22, %c0_81, %c0_82] : memref<27x4x128xbf16, #tpu.memory_space<vmem>>, vector<1x4x128xbf16>
      %127 = vector.shape_cast %126 : vector<1x4x128xbf16> to vector<4x128xbf16>
      %cst_83 = arith.constant dense<0.000000e+00> : vector<78x128xf32>
      %128 = tpu.matmul %125, %127, %cst_83 {dimension_numbers = #tpu.dot_dimension_numbers<[1], [0], [0], [1], [0, 0, 1, 1], [], []>} : vector<78x4xbf16>, vector<4x128xbf16>, vector<78x128xf32> -> vector<78x128xf32>
      %129 = arith.addf %124, %128 : vector<78x128xf32>
      %130 = vector.extract_strided_slice %13 {offsets = [12, 0], sizes = [78, 4], strides = [1, 1]} : vector<100x4xbf16> to vector<78x4xbf16>
      %c23 = arith.constant 23 : index
      %c0_84 = arith.constant 0 : index
      %c0_85 = arith.constant 0 : index
      %131 = vector.load %arg2[%c23, %c0_84, %c0_85] : memref<27x4x128xbf16, #tpu.memory_space<vmem>>, vector<1x4x128xbf16>
      %132 = vector.shape_cast %131 : vector<1x4x128xbf16> to vector<4x128xbf16>
      %cst_86 = arith.constant dense<0.000000e+00> : vector<78x128xf32>
      %133 = tpu.matmul %130, %132, %cst_86 {dimension_numbers = #tpu.dot_dimension_numbers<[1], [0], [0], [1], [0, 0, 1, 1], [], []>} : vector<78x4xbf16>, vector<4x128xbf16>, vector<78x128xf32> -> vector<78x128xf32>
      %134 = arith.addf %129, %133 : vector<78x128xf32>
      %135 = vector.extract_strided_slice %13 {offsets = [20, 0], sizes = [78, 4], strides = [1, 1]} : vector<100x4xbf16> to vector<78x4xbf16>
      %c24 = arith.constant 24 : index
      %c0_87 = arith.constant 0 : index
      %c0_88 = arith.constant 0 : index
      %136 = vector.load %arg2[%c24, %c0_87, %c0_88] : memref<27x4x128xbf16, #tpu.memory_space<vmem>>, vector<1x4x128xbf16>
      %137 = vector.shape_cast %136 : vector<1x4x128xbf16> to vector<4x128xbf16>
      %cst_89 = arith.constant dense<0.000000e+00> : vector<78x128xf32>
      %138 = tpu.matmul %135, %137, %cst_89 {dimension_numbers = #tpu.dot_dimension_numbers<[1], [0], [0], [1], [0, 0, 1, 1], [], []>} : vector<78x4xbf16>, vector<4x128xbf16>, vector<78x128xf32> -> vector<78x128xf32>
      %139 = arith.addf %134, %138 : vector<78x128xf32>
      %140 = vector.extract_strided_slice %13 {offsets = [21, 0], sizes = [78, 4], strides = [1, 1]} : vector<100x4xbf16> to vector<78x4xbf16>
      %c25 = arith.constant 25 : index
      %c0_90 = arith.constant 0 : index
      %c0_91 = arith.constant 0 : index
      %141 = vector.load %arg2[%c25, %c0_90, %c0_91] : memref<27x4x128xbf16, #tpu.memory_space<vmem>>, vector<1x4x128xbf16>
      %142 = vector.shape_cast %141 : vector<1x4x128xbf16> to vector<4x128xbf16>
      %cst_92 = arith.constant dense<0.000000e+00> : vector<78x128xf32>
      %143 = tpu.matmul %140, %142, %cst_92 {dimension_numbers = #tpu.dot_dimension_numbers<[1], [0], [0], [1], [0, 0, 1, 1], [], []>} : vector<78x4xbf16>, vector<4x128xbf16>, vector<78x128xf32> -> vector<78x128xf32>
      %144 = arith.addf %139, %143 : vector<78x128xf32>
      %145 = vector.extract_strided_slice %13 {offsets = [22, 0], sizes = [78, 4], strides = [1, 1]} : vector<100x4xbf16> to vector<78x4xbf16>
      %c26 = arith.constant 26 : index
      %c0_93 = arith.constant 0 : index
      %c0_94 = arith.constant 0 : index
      %146 = vector.load %arg2[%c26, %c0_93, %c0_94] : memref<27x4x128xbf16, #tpu.memory_space<vmem>>, vector<1x4x128xbf16>
      %147 = vector.shape_cast %146 : vector<1x4x128xbf16> to vector<4x128xbf16>
      %cst_95 = arith.constant dense<0.000000e+00> : vector<78x128xf32>
      %148 = tpu.matmul %145, %147, %cst_95 {dimension_numbers = #tpu.dot_dimension_numbers<[1], [0], [0], [1], [0, 0, 1, 1], [], []>} : vector<78x4xbf16>, vector<4x128xbf16>, vector<78x128xf32> -> vector<78x128xf32>
      %149 = arith.addf %144, %148 : vector<78x128xf32>
      %150 = vector.extract_strided_slice %149 {offsets = [0, 0], sizes = [78, 8], strides = [1, 1]} : vector<78x128xf32> to vector<78x8xf32>
      %151 = vector.broadcast %0 : vector<1x8xf32> to vector<78x8xf32>
      %152 = arith.mulf %150, %151 : vector<78x8xf32>
      %153 = vector.broadcast %1 : vector<1x8xf32> to vector<78x8xf32>
      %154 = arith.addf %152, %153 : vector<78x8xf32>
      %cst_96 = arith.constant 0.000000e+00 : f32
      %155 = vector.broadcast %cst_96 : f32 to vector<78x8xf32>
      %156 = arith.maximumf %154, %155 : vector<78x8xf32>
      %c0_97 = arith.constant 0 : index
      %157 = arith.index_cast %arg6 : i32 to index
      %c0_98 = arith.constant 0 : index
      %c0_99 = arith.constant 0 : index
      %158 = vector.load %arg5[%c0_97, %157, %c0_98, %c0_99] : memref<1x8x78x8xf32, #tpu.memory_space<vmem>>, vector<1x1x78x8xf32>
      %159 = vector.shape_cast %158 : vector<1x1x78x8xf32> to vector<78x8xf32>
      %160 = vector.shape_cast %156 : vector<78x8xf32> to vector<1x1x78x8xf32>
      tpu.vector_store %arg5[%c0_97, %157, %c0_98, %c0_99], %160 {strides = array<i32>} : memref<1x8x78x8xf32, #tpu.memory_space<vmem>>, vector<1x1x78x8xf32>,
    }
    %c8_i32_3 = arith.constant 8 : i32
    return
  }
  func.func @transform_0(%arg0: i32) -> (i32, i32, i32, i32) {
    %c0_i32 = arith.constant 0 : i32
    %c0_i32_0 = arith.constant 0 : i32
    %c0_i32_1 = arith.constant 0 : i32
    %c0_i32_2 = arith.constant 0 : i32
    return %arg0, %c0_i32, %c0_i32_0, %c0_i32_1 : i32, i32, i32, i32
  }
  func.func @transform_1(%arg0: i32) -> (i32, i32, i32) {
    %c0_i32 = arith.constant 0 : i32
    %c0_i32_0 = arith.constant 0 : i32
    %c0_i32_1 = arith.constant 0 : i32
    %c0_i32_2 = arith.constant 0 : i32
    return %c0_i32, %c0_i32_0, %c0_i32_1 : i32, i32, i32
  }
  func.func @transform_2(%arg0: i32) -> (i32, i32) {
    %c0_i32 = arith.constant 0 : i32
    %c0_i32_0 = arith.constant 0 : i32
    %c0_i32_1 = arith.constant 0 : i32
    return %c0_i32, %c0_i32_0 : i32, i32
  }
  func.func @transform_3(%arg0: i32) -> (i32, i32) {
    %c0_i32 = arith.constant 0 : i32
    %c0_i32_0 = arith.constant 0 : i32
    %c0_i32_1 = arith.constant 0 : i32
    return %c0_i32, %c0_i32_0 : i32, i32
  }
  func.func @transform_4(%arg0: i32) -> (i32, i32, i32, i32) {
    %c0_i32 = arith.constant 0 : i32
    %c0_i32_0 = arith.constant 0 : i32
    %c0_i32_1 = arith.constant 0 : i32
    %c0_i32_2 = arith.constant 0 : i32
    return %arg0, %c0_i32, %c0_i32_0, %c0_i32_1 : i32, i32, i32, i32
  }
}

</mosaic_0001>

<bundles_post_ra>
// kernel: conv_bn_relu.3
= control target key start
LH: loop header
LB: loop body
LE: loop exit
PB: predicated region body
PF: predicated region fallthrough
CT: control target
= control target key end

     0   :  { %s3157_s15 = smov 0   ;;  %s4156_s0 = inlined_call_operand.vmem [shape: bf16[2,10,100,4], index: 0, kind: input, shape index: {}]   ;;  %s4157_s1 = inlined_call_operand.vmem [shape: bf16[27,4,128], index: 1, kind: input, shape index: {}]   ;;  %s4158_s2 = inlined_call_operand.vmem [shape: f32[1,8], index: 2, kind: input, shape index: {}]   ;;  %s4159_s3 = inlined_call_operand.vmem [shape: f32[1,8], index: 3, kind: input, shape index: {}]   ;;  %s4160_s4 = inlined_call_operand.vmem [shape: f32[2,8,78,8], index: 4, kind: output, shape index: {}]  }
   0x1 LB: > { %s2710_s16 = sadd.s32 4294967295, %s3126_s15   ;;  %p2714_p0 = scmp.ge.s32.totalorder %s3126_s15, 1  ;;  %s3126_s15 = sphi %s3157_s15, %s14_s15  }
   0x2   : > { %p162_p1 = scmp.lt.s32.totalorder %s3126_s15, 3 }
   0x4   : > { %p163_p2 = pnand %p2714_p0, %p162_p1 }
   0x5   : > { %p188_p3 = scmp.lt.s32.totalorder (!%p163_p2), %s2710_s16, 1  ;;  %s3185_s29 = smov (!%p163_p2), 0  }
   0x6   : > { %166 = sbr.rel (%p163_p2) target bundleno = 710 (0x2c6), region = 36 }
   0xb   : > { %v3168_v0 = vld [vmem:[%s4158_s2] sm:$0x1]  ;;  %s4162_s16 = smov (!%p188_p3, %s2710_s16), 1 }
   0xc   : > { %v3173_v1 = vld [vmem:[%s4159_s3] sm:$0x1]  ;;  %s3098_s21 = smul.u32 520, %s4162_s16 }
   0xd   : > { %s3099_s22 = smul.u32 640, %s4162_s16 }
   0xe   : > { %s3178_s25 = scalar_lea.vmem %s4156_s0, %s3098_s21 }
   0xf   : > { %s3183_s28 = scalar_lea.vmem %s4160_s4, %s3099_s22 }
  0x10 LB: >> { %vm341_vm0 = vcmask 1041408   ;;  %v2755_v2 = vld [vmem:[%s4157_s1 + $0x4] sm:$0x3]  ;;  %v2744_v3 = vld [vmem:[%s4157_s1 + $0x2] sm:$0x3]  ;;  %s2907_s10 = smul.u32 52, %s3130_s29  ;;  %s3130_s29 = sphi %s3185_s29, %s206_s29  }
  0x11   : >> { %v454_v4 = vsel %vm341_vm0, %v2755_v2, 0  ;;  %v343_v5 = vsel %vm341_vm0, %v2744_v3, 0  ;;  %v257_v6 = vld [vmem:[%s4157_s1] sm:$0x3]  ;;  %v2761_v8 = vld [vmem:[%s4157_s1 + $0x6] sm:$0x3] }
  0x12   : >> { %3084 = vmatpush.bf16.msra.mxu2 %v454_v4  ;;  %352 = vmatpush.bf16.msra.mxu0 %v343_v5  ;;  %v390_v7 = vsel %vm341_vm0, %v257_v6, 0  ;;  %v534_v9 = vsel %vm341_vm0, %v2761_v8, 0  ;;  %v2779_v10 = vld [vmem:[%s4157_s1 + $0xc] sm:$0x3]  ;;  %v2773_v11 = vld [vmem:[%s4157_s1 + $0xa] sm:$0x3]  ;;  %s3214_s18 = scalar_lea.vmem %s3178_s25, %s2907_s10 }
  0x13   : >> { %3082 = vmatpush.bf16.msra.mxu3 %v343_v5  ;;  %3083 = vmatpush.bf16.msra.mxu1 %v390_v7  ;;  %v806_v12 = vsel %vm341_vm0, %v2779_v10, 0  ;;  %v727_v13 = vsel %vm341_vm0, %v2773_v11, 0  ;;  %v3219_v14 = vld [vmem:[%s3214_s18 + $0x8] sm:$0xff]   ;;  %v3222_v15 = vld [vmem:[%s3214_s18 + $0x10] sm:$0xff]   ;;  %vm325_vm1 = vcmask 31744   ;;  %vm428_vm2 = vcmask 1046528  }
  0x14   : >> { %v2909_v16 = vld [vmem:[%s3214_s18] sm:$0xff]   ;;  %v430_v17 = vrot.slane %v3219_v14, 1  ;;  %v432_v18 = vrot.slane %v3222_v15, 1  ;;  %v294_v21 = vshll.u32 %v3219_v14, 16  ;;  %v298_v22 = vshrl.u32 %v3219_v14, 16  ;;  %v3245_v32 = vld [vmem:[%s3214_s18 + $0x18] sm:$0xff]  }
  0x15   : >> { %v287_v19 = vshrl.u32 %v2909_v16, 16  ;;  %v289_v20 = vshll.u32 %v2909_v16, 16  ;;  %v302_v23 = vshll.u32 %v3222_v15, 16  ;;  %vm285_vm3 = vsmask.f32 7424  ;;  %v3265_v41 = vld [vmem:[%s3214_s18 + $0x20] sm:$0xff]  }
  0x16   : >> { %399 = vmatpush.bf16.msrb.mxu0 %v390_v7  ;;  %815 = vmatpush.bf16.msrb.mxu2 %v806_v12  ;;  %v433_v24 = vsel %vm428_vm2, %v430_v17, %v432_v18  ;;  %v296_v26 = vrot.slane %v294_v21, 1  ;;  %v434_v33 = vrot.slane %v3245_v32, 1  ;;  %v306_v34 = vshrl.u32 %v3222_v15, 16  ;;  %v2767_v40 = vld [vmem:[%s4157_s1 + $0x8] sm:$0x3]  ;;  %v3281_v51 = vld [vmem:[%s3214_s18 + $0xc] sm:$0xff]  }
  0x17   : >> { %543 = vmatpush.bf16.msrb.mxu3 %v534_v9  ;;  %736 = vmatpush.bf16.msrb.mxu1 %v727_v13  ;;  %v291_v25 = vrot.slane %v289_v20, 1  ;;  %v304_v27 = vrot.slane %v302_v23, 1  ;;  %v310_v35 = vshll.u32 %v3245_v32, 16  ;;  %v651_v42 = vsel %vm341_vm0, %v2767_v40, 0  ;;  %v3034_v50 = vld [vmem:[%s3214_s18 + $0x4] sm:$0xff]   ;;  %v3038_v13 = vld [vmem:[%s3214_s18 + $0x14] sm:$0xff]  }
  0x18   : >> { %2751 = vmatmul.msk.bf16.vlgmr.msra.gmra.mxu1 %vm325_vm1, %v3219_v14  ;;  %2757 = vmatmul.msk.bf16.vlgmr.msra.gmra.mxu2 %vm325_vm1, %v433_v24  ;;  %v300_v29 = vor.u32 %v298_v22, %v296_v26  ;;  %v435_v36 = vsel %vm428_vm2, %v432_v18, %v434_v33  ;;  %v436_v43 = vrot.slane %v3265_v41, 1  ;;  %v314_v44 = vshrl.u32 %v3245_v32, 16  ;;  %v2785_v58 = vld [vmem:[%s4157_s1 + $0xe] sm:$0x3]  ;;  %v2803_v59 = vld [vmem:[%s4157_s1 + $0x14] sm:$0x3] }
  0x19   : >> { %v292_v28 = vor.u32 %v291_v25, %v287_v19  ;;  %v308_v37 = vor.u32 %v306_v34, %v304_v27  ;;  %v312_v38 = vrot.slane %v310_v35, 1  ;;  %v318_v45 = vshll.u32 %v3265_v41, 16  ;;  %v2791_v60 = vld [vmem:[%s4157_s1 + $0x10] sm:$0x3]  ;;  %v2797_v2 = vld [vmem:[%s4157_s1 + $0x12] sm:$0x3] }
  0x1a   : >> { %v305_v31 = vsel %vm285_vm3, %v300_v29, %v304_v27  ;;  %v437_v46 = vsel %vm428_vm2, %v434_v33, %v436_v43  ;;  %v429_v47 = vrot.slane %v2909_v16, 1  ;;  %v587_v54 = vshrl.u32 %v3034_v50, 16 }
  0x1b   : >> { %v297_v30 = vsel %vm285_vm3, %v292_v28, %v296_v26  ;;  %2746 = vmatmul.msk.bf16.vlgmr.msra.gmra.mxu3 %vm325_vm1, %v305_v31  ;;  %v313_v39 = vsel %vm285_vm3, %v308_v37, %v312_v38  ;;  %v316_v48 = vor.u32 %v314_v44, %v312_v38  ;;  %v320_v49 = vrot.slane %v318_v45, 1 }
  0x1c   : >> { %2745 = vmatmul.msk.bf16.vlgmr.msra.gmra.mxu0 %vm325_vm1, %v297_v30  ;;  %v431_v52 = vsel %vm428_vm2, %v429_v47, %v430_v17  ;;  %v590_v55 = vshll.u32 %v3034_v50, 16  ;;  %v595_v56 = vshrl.u32 %v3281_v51, 16  ;;  %v598_v57 = vshll.u32 %v3281_v51, 16 }
  0x1d   : >> { %463 = vmatpush.bf16.msra.mxu0 %v454_v4  ;;  %v321_v53 = vsel %vm285_vm3, %v316_v48, %v320_v49  ;;  %v904_v61 = vsel %vm341_vm0, %v2785_v58, 0  ;;  %v1167_v62 = vsel %vm341_vm0, %v2803_v59, 0  ;;  %v980_v63 = vsel %vm341_vm0, %v2791_v60, 0 }
  0x1e   : >> { %913 = vmatpush.bf16.msra.mxu3 %v904_v61  ;;  %1176 = vmatpush.bf16.msra.mxu2 %v1167_v62  ;;  %v1069_v3 = vsel %vm341_vm0, %v2797_v2, 0  ;;  %v589_v4 = vrot.slane %v587_v54, 1  ;;  %v592_v5 = vrot.slane %v590_v55, 2  ;;  %v597_v6 = vrot.slane %v595_v56, 1  ;;  %v3348_v2 = vld [vmem:[%s3214_s18 + $0x28] sm:$0xff]  }
  0x1f   : >> { %1078 = vmatpush.bf16.msra.mxu1 %v1069_v3  ;;  %v600_v7 = vrot.slane %v598_v57, 2  ;;  %v322_v8 = vshrl.u32 %v3265_v41, 16  ;;  %vm585_vm4 = vsmask.f32 6400  ;;  %v607_v17 = vshll.u32 %v3038_v13, 16 }
  0x20   : >> { %v593_v9 = vor.u32 %v592_v5, %v589_v4  ;;  %v700_v18 = vrot.slane %v3034_v50, 2  ;;  %v701_v19 = vrot.slane %v3281_v51, 2  ;;  %vm699_vm5 = vcmask 1045504  }
  0x21   : >> { %v601_v10 = vor.u32 %v600_v7, %v597_v6  ;;  %v324_v11 = vor.u32 %v322_v8, %v320_v49  ;;  %v779_v20 = vrot.slane %v3219_v14, 2  ;;  %v780_v24 = vrot.slane %v3222_v15, 2 }
  0x22   : >> { %v609_v26 = vrot.slane %v607_v17, 2  ;;  %v702_v27 = vsel %vm699_vm5, %v700_v18, %v701_v19  ;;  %v509_v30 = vrot.slane %v3034_v50, 1  ;;  %v510_v31 = vrot.slane %v3281_v51, 1 }
  0x23   : >> { %v602_v12 = vsel %vm585_vm4, %v593_v9, %v601_v10  ;;  %v781_v28 = vsel %vm699_vm5, %v779_v20, %v780_v24  ;;  %v703_v40 = vrot.slane %v3038_v13, 2  ;;  %v512_v50 = vrot.slane %v3038_v13, 1 }
  0x24   : >> { %v511_v37 = vsel %vm428_vm2, %v509_v30, %v510_v31  ;;  %v784_v57 = vrot.slane %v3265_v41, 2  ;;  %v2931_v4 = vunpack.c.h.b16 %v3348_v2  ;;  %v786_v9 = vrot.slane %v3348_v2, 2 }
  0x25   : >> { %v704_v47 = vsel %vm699_vm5, %v701_v19, %v703_v40  ;;  %v855_v17 = vrot.slane %v298_v22, 2  ;;  %v859_v18 = vrot.slane %v302_v23, 3  ;;  %v858_v19 = vrot.slane %v306_v34, 2  ;;  %v2809_v34 = vld [vmem:[%s4157_s1 + $0x16] sm:$0x3] }
  0x26   : >> { %v584_v6 = vpack.c.b16 %v2931_v4, %v2931_v4  ;;  %vm854_vm6 = vsmask.f32 5376  ;;  %v1240_v30 = vsel %vm341_vm0, %v2809_v34, 0  ;;  %vm952_vm7 = vcmask 1044480  }
  0x27   : >> { %vm2628_vm8 = vcmask 64512   ;;  %vm2638_vm9 = vcmask 62464  }
  0x28   : >> { %2752 = vmatmul.msk.bf16.gmra.mxu1 %vm325_vm1, %v3222_v15  ;;  %2758 = vmatmul.msk.bf16.gmra.mxu2 %vm325_vm1, %v435_v36  ;;  %v3039_v36 = vld [vmem:[%s3214_s18 + $0x1c] sm:$0xff]  }
  0x29   : >> { %v613_v38 = vshrl.u32 %v3039_v36, 16  ;;  %v705_v56 = vrot.slane %v3039_v36, 2 }
  0x2b   : >> { %2747 = vmatmul.msk.bf16.gmra.mxu3 %vm325_vm1, %v313_v39  ;;  %v616_v39 = vshll.u32 %v3039_v36, 16  ;;  %v706_v60 = vsel %vm699_vm5, %v703_v40, %v705_v56 }
  0x2c   : >> { %2750 = vmatmul.msk.bf16.vlgmr.msrb.gmra.mxu0 %vm325_vm1, %v2909_v16  ;;  %v604_v16 = vshrl.u32 %v3038_v13, 16  ;;  %v787_v13 = vsel %vm699_vm5, %v784_v57, %v786_v9 }
  0x2d   : >> { %660 = vmatpush.bf16.msrb.mxu0 %v651_v42  ;;  %v782_v42 = vrot.slane %v3245_v32, 2 }
  0x2e   : >> { %v606_v25 = vrot.slane %v604_v16, 1 }
  0x2f   : >> { %v783_v48 = vsel %vm699_vm5, %v780_v24, %v782_v42  ;;  %v785_v61 = vsel %vm699_vm5, %v782_v42, %v784_v57  ;;  %v222_v24 = vld [vmem:[%s3214_s18 + $0x30] sm:$0x3]  ;;  %v2821_v42 = vld [vmem:[%s4157_s1 + $0x1a] sm:$0x3] }
  0x30   : >> { %v610_v29 = vor.u32 %v609_v26, %v606_v25 }
  0x32   : >> { %v611_v33 = vsel %vm585_vm4, %v601_v10, %v610_v29  ;;  %v631_v10 = vshll.u32 %v584_v6, 16 }
  0x34   : >> { %v633_v16 = vrot.slane %v631_v10, 2 }
  0x38   : >> { %2753 = vmatmul.msk.bf16.gmra.mxu1 %vm325_vm1, %v3245_v32  ;;  %2759 = vmatmul.msk.bf16.gmra.mxu2 %vm325_vm1, %v437_v46  ;;  %v618_v46 = vrot.slane %v616_v39, 2 }
  0x3b   : >> { %2748 = vmatmul.msk.bf16.gmra.mxu3 %vm325_vm1, %v321_v53  ;;  %v513_v53 = vsel %vm428_vm2, %v510_v31, %v512_v50 }
  0x3c   : >> { %2756 = vmatmul.msk.bf16.vlgmr.msra.gmra.mxu0 %vm325_vm1, %v431_v52  ;;  %v3335_v52 = vld [vmem:[%s3214_s18 + $0x24] sm:$0xff]  }
  0x3d   : >> { %989 = vmatpush.bf16.msra.mxu0 %v980_v63  ;;  %v622_v54 = vshrl.u32 %v3335_v52, 16  ;;  %v625_v55 = vshll.u32 %v3335_v52, 16  ;;  %v514_v63 = vrot.slane %v3039_v36, 1  ;;  %v707_v7 = vrot.slane %v3335_v52, 2 }
  0x3e   : >> { %v516_v20 = vrot.slane %v3335_v52, 1 }
  0x3f   : >> { %v624_v58 = vrot.slane %v622_v54, 1  ;;  %v627_v59 = vrot.slane %v625_v55, 2  ;;  %v515_v5 = vsel %vm428_vm2, %v512_v50, %v514_v63  ;;  %v954_v50 = vrot.slane %v3222_v15, 3 }
  0x40   : >> { %v517_v26 = vsel %vm428_vm2, %v514_v63, %v516_v20 }
  0x41   : >> { %v628_v62 = vor.u32 %v627_v59, %v624_v58 }
  0x43   : >> { %v634_v25 = vsel %vm585_vm4, %v628_v62, %v633_v16 }
  0x48   : >> { %2754 = vmatmul.msk.bf16.gmra.mxu1 %vm325_vm1, %v3265_v41  ;;  %2760 = vmatmul.msk.bf16.gmra.mxu2 %vm325_vm1, %v436_v43  ;;  %v615_v43 = vrot.slane %v613_v38, 1  ;;  %v2815_v38 = vld [vmem:[%s4157_s1 + $0x18] sm:$0x3] }
  0x49   : >> { %v1320_v40 = vsel %vm341_vm0, %v2815_v38, 0 }
  0x4a   : >> { %v619_v49 = vor.u32 %v618_v46, %v615_v43  ;;  %v3401_v43 = vld [vmem:[%s3214_s18 + $0x3c] sm:$0xff]   ;;  %v1436_v46 = vsel %vm341_vm0, %v2821_v42, 0 }
  0x4b   : >> { %2749 = vmatmul.msk.bf16.gmra.mxu3 %vm325_vm1, %v324_v11  ;;  %v708_v11 = vsel %vm699_vm5, %v705_v56, %v707_v7  ;;  %v1127_v52 = vshrl.u32 %v3401_v43, 16 }
  0x4c   : >> { %2768 = vmatmul.msk.bf16.vlgmr.msrb.gmra.mxu0 %vm325_vm1, %v602_v12  ;;  %v620_v51 = vsel %vm585_vm4, %v610_v29, %v619_v49  ;;  %v629_v3 = vsel %vm585_vm4, %v619_v49, %v628_v62  ;;  %v856_v12 = vrot.slane %v294_v21, 3  ;;  %v776_v21 = vunpack.c.l.b16 %v222_v24 }
  0x4d   : >> { %v709_v29 = vrot.slane %v584_v6, 2  ;;  %1329 = vmatpush.bf16.msrb.mxu0 %v1320_v40  ;;  %v953_v49 = vrot.slane %v3219_v14, 3  ;;  %v3416_v57 = vrot.slane %v1127_v52, 2  ;;  %v863_v40 = vrot.slane %v310_v35, 3 }
  0x4e   : >> { %v3381_v23 = vpack.c.b16 %v776_v21, %v776_v21 }
  0x4f   : >> { %v710_v36 = vsel %vm699_vm5, %v707_v7, %v709_v29  ;;  %v955_v55 = vsel %vm952_vm7, %v953_v49, %v954_v50 }
  0x50   : >> { %v788_v31 = vrot.slane %v3381_v23, 2 }
  0x58   : >> { %2774 = vmatmul.msk.bf16.vlgmr.msrb.gmra.mxu1 %vm325_vm1, %v702_v27  ;;  %2780 = vmatmul.msk.bf16.vlgmr.msrb.gmra.mxu2 %vm325_vm1, %v781_v28  ;;  %v857_v27 = vor.u32 %v856_v12, %v855_v17  ;;  %v3373_v28 = vor.u32 %v859_v18, %v858_v19  ;;  %v956_v12 = vrot.slane %v3245_v32, 3 }
  0x59   : >> { %1445 = vmatpush.bf16.msrb.mxu1 %v1436_v46 }
  0x5a   : >> { %v3378_v22 = vsel %vm854_vm6, %v857_v27, %v3373_v28 }
  0x5b   : >> { %2762 = vmatmul.msk.bf16.vlgmr.msrb.gmra.mxu3 %vm325_vm1, %v511_v37  ;;  %v2827_v37 = vld [vmem:[%s4157_s1 + $0x1c] sm:$0x3] }
  0x5c   : >> { %2769 = vmatmul.msk.bf16.gmra.mxu0 %vm325_vm1, %v611_v33  ;;  %1249 = vmatpush.bf16.msrb.mxu3 %v1240_v30  ;;  %v1511_v39 = vsel %vm341_vm0, %v2827_v37, 0 }
  0x5d   : >> { %1520 = vmatpush.bf16.msrb.mxu2 %v1511_v39  ;;  %v862_v39 = vrot.slane %v314_v44, 2  ;;  %v3457_v44 = vld [vmem:[%s3214_s18 + $0x4c] sm:$0xff]  }
  0x5f   : >> { %v864_v49 = vor.u32 %v863_v40, %v862_v39 }
  0x68   : >> { %2775 = vmatmul.msk.bf16.gmra.mxu1 %vm325_vm1, %v704_v47  ;;  %2781 = vmatmul.msk.bf16.gmra.mxu2 %vm325_vm1, %v783_v48  ;;  %v789_v47 = vsel %vm699_vm5, %v786_v9, %v788_v31  ;;  %v3407_v48 = vld [vmem:[%s3214_s18 + $0x34] sm:$0xff]  }
  0x69   : >> { %v1119_v54 = vshll.u32 %v3407_v48, 16  ;;  %v1117_v59 = vshrl.u32 %v3407_v48, 16 }
  0x6b   : >> { %2763 = vmatmul.msk.bf16.gmra.mxu3 %vm325_vm1, %v513_v53 }
  0x6c   : >> { %2770 = vmatmul.msk.bf16.gmra.mxu0 %vm325_vm1, %v620_v51  ;;  %v1123_v51 = vshll.u32 %v3401_v43, 16 }
  0x6e   : >> { %v3418_v14 = vrot.slane %v1123_v51, 3  ;;  %v1125_v4 = vrot.slane %v1123_v51, 1 }
  0x70   : >> { %v1640_v58 = vor.u32 %v3418_v14, %v3416_v57 }
  0x78   : >> { %2776 = vmatmul.msk.bf16.gmra.mxu1 %vm325_vm1, %v706_v60  ;;  %2782 = vmatmul.msk.bf16.gmra.mxu2 %vm325_vm1, %v785_v61  ;;  %v1121_v60 = vrot.slane %v1119_v54, 1 }
  0x7b   : >> { %2764 = vmatmul.msk.bf16.gmra.mxu3 %vm325_vm1, %v515_v5  ;;  %v3426_v5 = vld [vmem:[%s3214_s18 + $0x44] sm:$0xff]  }
  0x7c   : >> { %2771 = vmatmul.msk.bf16.gmra.mxu0 %vm325_vm1, %v629_v3  ;;  %v1122_v3 = vor.u32 %v1121_v60, %v1117_v59  ;;  %v1134_v16 = vshrl.u32 %v3426_v5, 16 }
  0x7e   : >> { %v1126_v10 = vsel %vm285_vm3, %v1122_v3, %v1125_v4  ;;  %v1641_v24 = vrot.slane %v1134_v16, 2 }
  0x88   : >> { %2777 = vmatmul.msk.bf16.gmra.mxu1 %vm325_vm1, %v708_v11  ;;  %2783 = vmatmul.msk.bf16.gmra.mxu2 %vm325_vm1, %v787_v13  ;;  %v1130_v11 = vshll.u32 %v3426_v5, 16 }
  0x8a   : >> { %v1642_v13 = vrot.slane %v1130_v11, 3 }
  0x8b   : >> { %2765 = vmatmul.msk.bf16.gmra.mxu3 %vm325_vm1, %v517_v26 }
  0x8c   : >> { %2772 = vmatmul.msk.bf16.gmra.mxu0 %vm325_vm1, %v634_v25  ;;  %v3438_v27 = vor.u32 %v1642_v13, %v1641_v24 }
  0x95   : >> { %v406_v33 = vpop.f32.mrf.mxu1 }
  0x98   : >> { %2778 = vmatmul.msk.bf16.gmra.mxu1 %vm325_vm1, %v710_v36  ;;  %2784 = vmatmul.msk.bf16.gmra.mxu2 %vm325_vm1, %v789_v47  ;;  %v1132_v36 = vrot.slane %v1130_v11, 1 }
  0x99   : >> { %v354_v53 = vpop.f32.mrf.mxu0 }
  0x9b   : >> { %v470_v15 = vpop.f32.mrf.mxu2  ;;  %2766 = vmatmul.msk.bf16.gmra.mxu3 %vm325_vm1, %v516_v20  ;;  %v957_v20 = vsel %vm952_vm7, %v954_v50, %v956_v12 }
  0x9c   : >> { %2792 = vmatmul.msk.bf16.vlgmr.msra.gmra.mxu0 %vm325_vm1, %v955_v55 }
  0x9d   : >> { %v408_v56 = vpop.f32.mrf.mxu1 }
  0x9e   : >> { %v359_v61 = vpop.f32.mrf.mxu3 }
  0x9f   : >> { %v407_v62 = vadd.f32 %v406_v33, %v359_v61  ;;  %v1129_v33 = vor.u32 %v1127_v52, %v1125_v4 }
  0xa1   : >> { %v356_v63 = vpop.f32.mrf.mxu0  ;;  %v3428_v9 = vadd.f32 %v470_v15, %v407_v62  ;;  %v1133_v47 = vsel %vm285_vm3, %v1129_v33, %v1132_v36  ;;  %v1137_v15 = vshll.u32 %v3457_v44, 16  ;;  %v1136_v62 = vor.u32 %v1134_v16, %v1132_v36 }
  0xa3   : >> { %v472_v7 = vpop.f32.mrf.mxu2 }
  0xa5   : >> { %v411_v6 = vpop.f32.mrf.mxu1 }
  0xa6   : >> { %v361_v17 = vpop.f32.mrf.mxu3 }
  0xa7   : >> { %v409_v18 = vadd.f32 %v408_v56, %v361_v17 }
  0xa8   : >> { %2798 = vmatmul.msk.bf16.vlgmr.msra.gmra.mxu1 %vm325_vm1, %v3407_v48  ;;  %2804 = vmatmul.msk.bf16.vlgmr.msra.gmra.mxu2 %vm325_vm1, %v1126_v10 }
  0xa9   : >> { %v401_v19 = vpop.f32.mrf.mxu0  ;;  %v3440_v34 = vadd.f32 %v472_v7, %v409_v18  ;;  %v3485_v18 = vld [vmem:[%s3214_s18 + $0x54] sm:$0xff]  }
  0xaa   : >> { %v402_v21 = vadd.f32 %v401_v19, %v354_v53  ;;  %v865_v53 = vsel %vm854_vm6, %v3373_v28, %v864_v49  ;;  %v866_v28 = vrot.slane %v322_v8, 2 }
  0xab   : >> { %v475_v26 = vpop.f32.mrf.mxu2  ;;  %2786 = vmatmul.msk.bf16.vlgmr.msra.gmra.mxu3 %vm325_vm1, %v3378_v22  ;;  %v958_v22 = vrot.slane %v3265_v41, 3 }
  0xac   : >> { %2793 = vmatmul.msk.bf16.gmra.mxu0 %vm325_vm1, %v957_v20 }
  0xad   : >> { %v413_v25 = vpop.f32.mrf.mxu1  ;;  %v959_v32 = vsel %vm952_vm7, %v956_v12, %v958_v22  ;;  %v960_v12 = vrot.slane %v3348_v2, 3 }
  0xae   : >> { %v364_v29 = vpop.f32.mrf.mxu3 }
  0xaf   : >> { %v412_v30 = vadd.f32 %v411_v6, %v364_v29  ;;  %v867_v6 = vrot.slane %v318_v45, 3  ;;  %v961_v41 = vsel %vm952_vm7, %v958_v22, %v960_v12  ;;  %v874_v29 = vshll.u32 %v3348_v2, 16 }
  0xb1   : >> { %v403_v31 = vpop.f32.mrf.mxu0  ;;  %v3449_v46 = vadd.f32 %v475_v26, %v412_v30  ;;  %v868_v13 = vor.u32 %v867_v6, %v866_v28  ;;  %v871_v26 = vshrl.u32 %v3348_v2, 16  ;;  %v876_v40 = vrot.slane %v874_v29, 3 }
  0xb2   : >> { %v404_v37 = vadd.f32 %v403_v31, %v356_v63  ;;  %v1139_v63 = vrot.slane %v1137_v15, 1  ;;  %v962_v2 = vrot.slane %v3381_v23, 3 }
  0xb3   : >> { %v477_v42 = vpop.f32.mrf.mxu2  ;;  %v869_v45 = vsel %vm854_vm6, %v864_v49, %v868_v13  ;;  %v873_v39 = vrot.slane %v871_v26, 2 }
  0xb4   : >> { %v1140_v11 = vsel %vm285_vm3, %v1136_v62, %v1139_v63  ;;  %v2833_v62 = vld [vmem:[%s4157_s1 + $0x1e] sm:$0x3] }
  0xb5   : >> { %v416_v38 = vpop.f32.mrf.mxu1  ;;  %v877_v49 = vor.u32 %v876_v40, %v873_v39 }
  0xb6   : >> { %v366_v50 = vpop.f32.mrf.mxu3 }
  0xb7   : >> { %v414_v51 = vadd.f32 %v413_v25, %v366_v50  ;;  %v1144_v25 = vshll.u32 %v3485_v18, 16 }
  0xb8   : >> { %2799 = vmatmul.msk.bf16.gmra.mxu1 %vm325_vm1, %v3401_v43  ;;  %2805 = vmatmul.msk.bf16.gmra.mxu2 %vm325_vm1, %v1133_v47 }
  0xb9   : >> { %v465_v52 = vpop.f32.mrf.mxu0  ;;  %v3464_v56 = vadd.f32 %v477_v42, %v414_v51  ;;  %v1146_v36 = vrot.slane %v1144_v25, 1 }
  0xba   : >> { %v3460_v35 = vadd.f32 %v465_v52, %v402_v21  ;;  %v1141_v21 = vshrl.u32 %v3457_v44, 16 }
  0xbb   : >> { %v480_v55 = vpop.f32.mrf.mxu2  ;;  %2787 = vmatmul.msk.bf16.gmra.mxu3 %vm325_vm1, %v865_v53  ;;  %v878_v53 = vsel %vm854_vm6, %v868_v13, %v877_v49 }
  0xbc   : >> { %2794 = vmatmul.msk.bf16.gmra.mxu0 %vm325_vm1, %v959_v32  ;;  %v1143_v33 = vor.u32 %v1141_v21, %v1139_v63  ;;  %v963_v32 = vsel %vm952_vm7, %v960_v12, %v962_v2  ;;  %v1590_v63 = vsel %vm341_vm0, %v2833_v62, 0 }
  0xbd   : >> { %v418_v54 = vpop.f32.mrf.mxu1  ;;  %1599 = vmatpush.bf16.msra.mxu3 %v1590_v63 }
  0xbe   : >> { %v369_v59 = vpop.f32.mrf.mxu3  ;;  %v1147_v22 = vsel %vm285_vm3, %v1143_v33, %v1146_v36 }
  0xbf   : >> { %v417_v60 = vadd.f32 %v416_v38, %v369_v59 }
  0xc1   : >> { %v467_v61 = vpop.f32.mrf.mxu0  ;;  %v3477_v10 = vadd.f32 %v480_v55, %v417_v60  ;;  %v880_v60 = vshrl.u32 %v3381_v23, 16 }
  0xc2   : >> { %v3473_v3 = vadd.f32 %v467_v61, %v404_v37  ;;  %v883_v61 = vshll.u32 %v3381_v23, 16 }
  0xc3   : >> { %v482_v7 = vpop.f32.mrf.mxu2 }
  0xc5   : >> { %v421_v4 = vpop.f32.mrf.mxu1 }
  0xc6   : >> { %v371_v16 = vpop.f32.mrf.mxu3 }
  0xc7   : >> { %v419_v8 = vadd.f32 %v418_v54, %v371_v16  ;;  %v2981_v16 = vld [vmem:[%s3214_s18 + $0x38] sm:$0xff]  }
  0xc8   : >> { %2800 = vmatmul.msk.bf16.gmra.mxu1 %vm325_vm1, %v3426_v5  ;;  %2806 = vmatmul.msk.bf16.gmra.mxu2 %vm325_vm1, %v1140_v11  ;;  %v885_v11 = vrot.slane %v883_v61, 3  ;;  %v1372_v40 = vshrl.u32 %v2981_v16, 16 }
  0xc9   : >> { %v662_v17 = vpop.f32.mrf.mxu0  ;;  %v3489_v24 = vadd.f32 %v482_v7, %v419_v8  ;;  %v882_v7 = vrot.slane %v880_v60, 2  ;;  %v3530_v8 = vld [vmem:[%s3214_s18 + $0x40] sm:$0xff]  }
  0xca   : >> { %v1296_v33 = vrot.slane %v3530_v8, 1  ;;  %v1374_v61 = vrot.slane %v1372_v40, 1 }
  0xcb   : >> { %v485_v20 = vpop.f32.mrf.mxu2  ;;  %2788 = vmatmul.msk.bf16.gmra.mxu3 %vm325_vm1, %v869_v45  ;;  %v2851_v45 = vld [vmem:[%s4157_s1 + $0x24] sm:$0x3] }
  0xcc   : >> { %2795 = vmatmul.msk.bf16.gmra.mxu0 %vm325_vm1, %v961_v41  ;;  %v1851_v26 = vsel %vm341_vm0, %v2851_v45, 0 }
  0xcd   : >> { %v423_v19 = vpop.f32.mrf.mxu1  ;;  %1860 = vmatpush.bf16.msra.mxu2 %v1851_v26 }
  0xce   : >> { %v374_v30 = vpop.f32.mrf.mxu3 }
  0xcf   : >> { %v422_v31 = vadd.f32 %v421_v4, %v374_v30  ;;  %v1148_v4 = vshrl.u32 %v3485_v18, 16  ;;  %v886_v30 = vor.u32 %v885_v11, %v882_v7 }
  0xd1   : >> { %v3501_v37 = vpop.f32.mrf.mxu0  ;;  %v3503_v47 = vadd.f32 %v485_v20, %v422_v31  ;;  %v1150_v20 = vor.u32 %v1148_v4, %v1146_v36  ;;  %v1295_v31 = vrot.slane %v2981_v16, 1  ;;  %v1383_v36 = vshll.u32 %v3530_v8, 16 }
  0xd3   : >> { %v487_v42 = vpop.f32.mrf.mxu2 }
  0xd5   : >> { %v738_v38 = vpop.f32.mrf.mxu1 }
  0xd6   : >> { %v376_v50 = vpop.f32.mrf.mxu3 }
  0xd7   : >> { %v424_v51 = vadd.f32 %v423_v19, %v376_v50  ;;  %v2839_v19 = vld [vmem:[%s4157_s1 + $0x20] sm:$0x3] }
  0xd8   : >> { %2801 = vmatmul.msk.bf16.gmra.mxu1 %vm325_vm1, %v3457_v44  ;;  %2807 = vmatmul.msk.bf16.gmra.mxu2 %vm325_vm1, %v1147_v22  ;;  %v1380_v22 = vshrl.u32 %v3530_v8, 16 }
  0xd9   : >> { %v3510_v52 = vpop.f32.mrf.mxu0  ;;  %v3515_v59 = vadd.f32 %v487_v42, %v424_v51  ;;  %v1375_v42 = vshll.u32 %v2981_v16, 16 }
  0xda   : >> { %v1382_v63 = vrot.slane %v1380_v22, 1 }
  0xdb   : >> { %v817_v55 = vpop.f32.mrf.mxu2  ;;  %2789 = vmatmul.msk.bf16.gmra.mxu3 %vm325_vm1, %v878_v53  ;;  %v1377_v62 = vrot.slane %v1375_v42, 2 }
  0xdc   : >> { %2796 = vmatmul.msk.bf16.gmra.mxu0 %vm325_vm1, %v963_v32  ;;  %v887_v32 = vsel %vm854_vm6, %v877_v49, %v886_v30  ;;  %v3567_v30 = vld [vmem:[%s3214_s18 + $0x48] sm:$0xff]  }
  0xdd   : >> { %v740_v54 = vpop.f32.mrf.mxu1 }
  0xde   : >> { %v545_v28 = vpop.f32.mrf.mxu3 }
  0xdf   : >> { %v570_v6 = vadd.f32 %v545_v28, %v3460_v35  ;;  %v2845_v35 = vld [vmem:[%s4157_s1 + $0x22] sm:$0x3]  ;;  %v1385_v28 = vrot.slane %v1383_v36, 2 }
  0xe0   : >> { %v1762_v29 = vsel %vm341_vm0, %v2845_v35, 0  ;;  %v1485_v35 = vrot.slane %v3530_v8, 2  ;;  %v1389_v8 = vshrl.u32 %v3567_v30, 16 }
  0xe1   : >> { %v3526_v12 = vpop.f32.mrf.mxu0  ;;  %v687_v23 = vadd.f32 %v662_v17, %v570_v6  ;;  %v1687_v17 = vsel %vm341_vm0, %v2839_v19, 0  ;;  %1771 = vmatpush.bf16.msra.mxu1 %v1762_v29  ;;  %v1386_v11 = vor.u32 %v1385_v28, %v1382_v63  ;;  %v1484_v19 = vrot.slane %v2981_v16, 2 }
  0xe2   : >> { %1696 = vmatpush.bf16.msra.mxu0 %v1687_v17  ;;  %v1216_v16 = vrot.slane %v3401_v43, 1  ;;  %v1487_v28 = vrot.slane %v3567_v30, 2 }
  0xe3   : >> { %v819_v41 = vpop.f32.mrf.mxu2  ;;  %v763_v39 = vadd.f32 %v738_v38, %v687_v23  ;;  %v1297_v38 = vsel %vm428_vm2, %v1295_v31, %v1296_v33 }
  0xe5   : >> { %v743_v13 = vpop.f32.mrf.mxu1  ;;  %v3551_v2 = vadd.f32 %v817_v55, %v763_v39  ;;  %v1392_v39 = vshll.u32 %v3567_v30, 16 }
  0xe6   : >> { %v547_v50 = vpop.f32.mrf.mxu3 }
  0xe7   : >> { %v571_v51 = vadd.f32 %v547_v50, %v3473_v3  ;;  %v1378_v3 = vor.u32 %v1377_v62, %v1374_v61 }
  0xe8   : >> { %2802 = vmatmul.msk.bf16.gmra.mxu1 %vm325_vm1, %v3485_v18  ;;  %2808 = vmatmul.msk.bf16.gmra.mxu2 %vm325_vm1, %v1150_v20 }
  0xe9   : >> { %v672_v53 = vpop.f32.mrf.mxu0  ;;  %v688_v6 = vadd.f32 %v3501_v37, %v571_v51  ;;  %v1387_v37 = vsel %vm585_vm4, %v1378_v3, %v1386_v11  ;;  %v1394_v51 = vrot.slane %v1392_v39, 2 }
  0xeb   : >> { %v822_v7 = vpop.f32.mrf.mxu2  ;;  %2790 = vmatmul.msk.bf16.gmra.mxu3 %vm325_vm1, %v887_v32  ;;  %v764_v55 = vadd.f32 %v740_v54, %v688_v6  ;;  %v1486_v54 = vsel %vm699_vm5, %v1484_v19, %v1485_v35 }
  0xec   : >> { %2816 = vmatmul.msk.bf16.vlgmr.msrb.gmra.mxu0 %vm325_vm1, %v1297_v38 }
  0xed   : >> { %v745_v60 = vpop.f32.mrf.mxu1  ;;  %v3560_v49 = vadd.f32 %v819_v41, %v764_v55  ;;  %v1298_v41 = vrot.slane %v3567_v30, 1 }
  0xee   : >> { %v550_v23 = vpop.f32.mrf.mxu3 }
  0xef   : >> { %v572_v45 = vadd.f32 %v550_v23, %v3428_v9  ;;  %v1215_v9 = vrot.slane %v3407_v48, 1  ;;  %v1299_v36 = vsel %vm428_vm2, %v1296_v33, %v1298_v41  ;;  %v1391_v48 = vrot.slane %v1389_v8, 1  ;;  %v3591_v23 = vld [vmem:[%s3214_s18 + $0x50] sm:$0xff]  }
  0xf1   : >> { %v674_v20 = vpop.f32.mrf.mxu0  ;;  %v689_v17 = vadd.f32 %v3510_v52, %v572_v45  ;;  %v1395_v62 = vor.u32 %v1394_v51, %v1391_v48  ;;  %v1488_v45 = vsel %vm699_vm5, %v1485_v35, %v1487_v28 }
  0xf3   : >> { %v824_v29 = vpop.f32.mrf.mxu2  ;;  %v765_v31 = vadd.f32 %v743_v13, %v689_v17  ;;  %v1217_v13 = vsel %vm428_vm2, %v1215_v9, %v1216_v16  ;;  %v1396_v55 = vsel %vm585_vm4, %v1386_v11, %v1395_v62  ;;  %v1401_v17 = vshll.u32 %v3591_v23, 16 }
  0xf5   : >> { %v748_v26 = vpop.f32.mrf.mxu1  ;;  %v3576_v40 = vadd.f32 %v822_v7, %v765_v31  ;;  %v1403_v9 = vrot.slane %v1401_v17, 2 }
  0xf6   : >> { %v552_v52 = vpop.f32.mrf.mxu3 }
  0xf7   : >> { %v573_v42 = vadd.f32 %v552_v52, %v3440_v34 }
  0xf8   : >> { %2822 = vmatmul.msk.bf16.vlgmr.msrb.gmra.mxu1 %vm325_vm1, %v1387_v37  ;;  %2828 = vmatmul.msk.bf16.vlgmr.msrb.gmra.mxu2 %vm325_vm1, %v1486_v54  ;;  %v1218_v37 = vrot.slane %v3426_v5, 1 }
  0xf9   : >> { %v677_v22 = vpop.f32.mrf.mxu0  ;;  %v690_v32 = vadd.f32 %v3526_v12, %v573_v42 }
  0xfa   : >> { %v1219_v54 = vsel %vm428_vm2, %v1216_v16, %v1218_v37 }
  0xfb   : >> { %v827_v38 = vpop.f32.mrf.mxu2  ;;  %2810 = vmatmul.msk.bf16.vlgmr.msrb.gmra.mxu3 %vm325_vm1, %v1217_v13  ;;  %v766_v61 = vadd.f32 %v745_v60, %v690_v32  ;;  %v1300_v60 = vrot.slane %v3591_v23, 1 }
  0xfc   : >> { %2817 = vmatmul.msk.bf16.gmra.mxu0 %vm325_vm1, %v1299_v36 }
  0xfd   : >> { %v750_v50 = vpop.f32.mrf.mxu1  ;;  %v3585_v63 = vadd.f32 %v824_v29, %v766_v61  ;;  %v1301_v35 = vsel %vm428_vm2, %v1298_v41, %v1300_v60  ;;  %v1489_v41 = vrot.slane %v3591_v23, 2 }
  0xfe   : >> { %v555_v34 = vpop.f32.mrf.mxu3 }
  0xff   : >> { %v574_v33 = vadd.f32 %v555_v34, %v3449_v46  ;;  %v1398_v46 = vshrl.u32 %v3591_v23, 16  ;;  %v1490_v61 = vsel %vm699_vm5, %v1487_v28, %v1489_v41 }
 0x101   : >> { %v679_v6 = vpop.f32.mrf.mxu0  ;;  %v691_v3 = vadd.f32 %v672_v53, %v574_v33  ;;  %v1220_v33 = vrot.slane %v3457_v44, 1 }
 0x103   : >> { %v829_v12 = vpop.f32.mrf.mxu2  ;;  %v767_v19 = vadd.f32 %v748_v26, %v691_v3  ;;  %v1400_v26 = vrot.slane %v1398_v46, 1  ;;  %v1221_v23 = vsel %vm428_vm2, %v1218_v37, %v1220_v33  ;;  %v2729_v37 = vld [vmem:[%s3214_s18 + $0x60] sm:$0xf] }
 0x105   : >> { %v753_v7 = vpop.f32.mrf.mxu1  ;;  %v3599_v29 = vadd.f32 %v827_v38, %v767_v19  ;;  %v1404_v42 = vor.u32 %v1403_v9, %v1400_v26  ;;  %v3613_v38 = vld [vmem:[%s3214_s18 + $0x58] sm:$0xff]  }
 0x106   : >> { %v557_v11 = vpop.f32.mrf.mxu3 }
 0x107   : >> { %v575_v53 = vadd.f32 %v557_v11, %v3464_v56  ;;  %v1405_v51 = vsel %vm585_vm4, %v1395_v62, %v1404_v42 }
 0x108   : >> { %2823 = vmatmul.msk.bf16.gmra.mxu1 %vm325_vm1, %v1396_v55  ;;  %2829 = vmatmul.msk.bf16.gmra.mxu2 %vm325_vm1, %v1488_v45  ;;  %v1410_v55 = vshll.u32 %v3613_v38, 16 }
 0x109   : >> { %v682_v30 = vpop.f32.mrf.mxu0  ;;  %v692_v8 = vadd.f32 %v674_v20, %v575_v53 }
 0x10a   : >> { %v1412_v19 = vrot.slane %v1410_v55, 2 }
 0x10b   : >> { %v832_v39 = vpop.f32.mrf.mxu2  ;;  %2811 = vmatmul.msk.bf16.gmra.mxu3 %vm325_vm1, %v1219_v54  ;;  %v768_v52 = vadd.f32 %v750_v50, %v692_v8  ;;  %v1302_v50 = vrot.slane %v3613_v38, 1 }
 0x10c   : >> { %2818 = vmatmul.msk.bf16.gmra.mxu0 %vm325_vm1, %v1301_v35 }
 0x10d   : >> { %v755_v31 = vpop.f32.mrf.mxu1  ;;  %v3607_v36 = vadd.f32 %v829_v12, %v768_v52  ;;  %v1303_v28 = vsel %vm428_vm2, %v1300_v60, %v1302_v50  ;;  %v1491_v60 = vrot.slane %v3613_v38, 2  ;;  %v3635_v52 = vunpack.c.l.b16 %v2729_v37 }
 0x10e   : >> { %v560_v56 = vpop.f32.mrf.mxu3 }
 0x10f   : >> { %v576_v13 = vadd.f32 %v560_v56, %v3477_v10  ;;  %v1407_v10 = vshrl.u32 %v3613_v38, 16  ;;  %v1492_v56 = vsel %vm699_vm5, %v1489_v41, %v1491_v60 }
 0x111   : >> { %v684_v16 = vpop.f32.mrf.mxu0  ;;  %v693_v32 = vadd.f32 %v677_v22, %v576_v13  ;;  %v1409_v45 = vrot.slane %v1407_v10, 1  ;;  %v1222_v13 = vrot.slane %v3485_v18, 1 }
 0x113   : >> { %v834_v20 = vpop.f32.mrf.mxu2  ;;  %v769_v34 = vadd.f32 %v753_v7, %v693_v32  ;;  %v1413_v53 = vor.u32 %v1412_v19, %v1409_v45  ;;  %v1370_v32 = vpack.c.b16 %v3635_v52, %v3635_v52  ;;  %v2875_v19 = vld [vmem:[%s4157_s1 + $0x2c] sm:$0x3] }
 0x115   : >> { %v758_v48 = vpop.f32.mrf.mxu1  ;;  %v3621_v3 = vadd.f32 %v832_v39, %v769_v34  ;;  %v1414_v8 = vsel %vm585_vm4, %v1404_v42, %v1413_v53  ;;  %v1416_v41 = vshll.u32 %v1370_v32, 16 }
 0x116   : >> { %v562_v62 = vpop.f32.mrf.mxu3 }
 0x117   : >> { %v577_v22 = vadd.f32 %v562_v62, %v3489_v24  ;;  %v1418_v55 = vrot.slane %v1416_v41, 2 }
 0x118   : >> { %2824 = vmatmul.msk.bf16.gmra.mxu1 %vm325_vm1, %v1405_v51  ;;  %2830 = vmatmul.msk.bf16.gmra.mxu2 %vm325_vm1, %v1490_v61 }
 0x119   : >> { %v991_v12 = vpop.f32.mrf.mxu0  ;;  %v694_v46 = vadd.f32 %v679_v6, %v577_v22  ;;  %v1419_v57 = vsel %vm585_vm4, %v1413_v53, %v1418_v55  ;;  %v1564_v55 = vrot.slane %v3426_v5, 2 }
 0x11b   : >> { %v837_v17 = vpop.f32.mrf.mxu2  ;;  %2812 = vmatmul.msk.bf16.gmra.mxu3 %vm325_vm1, %v1221_v23  ;;  %v770_v11 = vadd.f32 %v755_v31, %v694_v46  ;;  %v2869_v46 = vld [vmem:[%s4157_s1 + $0x2a] sm:$0x3] }
 0x11c   : >> { %2819 = vmatmul.msk.bf16.gmra.mxu0 %vm325_vm1, %v1303_v28  ;;  %v1493_v28 = vrot.slane %v1370_v32, 2 }
 0x11d   : >> { %v760_v7 = vpop.f32.mrf.mxu1  ;;  %v3629_v35 = vadd.f32 %v834_v20, %v770_v11  ;;  %v1223_v20 = vsel %vm428_vm2, %v1220_v33, %v1222_v13  ;;  %v2102_v11 = vsel %vm341_vm0, %v2869_v46, 0 }
 0x11e   : >> { %v565_v24 = vpop.f32.mrf.mxu3  ;;  %2111 = vmatpush.bf16.msrb.mxu1 %v2102_v11  ;;  %v3719_v11 = vld [vmem:[%s3214_s18 + $0x70] sm:$0xff]  }
 0x11f   : >> { %v578_v54 = vadd.f32 %v565_v24, %v3503_v47 }
 0x121   : >> { %v993_v26 = vpop.f32.mrf.mxu0  ;;  %v695_v6 = vadd.f32 %v682_v30, %v578_v54 }
 0x123   : >> { %v839_v39 = vpop.f32.mrf.mxu2  ;;  %v771_v31 = vadd.f32 %v758_v48, %v695_v6  ;;  %v1644_v48 = vsel %vm854_vm6, %v1640_v58, %v3438_v27 }
 0x125   : >> { %v1080_v9 = vpop.f32.mrf.mxu1  ;;  %v3640_v51 = vadd.f32 %v837_v17, %v771_v31  ;;  %v1736_v31 = vrot.slane %v3426_v5, 3  ;;  %v1738_v5 = vrot.slane %v3457_v44, 3 }
 0x126   : >> { %v567_v47 = vpop.f32.mrf.mxu3 }
 0x127   : >> { %v579_v30 = vadd.f32 %v567_v47, %v3515_v59  ;;  %v2857_v59 = vld [vmem:[%s4157_s1 + $0x26] sm:$0x3] }
 0x128   : >> { %2825 = vmatmul.msk.bf16.gmra.mxu1 %vm325_vm1, %v1414_v8  ;;  %2831 = vmatmul.msk.bf16.gmra.mxu2 %vm325_vm1, %v1492_v56  ;;  %v1949_v33 = vsel %vm341_vm0, %v2857_v59, 0 }
 0x129   : >> { %v996_v42 = vpop.f32.mrf.mxu0  ;;  %v696_v34 = vadd.f32 %v684_v16, %v579_v30  ;;  %1958 = vmatpush.bf16.msrb.mxu3 %v1949_v33 }
 0x12b   : >> { %v1178_v10 = vpop.f32.mrf.mxu2  ;;  %2813 = vmatmul.msk.bf16.gmra.mxu3 %vm325_vm1, %v1223_v20  ;;  %v772_v62 = vadd.f32 %v760_v7, %v696_v34  ;;  %v2863_v7 = vld [vmem:[%s4157_s1 + $0x28] sm:$0x3]  ;;  %v1646_v20 = vrot.slane %v1137_v15, 3 }
 0x12c   : >> { %2820 = vmatmul.msk.bf16.gmra.mxu0 %vm325_vm1, %v1302_v50  ;;  %v2022_v17 = vsel %vm341_vm0, %v2863_v7, 0  ;;  %v1739_v7 = vsel %vm952_vm7, %v1736_v31, %v1738_v5 }
 0x12d   : >> { %v1082_v61 = vpop.f32.mrf.mxu1  ;;  %v3658_v22 = vadd.f32 %v839_v39, %v772_v62  ;;  %2031 = vmatpush.bf16.msrb.mxu0 %v2022_v17  ;;  %v2951_v17 = vunpack.c.h.b16 %v3613_v38 }
 0x12e   : >> { %v915_v16 = vpop.f32.mrf.mxu3 }
 0x12f   : >> { %v940_v50 = vadd.f32 %v915_v16, %v3551_v2  ;;  %v2218_v2 = vsel %vm341_vm0, %v2875_v19, 0 }
 0x130   : >> { %2227 = vmatpush.bf16.msrb.mxu2 %v2218_v2 }
 0x131   : >> { %v998_v23 = vpop.f32.mrf.mxu0  ;;  %v1016_v14 = vadd.f32 %v991_v12, %v940_v50  ;;  %v1494_v12 = vsel %vm699_vm5, %v1491_v60, %v1493_v28 }
 0x133   : >> { %v1180_v58 = vpop.f32.mrf.mxu2  ;;  %v1105_v53 = vadd.f32 %v1080_v9, %v1016_v14  ;;  %v1735_v9 = vrot.slane %v3401_v43, 3 }
 0x135   : >> { %v1085_v45 = vpop.f32.mrf.mxu1  ;;  %v3676_v24 = vadd.f32 %v1178_v10, %v1105_v53  ;;  %v3693_v10 = vld [vmem:[%s3214_s18 + $0x68] sm:$0xff]   ;;  %v1566_v53 = vrot.slane %v3457_v44, 2 }
 0x136   : >> { %v917_v54 = vpop.f32.mrf.mxu3 }
 0x137   : >> { %v941_v37 = vadd.f32 %v917_v54, %v3560_v49 }
 0x138   : >> { %2826 = vmatmul.msk.bf16.gmra.mxu1 %vm325_vm1, %v1419_v57  ;;  %2832 = vmatmul.msk.bf16.gmra.mxu2 %vm325_vm1, %v1494_v12 }
 0x139   : >> { %v1001_v8 = vpop.f32.mrf.mxu0  ;;  %v1017_v39 = vadd.f32 %v993_v26, %v941_v37  ;;  %v1645_v26 = vrot.slane %v1141_v21, 2 }
 0x13b   : >> { %v1183_v56 = vpop.f32.mrf.mxu2  ;;  %2814 = vmatmul.msk.bf16.gmra.mxu3 %vm325_vm1, %v1222_v13  ;;  %v1106_v60 = vadd.f32 %v1082_v61, %v1017_v39  ;;  %v1737_v13 = vsel %vm952_vm7, %v1735_v9, %v1736_v31 }
 0x13c   : >> { %2840 = vmatmul.msk.bf16.vlgmr.msra.gmra.mxu0 %vm325_vm1, %v1644_v48  ;;  %v1647_v48 = vor.u32 %v1646_v20, %v1645_v26 }
 0x13d   : >> { %v1087_v6 = vpop.f32.mrf.mxu1  ;;  %v3684_v47 = vadd.f32 %v1180_v58, %v1106_v60 }
 0x13e   : >> { %v920_v32 = vpop.f32.mrf.mxu3  ;;  %v1648_v62 = vsel %vm854_vm6, %v3438_v27, %v1647_v48  ;;  %v1649_v27 = vrot.slane %v1148_v4, 2 }
 0x13f   : >> { %v942_v30 = vadd.f32 %v920_v32, %v3576_v40  ;;  %v1563_v40 = vrot.slane %v3401_v43, 2 }
 0x141   : >> { %v1003_v49 = vpop.f32.mrf.mxu0  ;;  %v1018_v61 = vadd.f32 %v996_v42, %v942_v30  ;;  %v1565_v16 = vsel %vm699_vm5, %v1563_v40, %v1564_v55 }
 0x143   : >> { %v1185_v34 = vpop.f32.mrf.mxu2  ;;  %v1107_v59 = vadd.f32 %v1085_v45, %v1018_v61  ;;  %v2730_v61 = vld [vmem:[%s3214_s18 + $0x64] sm:$0x3] }
 0x145   : >> { %v1090_v41 = vpop.f32.mrf.mxu1  ;;  %v3698_v33 = vadd.f32 %v1183_v56, %v1107_v59  ;;  %v3744_v59 = vld [vmem:[%s3214_s18 + $0x78] sm:$0xff]  }
 0x146   : >> { %v922_v21 = vpop.f32.mrf.mxu3 }
 0x147   : >> { %v943_v15 = vadd.f32 %v922_v21, %v3585_v63 }
 0x148   : >> { %2846 = vmatmul.msk.bf16.vlgmr.msra.gmra.mxu1 %vm325_vm1, %v1737_v13  ;;  %2852 = vmatmul.msk.bf16.vlgmr.msra.gmra.mxu2 %vm325_vm1, %v3693_v10 }
 0x149   : >> { %v1006_v42 = vpop.f32.mrf.mxu0  ;;  %v1019_v28 = vadd.f32 %v998_v23, %v943_v15  ;;  %v1650_v23 = vrot.slane %v1144_v25, 3  ;;  %v3728_v25 = vpack.c.b16 %v3635_v52, %v2951_v17  ;;  %v1568_v15 = vrot.slane %v3485_v18, 2 }
 0x14b   : >> { %v1188_v45 = vpop.f32.mrf.mxu2  ;;  %2834 = vmatmul.msk.bf16.vlgmr.msra.gmra.mxu3 %vm325_vm1, %v1565_v16  ;;  %v1108_v43 = vadd.f32 %v1087_v6, %v1019_v28  ;;  %v1651_v12 = vor.u32 %v1650_v23, %v1649_v27  ;;  %v1567_v6 = vsel %vm699_vm5, %v1564_v55, %v1566_v53  ;;  %v1654_v60 = vshrl.u32 %v3728_v25, 16 }
 0x14c   : >> { %2841 = vmatmul.msk.bf16.gmra.mxu0 %vm325_vm1, %v1648_v62  ;;  %v1657_v52 = vshll.u32 %v3728_v25, 16  ;;  %v1560_v55 = vunpack.c.l.b16 %v2730_v61  ;;  %v1742_v27 = vrot.slane %v3728_v25, 3 }
 0x14d   : >> { %v1092_v50 = vpop.f32.mrf.mxu1  ;;  %v3709_v57 = vadd.f32 %v1185_v34, %v1108_v43  ;;  %v1656_v26 = vrot.slane %v1654_v60, 2 }
 0x14e   : >> { %v925_v63 = vpop.f32.mrf.mxu3  ;;  %v1659_v20 = vrot.slane %v1657_v52, 3  ;;  %v3754_v28 = vpack.c.b16 %v1560_v55, %v1560_v55  ;;  %v2887_v55 = vld [vmem:[%s4157_s1 + $0x30] sm:$0x3] }
 0x14f   : >> { %v944_v14 = vadd.f32 %v925_v63, %v3599_v29 }
 0x150   : >> { %v1660_v40 = vor.u32 %v1659_v20, %v1656_v26 }
 0x151   : >> { %v1008_v58 = vpop.f32.mrf.mxu0  ;;  %v1020_v46 = vadd.f32 %v1001_v8, %v944_v14  ;;  %v1652_v8 = vsel %vm854_vm6, %v1647_v48, %v1651_v12  ;;  %v1666_v14 = vshll.u32 %v3754_v28, 16 }
 0x153   : >> { %v1190_v2 = vpop.f32.mrf.mxu2  ;;  %v1109_v29 = vadd.f32 %v1090_v41, %v1020_v46 }
 0x155   : >> { %v1095_v19 = vpop.f32.mrf.mxu1  ;;  %v3723_v54 = vadd.f32 %v1188_v45, %v1109_v29  ;;  %v1569_v45 = vsel %vm699_vm5, %v1566_v53, %v1568_v15 }
 0x156   : >> { %v927_v4 = vpop.f32.mrf.mxu3 }
 0x157   : >> { %v945_v37 = vadd.f32 %v927_v4, %v3607_v36  ;;  %v1740_v36 = vrot.slane %v3485_v18, 3  ;;  %v1663_v18 = vshrl.u32 %v3754_v28, 16  ;;  %v3769_v4 = vld [vmem:[%s3214_s18 + $0x80] sm:$0xff]  }
 0x158   : >> { %2847 = vmatmul.msk.bf16.gmra.mxu1 %vm325_vm1, %v1739_v7  ;;  %2853 = vmatmul.msk.bf16.gmra.mxu2 %vm325_vm1, %v3719_v11 }
 0x159   : >> { %v1011_v38 = vpop.f32.mrf.mxu0  ;;  %v1021_v56 = vadd.f32 %v1003_v49, %v945_v37  ;;  %v1741_v13 = vsel %vm952_vm7, %v1738_v5, %v1740_v36 }
 0x15b   : >> { %v1193_v44 = vpop.f32.mrf.mxu2  ;;  %2835 = vmatmul.msk.bf16.gmra.mxu3 %vm325_vm1, %v1567_v6  ;;  %v1110_v9 = vadd.f32 %v1092_v50, %v1021_v56 }
 0x15c   : >> { %2842 = vmatmul.msk.bf16.gmra.mxu0 %vm325_vm1, %v1652_v8  ;;  %v1570_v8 = vrot.slane %v3728_v25, 2  ;;  %v2881_v25 = vld [vmem:[%s4157_s1 + $0x2e] sm:$0x3] }
 0x15d   : >> { %v1097_v39 = vpop.f32.mrf.mxu1  ;;  %v3738_v31 = vadd.f32 %v1190_v2, %v1110_v9  ;;  %v1668_v2 = vrot.slane %v1666_v14, 3 }
 0x15e   : >> { %v930_v32 = vpop.f32.mrf.mxu3  ;;  %v1571_v60 = vsel %vm699_vm5, %v1568_v15, %v1570_v8 }
 0x15f   : >> { %v946_v30 = vadd.f32 %v930_v32, %v3621_v3 }
 0x161   : >> { %v1013_v49 = vpop.f32.mrf.mxu0  ;;  %v1022_v34 = vadd.f32 %v1006_v42, %v946_v30  ;;  %v1661_v42 = vsel %vm854_vm6, %v1651_v12, %v1660_v40  ;;  %v1743_v12 = vsel %vm952_vm7, %v1740_v36, %v1742_v27  ;;  %v2293_v30 = vsel %vm341_vm0, %v2881_v25, 0 }
 0x162   : >> { %2302 = vmatpush.bf16.msra.mxu3 %v2293_v30  ;;  %v1899_v30 = vshrl.u32 %v3693_v10, 16 }
 0x163   : >> { %v1195_v48 = vpop.f32.mrf.mxu2  ;;  %v1111_v21 = vadd.f32 %v1095_v19, %v1022_v34 }
 0x165   : >> { %v1100_v41 = vpop.f32.mrf.mxu1  ;;  %v3748_v62 = vadd.f32 %v1193_v44, %v1111_v21  ;;  %v3805_v21 = vld [vmem:[%s3214_s18 + $0x6c] sm:$0xff]  }
 0x166   : >> { %v932_v3 = vpop.f32.mrf.mxu3 }
 0x167   : >> { %v947_v16 = vadd.f32 %v932_v3, %v3629_v35  ;;  %v2372_v3 = vsel %vm341_vm0, %v2887_v55, 0 }
 0x168   : >> { %2848 = vmatmul.msk.bf16.gmra.mxu1 %vm325_vm1, %v1741_v13  ;;  %2854 = vmatmul.msk.bf16.gmra.mxu2 %vm325_vm1, %v3744_v59 }
 0x169   : >> { %v1331_v50 = vpop.f32.mrf.mxu0  ;;  %v1023_v5 = vadd.f32 %v1008_v58, %v947_v16  ;;  %v1665_v58 = vrot.slane %v1663_v18, 2  ;;  %2381 = vmatpush.bf16.msra.mxu0 %v2372_v3 }
 0x16b   : >> { %v1198_v63 = vpop.f32.mrf.mxu2  ;;  %2836 = vmatmul.msk.bf16.gmra.mxu3 %vm325_vm1, %v1569_v45  ;;  %v1112_v35 = vadd.f32 %v1097_v39, %v1023_v5  ;;  %v1669_v37 = vor.u32 %v1668_v2, %v1665_v58  ;;  %v3816_v45 = vld [vmem:[%s3214_s18 + $0x74] sm:$0xff]  }
 0x16c   : >> { %2843 = vmatmul.msk.bf16.gmra.mxu0 %vm325_vm1, %v1661_v42  ;;  %v3812_v42 = vld [vmem:[%s3214_s18 + $0x88] sm:$0xff]   ;;  %v2162_v58 = vshrl.u32 %v3816_v45, 16 }
 0x16d   : >> { %v1102_v43 = vpop.f32.mrf.mxu1  ;;  %v3762_v23 = vadd.f32 %v1195_v48, %v1112_v35  ;;  %v2154_v35 = vshrl.u32 %v3805_v21, 16 }
 0x16e   : >> { %v935_v19 = vpop.f32.mrf.mxu3 }
 0x16f   : >> { %v948_v7 = vadd.f32 %v935_v19, %v3640_v51 }
 0x171   : >> { %v3765_v46 = vpop.f32.mrf.mxu0  ;;  %v1024_v29 = vadd.f32 %v1011_v38, %v948_v7  ;;  %v1670_v38 = vsel %vm854_vm6, %v1660_v40, %v1669_v37  ;;  %v2899_v40 = vld [vmem:[%s4157_s1 + $0x34] sm:$0x3]  ;;  %v2156_v37 = vrot.slane %v2154_v35, 1 }
 0x172   : >> { %v2544_v15 = vsel %vm341_vm0, %v2899_v40, 0 }
 0x173   : >> { %v1200_v53 = vpop.f32.mrf.mxu2  ;;  %v1113_v6 = vadd.f32 %v1100_v41, %v1024_v29  ;;  %2553 = vmatpush.bf16.msra.mxu2 %v2544_v15 }
 0x175   : >> { %v1447_v17 = vpop.f32.mrf.mxu1  ;;  %v3775_v51 = vadd.f32 %v1198_v63, %v1113_v6  ;;  %v1572_v63 = vrot.slane %v3754_v28, 2  ;;  %v2164_v6 = vrot.slane %v2162_v58, 1 }
 0x176   : >> { %v937_v39 = vpop.f32.mrf.mxu3 }
 0x177   : >> { %v949_v56 = vadd.f32 %v937_v39, %v3658_v22  ;;  %v1744_v22 = vrot.slane %v3754_v28, 3  ;;  %v2165_v28 = vshll.u32 %v3816_v45, 16 }
 0x178   : >> { %2849 = vmatmul.msk.bf16.gmra.mxu1 %vm325_vm1, %v1743_v12  ;;  %2855 = vmatmul.msk.bf16.gmra.mxu2 %vm325_vm1, %v3769_v4 }
 0x179   : >> { %v3778_v44 = vpop.f32.mrf.mxu0  ;;  %v1025_v9 = vadd.f32 %v1013_v49, %v949_v56  ;;  %v1745_v61 = vsel %vm952_vm7, %v1742_v27, %v1744_v22  ;;  %v2157_v27 = vshll.u32 %v3805_v21, 16  ;;  %v2167_v39 = vrot.slane %v2165_v28, 2 }
 0x17a   : >> { %v1901_v56 = vshll.u32 %v3693_v10, 16 }
 0x17b   : >> { %v1522_v36 = vpop.f32.mrf.mxu2  ;;  %2837 = vmatmul.msk.bf16.gmra.mxu3 %vm325_vm1, %v1571_v60  ;;  %v1114_v32 = vadd.f32 %v1102_v43, %v1025_v9  ;;  %v1998_v43 = vrot.slane %v3719_v11, 1  ;;  %v2078_v60 = vrot.slane %v3816_v45, 1 }
 0x17c   : >> { %2844 = vmatmul.msk.bf16.gmra.mxu0 %vm325_vm1, %v1670_v38  ;;  %v2077_v38 = vrot.slane %v3805_v21, 1 }
 0x17d   : >> { %v1449_v52 = vpop.f32.mrf.mxu1  ;;  %v3789_v26 = vadd.f32 %v1200_v53, %v1114_v32  ;;  %v2168_v32 = vor.u32 %v2167_v39, %v2164_v6  ;;  %v1912_v6 = vshll.u32 %v3744_v59, 16 }
 0x17e   : >> { %v1251_v49 = vpop.f32.mrf.mxu3 }
 0x17f   : >> { %v1276_v20 = vadd.f32 %v1251_v49, %v3676_v24  ;;  %v2893_v24 = vld [vmem:[%s4157_s1 + $0x32] sm:$0x3]  ;;  %v1903_v49 = vrot.slane %v1901_v56, 1 }
 0x180   : >> { %v2469_v16 = vsel %vm341_vm0, %v2893_v24, 0 }
 0x181   : >> { %v3792_v41 = vpop.f32.mrf.mxu0  ;;  %v1356_v34 = vadd.f32 %v1331_v50, %v1276_v20  ;;  %v1997_v50 = vrot.slane %v3693_v10, 1  ;;  %2478 = vmatpush.bf16.msra.mxu1 %v2469_v16  ;;  %v1904_v15 = vor.u32 %v1903_v49, %v1899_v30 }
 0x183   : >> { %v1524_v48 = vpop.f32.mrf.mxu2  ;;  %v1472_v5 = vadd.f32 %v1447_v17, %v1356_v34  ;;  %v1999_v2 = vsel %vm428_vm2, %v1997_v50, %v1998_v43  ;;  %v1573_v17 = vsel %vm699_vm5, %v1570_v8, %v1572_v63  ;;  %v2079_v34 = vsel %vm428_vm2, %v2077_v38, %v2078_v60 }
 0x185   : >> { %v1452_v13 = vpop.f32.mrf.mxu1  ;;  %v3820_v18 = vadd.f32 %v1522_v36, %v1472_v5 }
 0x186   : >> { %v1253_v14 = vpop.f32.mrf.mxu3 }
 0x187   : >> { %v1277_v19 = vadd.f32 %v1253_v14, %v3684_v47  ;;  %v2159_v47 = vrot.slane %v2157_v27, 2 }
 0x188   : >> { %2850 = vmatmul.msk.bf16.gmra.mxu1 %vm325_vm1, %v1745_v61  ;;  %2856 = vmatmul.msk.bf16.gmra.mxu2 %vm325_vm1, %v3812_v42  ;;  %v1905_v61 = vshll.u32 %v3719_v11, 16 }
 0x189   : >> { %v3827_v7 = vpop.f32.mrf.mxu0  ;;  %v1357_v29 = vadd.f32 %v3765_v46, %v1277_v19  ;;  %v2160_v25 = vor.u32 %v2159_v47, %v2156_v37 }
 0x18a   : >> { %v1907_v10 = vrot.slane %v1905_v61, 1 }
 0x18b   : >> { %v1527_v53 = vpop.f32.mrf.mxu2  ;;  %2838 = vmatmul.msk.bf16.gmra.mxu3 %vm325_vm1, %v1573_v17  ;;  %v1473_v9 = vadd.f32 %v1449_v52, %v1357_v29  ;;  %v2169_v55 = vsel %vm585_vm4, %v2160_v25, %v2168_v32  ;;  %v1914_v25 = vrot.slane %v1912_v6, 1 }
 0x18c   : >> { %2864 = vmatmul.msk.bf16.vlgmr.msrb.gmra.mxu0 %vm325_vm1, %v1999_v2 }
 0x18d   : >> { %v1454_v12 = vpop.f32.mrf.mxu1  ;;  %v3839_v36 = vadd.f32 %v1524_v48, %v1473_v9  ;;  %v3849_v48 = vld [vmem:[%s3214_s18 + $0x7c] sm:$0xff]   ;;  %v3876_v9 = vld [vmem:[%s3214_s18 + $0x84] sm:$0xff]  }
 0x18e   : >> { %v1256_v8 = vpop.f32.mrf.mxu3  ;;  %v2171_v5 = vshrl.u32 %v3849_v48, 16  ;;  %v2174_v63 = vshll.u32 %v3849_v48, 16  ;;  %v2080_v2 = vrot.slane %v3849_v48, 1  ;;  %v2180_v49 = vshrl.u32 %v3876_v9, 16 }
 0x18f   : >> { %v1278_v46 = vadd.f32 %v1256_v8, %v3698_v33  ;;  %v2000_v33 = vrot.slane %v3744_v59, 1 }
 0x190   : >> { %v2173_v58 = vrot.slane %v2171_v5, 1  ;;  %v2176_v28 = vrot.slane %v2174_v63, 2  ;;  %v2081_v39 = vsel %vm428_vm2, %v2078_v60, %v2080_v2 }
 0x191   : >> { %v1343_v22 = vpop.f32.mrf.mxu0  ;;  %v1358_v40 = vadd.f32 %v3778_v44, %v1278_v46  ;;  %v2001_v14 = vsel %vm428_vm2, %v1998_v43, %v2000_v33 }
 0x193   : >> { %v1529_v52 = vpop.f32.mrf.mxu2  ;;  %v1474_v24 = vadd.f32 %v1452_v13, %v1358_v40  ;;  %v1908_v13 = vsel %vm285_vm3, %v1904_v15, %v1907_v10  ;;  %v2182_v15 = vrot.slane %v2180_v49, 1 }
 0x195   : >> { %v1457_v20 = vpop.f32.mrf.mxu1  ;;  %v3854_v3 = vadd.f32 %v1527_v53, %v1474_v24  ;;  %v2177_v53 = vor.u32 %v2176_v28, %v2173_v58 }
 0x196   : >> { %v1258_v16 = vpop.f32.mrf.mxu3 }
 0x197   : >> { %v1279_v44 = vadd.f32 %v1258_v16, %v3709_v57  ;;  %v2082_v16 = vrot.slane %v3876_v9, 1 }
 0x198   : >> { %2870 = vmatmul.msk.bf16.vlgmr.msrb.gmra.mxu1 %vm325_vm1, %v2079_v34  ;;  %2876 = vmatmul.msk.bf16.vlgmr.msrb.gmra.mxu2 %vm325_vm1, %v2169_v55  ;;  %v2183_v34 = vshll.u32 %v3876_v9, 16 }
 0x199   : >> { %v1346_v50 = vpop.f32.mrf.mxu0  ;;  %v1359_v27 = vadd.f32 %v3792_v41, %v1279_v44  ;;  %v1909_v41 = vshrl.u32 %v3719_v11, 16 }
 0x19b   : >> { %v1532_v19 = vpop.f32.mrf.mxu2  ;;  %2858 = vmatmul.msk.bf16.vlgmr.msrb.gmra.mxu3 %vm325_vm1, %v1908_v13  ;;  %v1475_v57 = vadd.f32 %v1454_v12, %v1359_v27  ;;  %v2178_v12 = vsel %vm585_vm4, %v2168_v32, %v2177_v53  ;;  %v1911_v46 = vor.u32 %v1909_v41, %v1907_v10  ;;  %v2185_v10 = vrot.slane %v2183_v34, 2 }
 0x19c   : >> { %2865 = vmatmul.msk.bf16.gmra.mxu0 %vm325_vm1, %v2001_v14  ;;  %v1919_v27 = vshll.u32 %v3769_v4, 16 }
 0x19d   : >> { %v1459_v35 = vpop.f32.mrf.mxu1  ;;  %v3866_v17 = vadd.f32 %v1529_v52, %v1475_v57  ;;  %v1915_v40 = vsel %vm285_vm3, %v1911_v46, %v1914_v25  ;;  %v2186_v63 = vor.u32 %v2185_v10, %v2182_v15  ;;  %v3903_v57 = vld [vmem:[%s3214_s18 + $0x8c] sm:$0xff]   ;;  %v1926_v10 = vshll.u32 %v3812_v42, 16 }
 0x19e   : >> { %v1261_v29 = vpop.f32.mrf.mxu3  ;;  %v2084_v34 = vrot.slane %v3903_v57, 1 }
 0x19f   : >> { %v1280_v43 = vadd.f32 %v1261_v29, %v3723_v54  ;;  %v2002_v54 = vrot.slane %v3769_v4, 1  ;;  %v2004_v29 = vrot.slane %v3812_v42, 1 }
 0x1a1   : >> { %v1348_v37 = vpop.f32.mrf.mxu0  ;;  %v1360_v56 = vadd.f32 %v3827_v7, %v1280_v43 }
 0x1a3   : >> { %v1534_v38 = vpop.f32.mrf.mxu2  ;;  %v1476_v8 = vadd.f32 %v1457_v20, %v1360_v56  ;;  %v2003_v20 = vsel %vm428_vm2, %v2000_v33, %v2002_v54 }
 0x1a5   : >> { %v1462_v47 = vpop.f32.mrf.mxu1  ;;  %v3883_v30 = vadd.f32 %v1532_v19, %v1476_v8  ;;  %v2083_v19 = vsel %vm428_vm2, %v2080_v2, %v2082_v16 }
 0x1a6   : >> { %v1263_v60 = vpop.f32.mrf.mxu3 }
 0x1a7   : >> { %v1281_v7 = vadd.f32 %v1263_v60, %v3738_v31 }
 0x1a8   : >> { %2871 = vmatmul.msk.bf16.gmra.mxu1 %vm325_vm1, %v2081_v39  ;;  %2877 = vmatmul.msk.bf16.gmra.mxu2 %vm325_vm1, %v2178_v12  ;;  %v1921_v39 = vrot.slane %v1919_v27, 1  ;;  %v2192_v12 = vshll.u32 %v3903_v57, 16 }
 0x1a9   : >> { %v1351_v32 = vpop.f32.mrf.mxu0  ;;  %v1361_v55 = vadd.f32 %v1343_v22, %v1281_v7  ;;  %v1916_v22 = vshrl.u32 %v3744_v59, 16 }
 0x1aa   : >> { %v2194_v49 = vrot.slane %v2192_v12, 2 }
 0x1ab   : >> { %v1537_v24 = vpop.f32.mrf.mxu2  ;;  %2859 = vmatmul.msk.bf16.gmra.mxu3 %vm325_vm1, %v1915_v40  ;;  %v1477_v31 = vadd.f32 %v1459_v35, %v1361_v55  ;;  %v2187_v35 = vsel %vm585_vm4, %v2177_v53, %v2186_v63  ;;  %v1918_v43 = vor.u32 %v1916_v22, %v1914_v25 }
 0x1ac   : >> { %2866 = vmatmul.msk.bf16.gmra.mxu0 %vm325_vm1, %v2003_v20 }
 0x1ad   : >> { %v1464_v52 = vpop.f32.mrf.mxu1  ;;  %v3894_v44 = vadd.f32 %v1534_v38, %v1477_v31  ;;  %v2189_v38 = vshrl.u32 %v3903_v57, 16  ;;  %v1922_v8 = vsel %vm285_vm3, %v1918_v43, %v1921_v39  ;;  %v2085_v31 = vsel %vm428_vm2, %v2082_v16, %v2084_v34 }
 0x1ae   : >> { %v1266_v5 = vpop.f32.mrf.mxu3 }
 0x1af   : >> { %v1282_v33 = vadd.f32 %v1266_v5, %v3748_v62  ;;  %v2191_v7 = vrot.slane %v2189_v38, 1  ;;  %v3928_v5 = vld [vmem:[%s3214_s18 + $0x90] sm:$0xff]  }
 0x1b1   : >> { %v1353_v14 = vpop.f32.mrf.mxu0  ;;  %v1362_v58 = vadd.f32 %v1346_v50, %v1282_v33  ;;  %v2195_v55 = vor.u32 %v2194_v49, %v2191_v7 }
 0x1b3   : >> { %v1539_v28 = vpop.f32.mrf.mxu2  ;;  %v1478_v62 = vadd.f32 %v1462_v47, %v1362_v58  ;;  %v2005_v47 = vsel %vm428_vm2, %v2002_v54, %v2004_v29  ;;  %v2975_v58 = vunpack.c.h.b16 %v3928_v5 }
 0x1b5   : >> { %v1467_v13 = vpop.f32.mrf.mxu1  ;;  %v3910_v56 = vadd.f32 %v1537_v24, %v1478_v62 }
 0x1b6   : >> { %v1268_v2 = vpop.f32.mrf.mxu3 }
 0x1b7   : >> { %v1283_v50 = vadd.f32 %v1268_v2, %v3762_v23 }
 0x1b8   : >> { %2872 = vmatmul.msk.bf16.gmra.mxu1 %vm325_vm1, %v2083_v19  ;;  %2878 = vmatmul.msk.bf16.gmra.mxu2 %vm325_vm1, %v2187_v35  ;;  %v2196_v19 = vsel %vm585_vm4, %v2186_v63, %v2195_v55  ;;  %v1928_v35 = vrot.slane %v1926_v10, 1  ;;  %v3941_v63 = vpack.c.b16 %v2975_v58, %v2975_v58 }
 0x1b9   : >> { %v1698_v53 = vpop.f32.mrf.mxu0  ;;  %v1363_v25 = vadd.f32 %v1348_v37, %v1283_v50  ;;  %v1923_v37 = vshrl.u32 %v3769_v4, 16 }
 0x1bb   : >> { %v1542_v60 = vpop.f32.mrf.mxu2  ;;  %2860 = vmatmul.msk.bf16.gmra.mxu3 %vm325_vm1, %v1922_v8  ;;  %v1479_v23 = vadd.f32 %v1464_v52, %v1363_v25 }
 0x1bc   : >> { %2867 = vmatmul.msk.bf16.gmra.mxu0 %vm325_vm1, %v2005_v47 }
 0x1bd   : >> { %v1469_v46 = vpop.f32.mrf.mxu1  ;;  %v3921_v20 = vadd.f32 %v1539_v28, %v1479_v23  ;;  %v1925_v28 = vor.u32 %v1923_v37, %v1921_v39  ;;  %v2198_v39 = vshll.u32 %v3941_v63, 16 }
 0x1be   : >> { %v1271_v40 = vpop.f32.mrf.mxu3 }
 0x1bf   : >> { %v1284_v54 = vadd.f32 %v1271_v40, %v3775_v51  ;;  %v1929_v2 = vsel %vm285_vm3, %v1925_v28, %v1928_v35  ;;  %v2200_v25 = vrot.slane %v2198_v39, 2 }
 0x1c1   : >> { %v1700_v24 = vpop.f32.mrf.mxu0  ;;  %v1364_v33 = vadd.f32 %v1351_v32, %v1284_v54  ;;  %v2201_v40 = vsel %vm585_vm4, %v2195_v55, %v2200_v25  ;;  %v2266_v25 = vrot.slane %v3805_v21, 2  ;;  %v2428_v21 = vrot.slane %v1919_v27, 3 }
 0x1c3   : >> { %v1544_v52 = vpop.f32.mrf.mxu2  ;;  %v1480_v51 = vadd.f32 %v1467_v13, %v1364_v33 }
 0x1c5   : >> { %v1773_v15 = vpop.f32.mrf.mxu1  ;;  %v3937_v62 = vadd.f32 %v1542_v60, %v1480_v51  ;;  %v2421_v51 = vrot.slane %v1905_v61, 3 }
 0x1c6   : >> { %v1273_v16 = vpop.f32.mrf.mxu3 }
 0x1c7   : >> { %v1285_v32 = vadd.f32 %v1273_v16, %v3789_v26 }
 0x1c8   : >> { %2873 = vmatmul.msk.bf16.gmra.mxu1 %vm325_vm1, %v2085_v31  ;;  %2879 = vmatmul.msk.bf16.gmra.mxu2 %vm325_vm1, %v2196_v19  ;;  %v2424_v19 = vrot.slane %v1912_v6, 3 }
 0x1c9   : >> { %v1703_v43 = vpop.f32.mrf.mxu0  ;;  %v1365_v13 = vadd.f32 %v1353_v14, %v1285_v32  ;;  %v1930_v14 = vshrl.u32 %v3812_v42, 16 }
 0x1cb   : >> { %v1862_v38 = vpop.f32.mrf.mxu2  ;;  %2861 = vmatmul.msk.bf16.gmra.mxu3 %vm325_vm1, %v1929_v2  ;;  %v1481_v12 = vadd.f32 %v1469_v46, %v1365_v13  ;;  %v2346_v46 = vrot.slane %v3744_v59, 2  ;;  %v2518_v13 = vrot.slane %v3744_v59, 3 }
 0x1cc   : >> { %2868 = vmatmul.msk.bf16.gmra.mxu0 %vm325_vm1, %v2004_v29  ;;  %v2345_v29 = vrot.slane %v3719_v11, 2 }
 0x1cd   : >> { %v1775_v50 = vpop.f32.mrf.mxu1  ;;  %v3947_v47 = vadd.f32 %v1544_v52, %v1481_v12 }
 0x1ce   : >> { %v1601_v8 = vpop.f32.mrf.mxu3  ;;  %v2347_v55 = vsel %vm699_vm5, %v2345_v29, %v2346_v46 }
 0x1cf   : >> { %v1626_v26 = vadd.f32 %v1601_v8, %v3820_v18 }
 0x1d1   : >> { %v1705_v60 = vpop.f32.mrf.mxu0  ;;  %v1723_v49 = vadd.f32 %v1698_v53, %v1626_v26  ;;  %v1932_v53 = vor.u32 %v1930_v14, %v1928_v35 }
 0x1d3   : >> { %v1864_v23 = vpop.f32.mrf.mxu2  ;;  %v1798_v54 = vadd.f32 %v1773_v15, %v1723_v49  ;;  %v2423_v15 = vrot.slane %v1916_v22, 2  ;;  %v2517_v22 = vrot.slane %v3719_v11, 3 }
 0x1d5   : >> { %v1778_v7 = vpop.f32.mrf.mxu1  ;;  %v3955_v31 = vadd.f32 %v1862_v38, %v1798_v54  ;;  %v2425_v32 = vor.u32 %v2424_v19, %v2423_v15  ;;  %v2519_v8 = vsel %vm952_vm7, %v2517_v22, %v2518_v13 }
 0x1d6   : >> { %v1603_v33 = vpop.f32.mrf.mxu3 }
 0x1d7   : >> { %v1627_v18 = vadd.f32 %v1603_v33, %v3839_v36 }
 0x1d8   : >> { %2874 = vmatmul.msk.bf16.gmra.mxu1 %vm325_vm1, %v2084_v34  ;;  %2880 = vmatmul.msk.bf16.gmra.mxu2 %vm325_vm1, %v2201_v40  ;;  %v2420_v34 = vrot.slane %v1909_v41, 2 }
 0x1d9   : >> { %v1708_v52 = vpop.f32.mrf.mxu0  ;;  %v1724_v36 = vadd.f32 %v1700_v24, %v1627_v18 }
 0x1da   : >> { %v2422_v16 = vor.u32 %v2421_v51, %v2420_v34 }
 0x1db   : >> { %v1867_v28 = vpop.f32.mrf.mxu2  ;;  %2862 = vmatmul.msk.bf16.gmra.mxu3 %vm325_vm1, %v1932_v53  ;;  %v1799_v35 = vadd.f32 %v1775_v50, %v1724_v36  ;;  %v2348_v50 = vrot.slane %v3769_v4, 2  ;;  %v2269_v36 = vrot.slane %v3849_v48, 2 }
 0x1dc   : >> { %2888 = vmatmul.msk.bf16.vlgmr.msra.gmra.mxu0 %vm325_vm1, %v2347_v55  ;;  %v2426_v24 = vsel %vm854_vm6, %v2422_v16, %v2425_v32  ;;  %v2520_v55 = vrot.slane %v3769_v4, 3 }
 0x1dd   : >> { %v1780_v58 = vpop.f32.mrf.mxu1  ;;  %v3972_v41 = vadd.f32 %v1864_v23, %v1799_v35  ;;  %v2349_v23 = vsel %vm699_vm5, %v2346_v46, %v2348_v50 }
 0x1de   : >> { %v1606_v2 = vpop.f32.mrf.mxu3  ;;  %v2521_v15 = vsel %vm952_vm7, %v2518_v13, %v2520_v55 }
 0x1df   : >> { %v1628_v6 = vadd.f32 %v1606_v2, %v3854_v3  ;;  %v2267_v3 = vrot.slane %v3816_v45, 2  ;;  %v2431_v2 = vrot.slane %v1930_v14, 2 }
 0x1e1   : >> { %v1710_v38 = vpop.f32.mrf.mxu0  ;;  %v1725_v39 = vadd.f32 %v1703_v43, %v1628_v6  ;;  %v2268_v40 = vsel %vm699_vm5, %v2266_v25, %v2267_v3  ;;  %v2270_v16 = vsel %vm699_vm5, %v2267_v3, %v2269_v36  ;;  %v2432_v6 = vrot.slane %v1926_v10, 3 }
 0x1e2   : >> { %v2352_v25 = vrot.slane %v3928_v5, 2 }
 0x1e3   : >> { %v1869_v12 = vpop.f32.mrf.mxu2  ;;  %v1800_v26 = vadd.f32 %v1778_v7, %v1725_v39  ;;  %v2427_v7 = vrot.slane %v1923_v37, 2 }
 0x1e5   : >> { %v1783_v61 = vpop.f32.mrf.mxu1  ;;  %v3983_v11 = vadd.f32 %v1867_v28, %v1800_v26 }
 0x1e6   : >> { %v1608_v59 = vpop.f32.mrf.mxu3 }
 0x1e7   : >> { %v1629_v49 = vadd.f32 %v1608_v59, %v3866_v17  ;;  %v2429_v17 = vor.u32 %v2428_v21, %v2427_v7  ;;  %v2271_v59 = vrot.slane %v3876_v9, 2 }
 0x1e8   : >> { %2894 = vmatmul.msk.bf16.vlgmr.msra.gmra.mxu1 %vm325_vm1, %v2426_v24  ;;  %2900 = vmatmul.msk.bf16.vlgmr.msra.gmra.mxu2 %vm325_vm1, %v2519_v8 }
 0x1e9   : >> { %v1713_v43 = vpop.f32.mrf.mxu0  ;;  %v1726_v45 = vadd.f32 %v1705_v60, %v1629_v49  ;;  %v2430_v19 = vsel %vm854_vm6, %v2425_v32, %v2429_v17  ;;  %v2272_v7 = vsel %vm699_vm5, %v2269_v36, %v2271_v59 }
 0x1eb   : >> { %v1872_v54 = vpop.f32.mrf.mxu2  ;;  %2882 = vmatmul.msk.bf16.vlgmr.msra.gmra.mxu3 %vm325_vm1, %v2268_v40  ;;  %v1801_v33 = vadd.f32 %v1780_v58, %v1726_v45  ;;  %v2350_v58 = vrot.slane %v3812_v42, 2 }
 0x1ec   : >> { %2889 = vmatmul.msk.bf16.gmra.mxu0 %vm325_vm1, %v2349_v23 }
 0x1ed   : >> { %v1785_v29 = vpop.f32.mrf.mxu1  ;;  %v3995_v18 = vadd.f32 %v1869_v12, %v1801_v33  ;;  %v2522_v12 = vrot.slane %v3812_v42, 3  ;;  %v2439_v42 = vshll.u32 %v3928_v5, 16 }
 0x1ee   : >> { %v1611_v46 = vpop.f32.mrf.mxu3 }
 0x1ef   : >> { %v1630_v53 = vadd.f32 %v1611_v46, %v3883_v30  ;;  %v2523_v26 = vsel %vm952_vm7, %v2520_v55, %v2522_v12 }
 0x1f1   : >> { %v1715_v34 = vpop.f32.mrf.mxu0  ;;  %v1727_v27 = vadd.f32 %v1708_v52, %v1630_v53  ;;  %v2351_v52 = vsel %vm699_vm5, %v2348_v50, %v2350_v58 }
 0x1f3   : >> { %v1874_v60 = vpop.f32.mrf.mxu2  ;;  %v1802_v51 = vadd.f32 %v1783_v61, %v1727_v27  ;;  %v2524_v27 = vrot.slane %v3928_v5, 3 }
 0x1f5   : >> { %v1788_v37 = vpop.f32.mrf.mxu1  ;;  %v4004_v28 = vadd.f32 %v1872_v54, %v1802_v51  ;;  %v2441_v54 = vrot.slane %v2439_v42, 3 }
 0x1f6   : >> { %v1613_v30 = vpop.f32.mrf.mxu3 }
 0x1f7   : >> { %v1631_v4 = vadd.f32 %v1613_v30, %v3894_v44  ;;  %v2433_v44 = vor.u32 %v2432_v6, %v2431_v2  ;;  %v2525_v30 = vsel %vm952_vm7, %v2522_v12, %v2524_v27 }
 0x1f8   : >> { %2895 = vmatmul.msk.bf16.gmra.mxu1 %vm325_vm1, %v2430_v19  ;;  %2901 = vmatmul.msk.bf16.gmra.mxu2 %vm325_vm1, %v2521_v15 }
 0x1f9   : >> { %v1718_v35 = vpop.f32.mrf.mxu0  ;;  %v1728_v48 = vadd.f32 %v1710_v38, %v1631_v4  ;;  %v2434_v50 = vsel %vm854_vm6, %v2429_v17, %v2433_v44  ;;  %v2743_v17 = vld [vmem:[%s3214_s18 + $0x98] sm:$0x3]  ;;  %s2626_s18 = smul.u32 80, %s3130_s29  ;;  %s206_s29 = sadd.s32 1, %s3130_s29  }
 0x1fa   : >> { %v2342_v55 = vunpack.c.l.b16 %v2743_v17  ;;  %p203_p4 = scmp.ge.s32.totalorder %s206_s29, 8  }
 0x1fb   : >> { %v1877_v22 = vpop.f32.mrf.mxu2  ;;  %2883 = vmatmul.msk.bf16.gmra.mxu3 %vm325_vm1, %v2270_v16  ;;  %v1803_v13 = vadd.f32 %v1785_v29, %v1728_v48  ;;  %v2353_v29 = vsel %vm699_vm5, %v2350_v58, %v2352_v25  ;;  %v2273_v16 = vrot.slane %v3903_v57, 2  ;;  %s4103_s19 = scalar_lea.vmem %s3183_s28, %s2626_s18 }
 0x1fc   : >> { %2890 = vmatmul.msk.bf16.gmra.mxu0 %vm325_vm1, %v2351_v52  ;;  %v2344_v58 = vpack.c.b16 %v2342_v55, %v2342_v55 }
 0x1fd   : >> { %v1790_v32 = vpop.f32.mrf.mxu1  ;;  %v4016_v61 = vadd.f32 %v1874_v60, %v1803_v13 }
 0x1fe   : >> { %v1616_v24 = vpop.f32.mrf.mxu3  ;;  %v2354_v4 = vrot.slane %v2344_v58, 2  ;;  %v2448_v2 = vshll.u32 %v2344_v58, 16 }
 0x1ff   : >> { %v1632_v39 = vadd.f32 %v1616_v24, %v3910_v56  ;;  %v2436_v56 = vshrl.u32 %v3928_v5, 16 }
 0x200   : >> { %v2450_v24 = vrot.slane %v2448_v2, 3 }
 0x201   : >> { %v1720_v8 = vpop.f32.mrf.mxu0  ;;  %v1729_v10 = vadd.f32 %v1713_v43, %v1632_v39  ;;  %v2438_v45 = vrot.slane %v2436_v56, 2 }
 0x203   : >> { %v1879_v38 = vpop.f32.mrf.mxu2  ;;  %v1804_v3 = vadd.f32 %v1788_v37, %v1729_v10  ;;  %v2442_v53 = vor.u32 %v2441_v54, %v2438_v45 }
 0x205   : >> { %v1793_v14 = vpop.f32.mrf.mxu1  ;;  %v4027_v49 = vadd.f32 %v1877_v22, %v1804_v3  ;;  %v2274_v22 = vsel %vm699_vm5, %v2271_v59, %v2273_v16 }
 0x206   : >> { %v1618_v23 = vpop.f32.mrf.mxu3 }
 0x207   : >> { %v1633_v43 = vadd.f32 %v1618_v23, %v3921_v20  ;;  %v2275_v23 = vrot.slane %v3941_v63, 2 }
 0x208   : >> { %2896 = vmatmul.msk.bf16.gmra.mxu1 %vm325_vm1, %v2434_v50  ;;  %2902 = vmatmul.msk.bf16.gmra.mxu2 %vm325_vm1, %v2523_v26 }
 0x209   : >> { %v2033_v40 = vpop.f32.mrf.mxu0  ;;  %v1730_v9 = vadd.f32 %v1715_v34, %v1633_v43  ;;  %v2443_v34 = vsel %vm854_vm6, %v2433_v44, %v2442_v53 }
 0x20b   : >> { %v1882_v33 = vpop.f32.mrf.mxu2  ;;  %2884 = vmatmul.msk.bf16.gmra.mxu3 %vm325_vm1, %v2272_v7  ;;  %v1805_v46 = vadd.f32 %v1790_v32, %v1730_v9  ;;  %v2445_v32 = vshrl.u32 %v2344_v58, 16 }
 0x20c   : >> { %2891 = vmatmul.msk.bf16.gmra.mxu0 %vm325_vm1, %v2353_v29 }
 0x20d   : >> { %v1795_v21 = vpop.f32.mrf.mxu1  ;;  %v4036_v37 = vadd.f32 %v1879_v38, %v1805_v46  ;;  %v2447_v44 = vrot.slane %v2445_v32, 2  ;;  %v2526_v38 = vrot.slane %v2344_v58, 3 }
 0x20e   : >> { %v1621_v20 = vpop.f32.mrf.mxu3 }
 0x20f   : >> { %v1634_v19 = vadd.f32 %v1621_v20, %v3937_v62 }
 0x211   : >> { %v2035_v60 = vpop.f32.mrf.mxu0  ;;  %v1731_v51 = vadd.f32 %v1718_v35, %v1634_v19  ;;  %v2355_v35 = vsel %vm699_vm5, %v2352_v25, %v2354_v4 }
 0x213   : >> { %v1884_v36 = vpop.f32.mrf.mxu2  ;;  %v1806_v52 = vadd.f32 %v1793_v14, %v1731_v51  ;;  %v2451_v14 = vor.u32 %v2450_v24, %v2447_v44 }
 0x215   : >> { %v2113_v15 = vpop.f32.mrf.mxu1  ;;  %v4044_v62 = vadd.f32 %v1882_v33, %v1806_v52  ;;  %v2452_v3 = vsel %vm854_vm6, %v2442_v53, %v2451_v14 }
 0x216   : >> { %v1623_v5 = vpop.f32.mrf.mxu3 }
 0x217   : >> { %v1635_v6 = vadd.f32 %v1623_v5, %v3947_v47 }
 0x218   : >> { %2897 = vmatmul.msk.bf16.gmra.mxu1 %vm325_vm1, %v2443_v34  ;;  %2903 = vmatmul.msk.bf16.gmra.mxu2 %vm325_vm1, %v2525_v30 }
 0x219   : >> { %v2038_v48 = vpop.f32.mrf.mxu0  ;;  %v1732_v39 = vadd.f32 %v1720_v8, %v1635_v6  ;;  %v2527_v8 = vsel %vm952_vm7, %v2524_v27, %v2526_v38 }
 0x21b   : >> { %v2229_v12 = vpop.f32.mrf.mxu2  ;;  %2885 = vmatmul.msk.bf16.gmra.mxu3 %vm325_vm1, %v2274_v22  ;;  %v1807_v57 = vadd.f32 %v1795_v21, %v1732_v39  ;;  %v2276_v21 = vsel %vm699_vm5, %v2273_v16, %v2275_v23 }
 0x21c   : >> { %2892 = vmatmul.msk.bf16.gmra.mxu0 %vm325_vm1, %v2355_v35 }
 0x21d   : >> { %v2115_v13 = vpop.f32.mrf.mxu1  ;;  %v4052_v50 = vadd.f32 %v1884_v36, %v1807_v57 }
 0x21e   : >> { %v1960_v10 = vpop.f32.mrf.mxu3 }
 0x21f   : >> { %v1985_v47 = vadd.f32 %v1960_v10, %v3955_v31 }
 0x221   : >> { %v2040_v26 = vpop.f32.mrf.mxu0  ;;  %v2058_v59 = vadd.f32 %v2033_v40, %v1985_v47 }
 0x223   : >> { %v2231_v56 = vpop.f32.mrf.mxu2  ;;  %v2138_v42 = vadd.f32 %v2113_v15, %v2058_v59 }
 0x225   : >> { %v2118_v25 = vpop.f32.mrf.mxu1  ;;  %v4059_v43 = vadd.f32 %v2229_v12, %v2138_v42 }
 0x226   : >> { %v1962_v29 = vpop.f32.mrf.mxu3 }
 0x227   : >> { %v1986_v31 = vadd.f32 %v1962_v29, %v3972_v41 }
 0x228   : >> { %2898 = vmatmul.msk.bf16.gmra.mxu1 %vm325_vm1, %v2452_v3  ;;  %2904 = vmatmul.msk.bf16.gmra.mxu2 %vm325_vm1, %v2527_v8 }
 0x229   : >> { %v2043_v7 = vpop.f32.mrf.mxu0  ;;  %v2059_v40 = vadd.f32 %v2035_v60, %v1986_v31 }
 0x22b   : >> { %v2234_v54 = vpop.f32.mrf.mxu2  ;;  %2886 = vmatmul.msk.bf16.gmra.mxu3 %vm325_vm1, %v2276_v21  ;;  %v2139_v9 = vadd.f32 %v2115_v13, %v2059_v40 }
 0x22d   : >> { %v2120_v45 = vpop.f32.mrf.mxu1  ;;  %v4065_v33 = vadd.f32 %v2231_v56, %v2139_v9 }
 0x22e   : >> { %v1965_v17 = vpop.f32.mrf.mxu3 }
 0x22f   : >> { %v1987_v63 = vadd.f32 %v1965_v17, %v3983_v11 }
 0x231   : >> { %v2045_v46 = vpop.f32.mrf.mxu0  ;;  %v2060_v55 = vadd.f32 %v2038_v48, %v1987_v63 }
 0x233   : >> { %v2236_v20 = vpop.f32.mrf.mxu2  ;;  %v2140_v19 = vadd.f32 %v2118_v25, %v2060_v55 }
 0x235   : >> { %v2123_v53 = vpop.f32.mrf.mxu1  ;;  %v4068_v41 = vadd.f32 %v2234_v54, %v2140_v19 }
 0x236   : >> { %v1967_v27 = vpop.f32.mrf.mxu3 }
 0x237   : >> { %v1988_v15 = vadd.f32 %v1967_v27, %v3995_v18 }
 0x239   : >> { %v2048_v60 = vpop.f32.mrf.mxu0  ;;  %v2061_v58 = vadd.f32 %v2040_v26, %v1988_v15 }
 0x23b   : >> { %v2239_v51 = vpop.f32.mrf.mxu2  ;;  %v2141_v36 = vadd.f32 %v2120_v45, %v2061_v58 }
 0x23d   : >> { %v2125_v34 = vpop.f32.mrf.mxu1  ;;  %v4071_v30 = vadd.f32 %v2236_v20, %v2141_v36 }
 0x23e   : >> { %v1970_v4 = vpop.f32.mrf.mxu3 }
 0x23f   : >> { %v1989_v11 = vadd.f32 %v1970_v4, %v4004_v28 }
 0x241   : >> { %v2050_v16 = vpop.f32.mrf.mxu0  ;;  %v2062_v32 = vadd.f32 %v2043_v7, %v1989_v11 }
 0x243   : >> { %v2241_v2 = vpop.f32.mrf.mxu2  ;;  %v2142_v5 = vadd.f32 %v2123_v53, %v2062_v32 }
 0x245   : >> { %v2128_v52 = vpop.f32.mrf.mxu1  ;;  %v4074_v6 = vadd.f32 %v2239_v51, %v2142_v5  ;;  %v4096_v51 = vperm.slane %v3173_v1, 0 }
 0x246   : >> { %v1972_v48 = vpop.f32.mrf.mxu3 }
 0x247   : >> { %v1990_v18 = vadd.f32 %v1972_v48, %v4016_v61 }
 0x249   : >> { %v2063_v22 = vadd.f32 %v2045_v46, %v1990_v18  ;;  %v2053_v44 = vpop.f32.mrf.mxu0 }
 0x24b   : >> { %v2244_v13 = vpop.f32.mrf.mxu2  ;;  %v2143_v24 = vadd.f32 %v2125_v34, %v2063_v22  ;;  %v4093_v34 = vperm.slane %v3168_v0, 0 }
 0x24d   : >> { %v2130_v35 = vpop.f32.mrf.mxu1  ;;  %v4077_v39 = vadd.f32 %v2241_v2, %v2143_v24 }
 0x24e   : >> { %v1975_v12 = vpop.f32.mrf.mxu3 }
 0x24f   : >> { %v1991_v28 = vadd.f32 %v1975_v12, %v4027_v49 }
 0x251   : >> { %v2064_v14 = vadd.f32 %v2048_v60, %v1991_v28  ;;  %v2055_v38 = vpop.f32.mrf.mxu0 }
 0x253   : >> { %v2246_v10 = vpop.f32.mrf.mxu2  ;;  %v2144_v47 = vadd.f32 %v2128_v52, %v2064_v14 }
 0x255   : >> { %v2133_v57 = vpop.f32.mrf.mxu1  ;;  %v4080_v26 = vadd.f32 %v2244_v13, %v2144_v47 }
 0x256   : >> { %v1977_v25 = vpop.f32.mrf.mxu3 }
 0x257   : >> { %v1992_v61 = vadd.f32 %v1977_v25, %v4036_v37 }
 0x259   : >> { %v2065_v59 = vadd.f32 %v2050_v16, %v1992_v61  ;;  %v2383_v29 = vpop.f32.mrf.mxu0 }
 0x25b   : >> { %v2249_v56 = vpop.f32.mrf.mxu2  ;;  %v2145_v8 = vadd.f32 %v2130_v35, %v2065_v59 }
 0x25d   : >> { %v2135_v3 = vpop.f32.mrf.mxu1  ;;  %v4083_v42 = vadd.f32 %v2246_v10, %v2145_v8 }
 0x25e   : >> { %v1980_v23 = vpop.f32.mrf.mxu3 }
 0x25f   : >> { %v1993_v49 = vadd.f32 %v1980_v23, %v4044_v62 }
 0x261   : >> { %v2066_v7 = vadd.f32 %v2053_v44, %v1993_v49  ;;  %v2385_v37 = vpop.f32.mrf.mxu0 }
 0x263   : >> { %v2251_v21 = vpop.f32.mrf.mxu2  ;;  %v2146_v45 = vadd.f32 %v2133_v57, %v2066_v7 }
 0x265   : >> { %v2480_v31 = vpop.f32.mrf.mxu1  ;;  %v4086_v40 = vadd.f32 %v2249_v56, %v2146_v45 }
 0x266   : >> { %v1982_v54 = vpop.f32.mrf.mxu3 }
 0x267   : >> { %v1994_v9 = vadd.f32 %v1982_v54, %v4052_v50 }
 0x269   : >> { %v2067_v17 = vadd.f32 %v2055_v38, %v1994_v9  ;;  %v2388_v15 = vpop.f32.mrf.mxu0 }
 0x26b   : >> { %v2555_v63 = vpop.f32.mrf.mxu2  ;;  %v2147_v53 = vadd.f32 %v2135_v3, %v2067_v17 }
 0x26d   : >> { %v2482_v46 = vpop.f32.mrf.mxu1  ;;  %v4089_v55 = vadd.f32 %v2251_v21, %v2147_v53 }
 0x26e   : >> { %v2304_v20 = vpop.f32.mrf.mxu3 }
 0x26f   : >> { %v2329_v62 = vadd.f32 %v2304_v20, %v4059_v43 }
 0x271   : >> { %v2408_v19 = vadd.f32 %v2383_v29, %v2329_v62  ;;  %v2390_v5 = vpop.f32.mrf.mxu0 }
 0x273   : >> { %v2557_v27 = vpop.f32.mrf.mxu2  ;;  %v2505_v60 = vadd.f32 %v2480_v31, %v2408_v19 }
 0x275   : >> { %v2485_v50 = vpop.f32.mrf.mxu1  ;;  %v2580_v58 = vadd.f32 %v2555_v63, %v2505_v60 }
 0x276   : >> { %v2306_v36 = vpop.f32.mrf.mxu3 }
 0x277   : >> { %v2593_v4 = vmul.f32 %v4093_v34, %v2580_v58  ;;  %v2330_v11 = vadd.f32 %v2306_v36, %v4065_v33 }
 0x279   : >> { %v2606_v43 = vadd.f32 %v4096_v51, %v2593_v4  ;;  %v2409_v52 = vadd.f32 %v2385_v37, %v2330_v11  ;;  %v2393_v10 = vpop.f32.mrf.mxu0 }
 0x27b   : >> { %v2560_v16 = vpop.f32.mrf.mxu2  ;;  %v2616_v32 = vmax.f32 %v2606_v43, 0.0  ;;  %v2506_v2 = vadd.f32 %v2482_v46, %v2409_v52 }
 0x27d   : >> { %2629 = vst.msk [vmem:[%s4103_s19] sm:$0xff] %vm2628_vm8, %v2616_v32  ;;  %v2581_v48 = vadd.f32 %v2557_v27, %v2506_v2  ;;  %v2487_v35 = vpop.f32.mrf.mxu1 }
 0x27e   : >> { %v2309_v18 = vpop.f32.mrf.mxu3 }
 0x27f   : >> { %v2594_v22 = vmul.f32 %v4093_v34, %v2581_v48  ;;  %v2331_v33 = vadd.f32 %v2309_v18, %v4068_v41 }
 0x281   : >> { %v2607_v13 = vadd.f32 %v4096_v51, %v2594_v22  ;;  %v2410_v44 = vadd.f32 %v2388_v15, %v2331_v33  ;;  %v2395_v31 = vpop.f32.mrf.mxu0 }
 0x283   : >> { %v2562_v24 = vpop.f32.mrf.mxu2  ;;  %v2617_v12 = vmax.f32 %v2607_v13, 0.0  ;;  %v2507_v28 = vadd.f32 %v2485_v50, %v2410_v44 }
 0x285   : >> { %2630 = vst.msk [vmem:[%s4103_s19 + $0x8] sm:$0xff] %vm2628_vm8, %v2617_v12  ;;  %v2582_v57 = vadd.f32 %v2560_v16, %v2507_v28  ;;  %v2490_v25 = vpop.f32.mrf.mxu1 }
 0x286   : >> { %v2311_v14 = vpop.f32.mrf.mxu3 }
 0x287   : >> { %v2595_v47 = vmul.f32 %v4093_v34, %v2582_v57  ;;  %v2332_v38 = vadd.f32 %v2311_v14, %v4071_v30 }
 0x289   : >> { %v2608_v61 = vadd.f32 %v4096_v51, %v2595_v47  ;;  %v2411_v41 = vadd.f32 %v2390_v5, %v2332_v38  ;;  %v2398_v20 = vpop.f32.mrf.mxu0 }
 0x28b   : >> { %v2565_v3 = vpop.f32.mrf.mxu2  ;;  %v2618_v59 = vmax.f32 %v2608_v61, 0.0  ;;  %v2508_v56 = vadd.f32 %v2487_v35, %v2411_v41 }
 0x28d   : >> { %2631 = vst.msk [vmem:[%s4103_s19 + $0x10] sm:$0xff] %vm2628_vm8, %v2618_v59  ;;  %v2583_v8 = vadd.f32 %v2562_v24, %v2508_v56  ;;  %v2492_v21 = vpop.f32.mrf.mxu1 }
 0x28e   : >> { %v2314_v23 = vpop.f32.mrf.mxu3 }
 0x28f   : >> { %v2596_v29 = vmul.f32 %v4093_v34, %v2583_v8  ;;  %v2333_v49 = vadd.f32 %v2314_v23, %v4074_v6 }
 0x291   : >> { %v2609_v7 = vadd.f32 %v4096_v51, %v2596_v29  ;;  %v2412_v30 = vadd.f32 %v2393_v10, %v2333_v49  ;;  %v2400_v52 = vpop.f32.mrf.mxu0 }
 0x293   : >> { %v2619_v45 = vmax.f32 %v2609_v7, 0.0  ;;  %v2509_v54 = vadd.f32 %v2490_v25, %v2412_v30  ;;  %v2567_v9 = vpop.f32.mrf.mxu2 }
 0x295   : >> { %2632 = vst.msk [vmem:[%s4103_s19 + $0x18] sm:$0xff] %vm2628_vm8, %v2619_v45  ;;  %v2584_v37 = vadd.f32 %v2565_v3, %v2509_v54  ;;  %v2495_v27 = vpop.f32.mrf.mxu1 }
 0x296   : >> { %v2316_v17 = vpop.f32.mrf.mxu3 }
 0x297   : >> { %v2597_v63 = vmul.f32 %v4093_v34, %v2584_v37  ;;  %v2334_v46 = vadd.f32 %v2316_v17, %v4077_v39 }
 0x299   : >> { %v2610_v53 = vadd.f32 %v4096_v51, %v2597_v63  ;;  %v2413_v6 = vadd.f32 %v2395_v31, %v2334_v46  ;;  %v2403_v44 = vpop.f32.mrf.mxu0 }
 0x29b   : >> { %v2620_v62 = vmax.f32 %v2610_v53, 0.0  ;;  %v2510_v19 = vadd.f32 %v2492_v21, %v2413_v6  ;;  %v2570_v60 = vpop.f32.mrf.mxu2 }
 0x29d   : >> { %2633 = vst.msk [vmem:[%s4103_s19 + $0x20] sm:$0xff] %vm2628_vm8, %v2620_v62  ;;  %v2585_v15 = vadd.f32 %v2567_v9, %v2510_v19  ;;  %v2497_v32 = vpop.f32.mrf.mxu1 }
 0x29e   : >> { %v2319_v50 = vpop.f32.mrf.mxu3 }
 0x29f   : >> { %v2598_v58 = vmul.f32 %v4093_v34, %v2585_v15  ;;  %v2335_v36 = vadd.f32 %v2319_v50, %v4080_v26 }
 0x2a1   : >> { %v2611_v4 = vadd.f32 %v4096_v51, %v2598_v58  ;;  %v2414_v39 = vadd.f32 %v2398_v20, %v2335_v36  ;;  %v2405_v59 = vpop.f32.mrf.mxu0 }
 0x2a3   : >> { %v2621_v11 = vmax.f32 %v2611_v4, 0.0  ;;  %v2511_v43 = vadd.f32 %v2495_v27, %v2414_v39  ;;  %v2572_v18 = vpop.f32.mrf.mxu2 }
 0x2a5   : >> { %2634 = vst.msk [vmem:[%s4103_s19 + $0x28] sm:$0xff] %vm2628_vm8, %v2621_v11  ;;  %v2586_v16 = vadd.f32 %v2570_v60, %v2511_v43  ;;  %v2500_v57 = vpop.f32.mrf.mxu1 }
 0x2a6   : >> { %v2321_v2 = vpop.f32.mrf.mxu3 }
 0x2a7   : >> { %v2599_v5 = vmul.f32 %v4093_v34, %v2586_v16  ;;  %v2336_v48 = vadd.f32 %v2321_v2, %v4083_v42 }
 0x2a9   : >> { %v2612_v35 = vadd.f32 %v4096_v51, %v2599_v5  ;;  %v2415_v26 = vadd.f32 %v2400_v52, %v2336_v48 }
 0x2ab   : >> { %v2622_v22 = vmax.f32 %v2612_v35, 0.0  ;;  %v2512_v33 = vadd.f32 %v2497_v32, %v2415_v26  ;;  %v2575_v10 = vpop.f32.mrf.mxu2 }
 0x2ad   : >> { %2635 = vst.msk [vmem:[%s4103_s19 + $0x30] sm:$0xff] %vm2628_vm8, %v2622_v22  ;;  %v2587_v13 = vadd.f32 %v2572_v18, %v2512_v33  ;;  %v2502_v8 = vpop.f32.mrf.mxu1 }
 0x2ae   : >> { %v2324_v24 = vpop.f32.mrf.mxu3 }
 0x2af   : >> { %v2600_v12 = vmul.f32 %v4093_v34, %v2587_v13  ;;  %v2337_v28 = vadd.f32 %v2324_v24, %v4086_v40 }
 0x2b1   : >> { %v2613_v14 = vadd.f32 %v4096_v51, %v2600_v12  ;;  %v2416_v42 = vadd.f32 %v2403_v44, %v2337_v28 }
 0x2b3   : >> { %v2623_v47 = vmax.f32 %v2613_v14, 0.0  ;;  %v2513_v38 = vadd.f32 %v2500_v57, %v2416_v42  ;;  %v2577_v49 = vpop.f32.mrf.mxu2 }
 0x2b5   : >> { %2636 = vst.msk [vmem:[%s4103_s19 + $0x38] sm:$0xff] %vm2628_vm8, %v2623_v47  ;;  %v2588_v25 = vadd.f32 %v2575_v10, %v2513_v38 }
 0x2b6   : >> { %v2326_v61 = vpop.f32.mrf.mxu3 }
 0x2b7   : >> { %v2601_v41 = vmul.f32 %v4093_v34, %v2588_v25  ;;  %v2338_v3 = vadd.f32 %v2326_v61, %v4089_v55 }
 0x2b9   : >> { %v2614_v40 = vadd.f32 %v4096_v51, %v2601_v41  ;;  %v2417_v56 = vadd.f32 %v2405_v59, %v2338_v3 }
 0x2bb   : >> { %v2624_v23 = vmax.f32 %v2614_v40, 0.0  ;;  %v2514_v29 = vadd.f32 %v2502_v8, %v2417_v56 }
 0x2bd   : >> { %2637 = vst.msk [vmem:[%s4103_s19 + $0x40] sm:$0xff] %vm2628_vm8, %v2624_v23  ;;  %v2589_v31 = vadd.f32 %v2577_v49, %v2514_v29 }
 0x2bf   : >> { %v2602_v7 = vmul.f32 %v4093_v34, %v2589_v31 }
 0x2c1   : >> { %v2615_v30 = vadd.f32 %v4096_v51, %v2602_v7  ;;  %205 = sbr.rel (!%p203_p4) target bundleno = 16 (0x10), region = 103 }
 0x2c3   : >> { %v2625_v21 = vmax.f32 %v2615_v30, 0.0 }
 0x2c5   : >> { %2639 = vst.msk [vmem:[%s4103_s19 + $0x48] sm:$0x3f] %vm2638_vm9, %v2625_v21 }
 0x2c6 PF: > { %s14_s15 = sadd.s32 1, %s3126_s15  }
 0x2c7   : > { %p11_p5 = scmp.ge.s32.totalorder %s14_s15, 4  }
 0x2c9   :  { %13 = sbr.rel (!%p11_p5) target bundleno = 1 (0x1), region = 114 }

// kernel: conv_bn_relu.2
= control target key start
LH: loop header
LB: loop body
LE: loop exit
PB: predicated region body
PF: predicated region fallthrough
CT: control target
= control target key end

     0   :  { %s3603_s12 = smov 0   ;;  %s4822_s0 = inlined_call_operand.vmem [shape: bf16[2,10,100,4], index: 0, kind: input, shape index: {}]   ;;  %s4823_s1 = inlined_call_operand.vmem [shape: bf16[27,4,128], index: 1, kind: input, shape index: {}]   ;;  %s4824_s2 = inlined_call_operand.vmem [shape: f32[2,1,8], index: 2, kind: output, shape index: {0}]   ;;  %s4825_s3 = inlined_call_operand.vmem [shape: f32[2,1,8], index: 3, kind: output, shape index: {1}]  }
   0x1 LB: > { %s3117_s13 = sadd.s32 4294967295, %s3567_s12   ;;  %p3121_p0 = scmp.ge.s32.totalorder %s3567_s12, 1  ;;  %s3567_s12 = sphi %s3603_s12, %s14_s12  }
   0x2   : > { %p140_p1 = scmp.lt.s32.totalorder %s3567_s12, 3 }
   0x4   : > { %p141_p2 = pnand %p3121_p0, %p140_p1 }
   0x5   : > { %p165_p3 = scmp.lt.s32.totalorder (!%p141_p2), %s3117_s13, 1  ;;  %s3850_s24 = smov (!%p141_p2), 0  }
   0x6   : > { %144 = sbr.rel (%p141_p2) target bundleno = 799 (0x31f), region = 28 }
   0xb   : > { %v177_v0 = vlaneseq  ;;  %s4856_s13 = smov (!%p165_p3, %s3117_s13), 1  ;;  %v3581_v37 = vmov 0  }
   0xc   : > { %s3514_s14 = smul.u32 520, %s4856_s13  ;;  %s172_s17 = scalar_lea.vmem %s4824_s2, %s4856_s13 }
   0xd   : > { %v3613_v1 = vshrl.u32 %v177_v0, 7  ;;  %s175_s20 = scalar_lea.vmem %s4825_s3, %s4856_s13 }
   0xe   : > { %s3651_s23 = scalar_lea.vmem %s4822_s0, %s3514_s14 }
   0xf   : > { %v3621_v2 = vadd.s32 8, %v3613_v1  ;;  %v3624_v3 = vadd.s32 16, %v3613_v1  ;;  %v3627_v4 = vadd.s32 24, %v3613_v1  ;;  %v3630_v5 = vadd.s32 32, %v3613_v1 }
  0x10   : > { %v3637_v6 = vadd.s32 40, %v3613_v1  ;;  %v3640_v7 = vadd.s32 48, %v3613_v1  ;;  %v3643_v8 = vadd.s32 56, %v3613_v1  ;;  %v3646_v9 = vadd.s32 64, %v3613_v1 }
  0x11   : > { %v3654_v10 = vadd.s32 72, %v3613_v1  ;;  %v191_v11 = vand.u32 65535, %v3613_v1  ;;  %v192_v12 = vshrl.u32 %v3613_v1, 16  ;;  %v220_v13 = vand.u32 65535, %v3621_v2 }
  0x12   : > { %v221_v14 = vshrl.u32 %v3621_v2, 16  ;;  %v249_v15 = vand.u32 65535, %v3624_v3  ;;  %v250_v16 = vshrl.u32 %v3624_v3, 16  ;;  %v278_v17 = vand.u32 65535, %v3627_v4 }
  0x13   : > { %v194_v18 = vmul.u32 52429, %v191_v11  ;;  %v195_v19 = vmul.u32 52428, %v191_v11  ;;  %v196_v20 = vmul.u32 52429, %v192_v12  ;;  %v197_v21 = vmul.u32 52428, %v192_v12 }
  0x14   : > { %v223_v22 = vmul.u32 52429, %v220_v13  ;;  %v224_v23 = vmul.u32 52428, %v220_v13  ;;  %v225_v24 = vmul.u32 52429, %v221_v14  ;;  %v226_v25 = vmul.u32 52428, %v221_v14 }
  0x15   : > { %v198_v26 = vshll.u32 %v195_v19, 16  ;;  %v199_v27 = vshrl.u32 %v195_v19, 16  ;;  %v200_v28 = vshll.u32 %v196_v20, 16  ;;  %v201_v29 = vshrl.u32 %v196_v20, 16 }
  0x16   : > { %v227_v30 = vshll.u32 %v224_v23, 16  ;;  %v228_v31 = vshrl.u32 %v224_v23, 16  ;;  %v229_v32 = vshll.u32 %v225_v24, 16  ;;  %v230_v33 = vshrl.u32 %v225_v24, 16 }
  0x17   : > { %vm202_vm0 = vc.u32 %v194_v18, %v198_v26  ;;  %v204_v34 = vadd.s32 %v198_v26, %v194_v18  ;;  %v252_v35 = vmul.u32 52429, %v249_v15  ;;  %v253_v36 = vmul.u32 52428, %v249_v15 }
  0x18   : > { %v203_v38 = vsel %vm202_vm0, 1, %v3581_v37  ;;  %vm231_vm1 = vc.u32 %v223_v22, %v227_v30  ;;  %v233_v39 = vadd.s32 %v227_v30, %v223_v22  ;;  %v254_v40 = vmul.u32 52429, %v250_v16 }
  0x19   : > { %v205_v41 = vadd.s32 %v203_v38, %v197_v21  ;;  %vm206_vm2 = vc.u32 %v204_v34, %v200_v28  ;;  %v232_v42 = vsel %vm231_vm1, 1, %v3581_v37  ;;  %v255_v43 = vmul.u32 52428, %v250_v16 }
  0x1a   : > { %v207_v44 = vsel %vm206_vm2, 1, %v3581_v37  ;;  %v234_v45 = vadd.s32 %v232_v42, %v226_v25  ;;  %vm235_vm3 = vc.u32 %v233_v39, %v229_v32  ;;  %v256_v46 = vshll.u32 %v253_v36, 16 }
  0x1b   : > { %v209_v47 = vadd.s32 %v207_v44, %v205_v41  ;;  %v236_v48 = vsel %vm235_vm3, 1, %v3581_v37  ;;  %v257_v49 = vshrl.u32 %v253_v36, 16  ;;  %v258_v50 = vshll.u32 %v254_v40, 16 }
  0x1c   : > { %v238_v51 = vadd.s32 %v236_v48, %v234_v45  ;;  %v259_v52 = vshrl.u32 %v254_v40, 16  ;;  %vm260_vm4 = vc.u32 %v252_v35, %v256_v46  ;;  %v262_v53 = vadd.s32 %v256_v46, %v252_v35 }
  0x1d   : > { %v210_v54 = vadd.s32 %v209_v47, %v199_v27  ;;  %v261_v55 = vsel %vm260_vm4, 1, %v3581_v37  ;;  %v279_v56 = vshrl.u32 %v3627_v4, 16  ;;  %v281_v57 = vmul.u32 52429, %v278_v17 }
  0x1e   : > { %v239_v58 = vadd.s32 %v238_v51, %v228_v31  ;;  %v263_v59 = vadd.s32 %v261_v55, %v255_v43  ;;  %vm264_vm5 = vc.u32 %v262_v53, %v258_v50  ;;  %v282_v60 = vmul.u32 52428, %v278_v17 }
  0x1f   : > { %v211_v61 = vadd.s32 %v210_v54, %v201_v29  ;;  %v265_v62 = vsel %vm264_vm5, 1, %v3581_v37  ;;  %v283_v63 = vmul.u32 52429, %v279_v56  ;;  %v284_v0 = vmul.u32 52428, %v279_v56 }
  0x20   : > { %v240_v11 = vadd.s32 %v239_v58, %v230_v33  ;;  %v267_v12 = vadd.s32 %v265_v62, %v263_v59  ;;  %v285_v13 = vshll.u32 %v282_v60, 16  ;;  %v286_v14 = vshrl.u32 %v282_v60, 16 }
  0x21   : > { %v212_v15 = vshrl.u32 %v211_v61, 3  ;;  %v287_v16 = vshll.u32 %v283_v63, 16  ;;  %v288_v18 = vshrl.u32 %v283_v63, 16  ;;  %v307_v19 = vand.u32 65535, %v3630_v5 }
  0x22   : > { %v241_v20 = vshrl.u32 %v240_v11, 3  ;;  %v268_v21 = vadd.s32 %v267_v12, %v257_v49  ;;  %vm289_vm6 = vc.u32 %v281_v57, %v285_v13  ;;  %v291_v22 = vadd.s32 %v285_v13, %v281_v57 }
  0x23   : > { %v213_v23 = vmul.u32 10, %v212_v15  ;;  %v290_v17 = vsel %vm289_vm6, 1, %v3581_v37  ;;  %v308_v24 = vshrl.u32 %v3630_v5, 16  ;;  %v310_v25 = vmul.u32 52429, %v307_v19 }
  0x24   : > { %v242_v26 = vmul.u32 10, %v241_v20  ;;  %v269_v27 = vadd.s32 %v268_v21, %v259_v52  ;;  %v292_v28 = vadd.s32 %v290_v17, %v284_v0  ;;  %vm293_vm7 = vc.u32 %v291_v22, %v287_v16 }
  0x25   : > { %v3674_v29 = vsub.s32 %v3613_v1, %v213_v23  ;;  %v294_v30 = vsel %vm293_vm7, 1, %v3581_v37  ;;  %v311_v31 = vmul.u32 52428, %v307_v19  ;;  %v312_v32 = vmul.u32 52429, %v308_v24 }
  0x26   : > { %v3678_v33 = vsub.s32 %v3621_v2, %v242_v26  ;;  %v270_v34 = vshrl.u32 %v269_v27, 3  ;;  %v296_v35 = vadd.s32 %v294_v30, %v292_v28  ;;  %v313_v36 = vmul.u32 52428, %v308_v24 }
  0x27   : > { %v314_v38 = vshll.u32 %v311_v31, 16  ;;  %v315_v39 = vshrl.u32 %v311_v31, 16  ;;  %v316_v40 = vshll.u32 %v312_v32, 16  ;;  %v317_v41 = vshrl.u32 %v312_v32, 16 }
  0x28   : > { %v271_v42 = vmul.u32 10, %v270_v34  ;;  %v297_v43 = vadd.s32 %v296_v35, %v286_v14  ;;  %v336_v44 = vand.u32 65535, %v3637_v6  ;;  %v337_v1 = vshrl.u32 %v3637_v6, 16 }
  0x29   : > { %vm318_vm8 = vc.u32 %v310_v25, %v314_v38  ;;  %v320_v45 = vadd.s32 %v314_v38, %v310_v25  ;;  %v365_v46 = vand.u32 65535, %v3640_v7  ;;  %v366_v2 = vshrl.u32 %v3640_v7, 16 }
  0x2a   : > { %v3685_v47 = vsub.s32 %v3624_v3, %v271_v42  ;;  %v298_v48 = vadd.s32 %v297_v43, %v288_v18  ;;  %v319_v49 = vsel %vm318_vm8, 1, %v3581_v37  ;;  %v339_v50 = vmul.u32 52429, %v336_v44 }
  0x2b   : > { %v321_v51 = vadd.s32 %v319_v49, %v313_v36  ;;  %vm322_vm9 = vc.u32 %v320_v45, %v316_v40  ;;  %v340_v52 = vmul.u32 52428, %v336_v44  ;;  %v341_v53 = vmul.u32 52429, %v337_v1 }
  0x2c   : > { %v299_v54 = vshrl.u32 %v298_v48, 3  ;;  %v323_v55 = vsel %vm322_vm9, 1, %v3581_v37  ;;  %v342_v56 = vmul.u32 52428, %v337_v1  ;;  %v368_v57 = vmul.u32 52429, %v365_v46 }
  0x2d   : > { %v325_v58 = vadd.s32 %v323_v55, %v321_v51  ;;  %v343_v59 = vshll.u32 %v340_v52, 16  ;;  %v344_v60 = vshrl.u32 %v340_v52, 16  ;;  %v345_v61 = vshll.u32 %v341_v53, 16 }
  0x2e   : > { %v300_v62 = vmul.u32 10, %v299_v54  ;;  %v346_v3 = vshrl.u32 %v341_v53, 16  ;;  %v369_v63 = vmul.u32 52428, %v365_v46  ;;  %v370_v0 = vmul.u32 52429, %v366_v2 }
  0x2f   : > { %v326_v11 = vadd.s32 %v325_v58, %v315_v39  ;;  %vm347_vm10 = vc.u32 %v339_v50, %v343_v59  ;;  %v349_v12 = vadd.s32 %v343_v59, %v339_v50  ;;  %v371_v13 = vmul.u32 52428, %v366_v2 }
  0x30   : > { %v3690_v14 = vsub.s32 %v3627_v4, %v300_v62  ;;  %v348_v15 = vsel %vm347_vm10, 1, %v3581_v37  ;;  %v372_v16 = vshll.u32 %v369_v63, 16  ;;  %v373_v18 = vshrl.u32 %v369_v63, 16 }
  0x31   : > { %v327_v19 = vadd.s32 %v326_v11, %v317_v41  ;;  %v350_v20 = vadd.s32 %v348_v15, %v342_v56  ;;  %vm351_vm11 = vc.u32 %v349_v12, %v345_v61  ;;  %v374_v21 = vshll.u32 %v370_v0, 16 }
  0x32   : > { %v352_v22 = vsel %vm351_vm11, 1, %v3581_v37  ;;  %v375_v23 = vshrl.u32 %v370_v0, 16  ;;  %vm376_vm12 = vc.u32 %v368_v57, %v372_v16  ;;  %v378_v17 = vadd.s32 %v372_v16, %v368_v57 }
  0x33   : > { %v328_v24 = vshrl.u32 %v327_v19, 3  ;;  %v354_v25 = vadd.s32 %v352_v22, %v350_v20  ;;  %v377_v26 = vsel %vm376_vm12, 1, %v3581_v37  ;;  %v394_v4 = vand.u32 65535, %v3643_v8 }
  0x34   : > { %v379_v27 = vadd.s32 %v377_v26, %v371_v13  ;;  %vm380_vm13 = vc.u32 %v378_v17, %v374_v21  ;;  %v395_v28 = vshrl.u32 %v3643_v8, 16  ;;  %v423_v30 = vand.u32 65535, %v3646_v9 }
  0x35   : > { %v329_v31 = vmul.u32 10, %v328_v24  ;;  %v355_v32 = vadd.s32 %v354_v25, %v344_v60  ;;  %v381_v34 = vsel %vm380_vm13, 1, %v3581_v37  ;;  %v397_v35 = vmul.u32 52429, %v394_v4 }
  0x36   : > { %v383_v36 = vadd.s32 %v381_v34, %v379_v27  ;;  %v398_v38 = vmul.u32 52428, %v394_v4  ;;  %v399_v39 = vmul.u32 52429, %v395_v28  ;;  %v400_v40 = vmul.u32 52428, %v395_v28 }
  0x37   : > { %v3700_v41 = vsub.s32 %v3630_v5, %v329_v31  ;;  %v356_v42 = vadd.s32 %v355_v32, %v346_v3  ;;  %v424_v43 = vshrl.u32 %v3646_v9, 16  ;;  %v426_v44 = vmul.u32 52429, %v423_v30 }
  0x38   : > { %v384_v1 = vadd.s32 %v383_v36, %v373_v18  ;;  %v401_v45 = vshll.u32 %v398_v38, 16  ;;  %v402_v46 = vshrl.u32 %v398_v38, 16  ;;  %v403_v2 = vshll.u32 %v399_v39, 16 }
  0x39   : > { %v357_v48 = vshrl.u32 %v356_v42, 3  ;;  %v404_v49 = vshrl.u32 %v399_v39, 16  ;;  %v427_v50 = vmul.u32 52428, %v423_v30  ;;  %v428_v51 = vmul.u32 52429, %v424_v43 }
  0x3a   : > { %v385_v52 = vadd.s32 %v384_v1, %v375_v23  ;;  %vm405_vm14 = vc.u32 %v397_v35, %v401_v45  ;;  %v407_v53 = vadd.s32 %v401_v45, %v397_v35  ;;  %v429_v54 = vmul.u32 52428, %v424_v43 }
  0x3b   : > { %v358_v55 = vmul.u32 10, %v357_v48  ;;  %v406_v5 = vsel %vm405_vm14, 1, %v3581_v37  ;;  %v430_v56 = vshll.u32 %v427_v50, 16  ;;  %v431_v57 = vshrl.u32 %v427_v50, 16 }
  0x3c   : > { %v386_v58 = vshrl.u32 %v385_v52, 3  ;;  %v408_v59 = vadd.s32 %v406_v5, %v400_v40  ;;  %vm409_vm15 = vc.u32 %v407_v53, %v403_v2  ;;  %v432_v60 = vshll.u32 %v428_v51, 16 }
  0x3d   : > { %v3705_v61 = vsub.s32 %v3637_v6, %v358_v55  ;;  %v410_v62 = vsel %vm409_vm15, 1, %v3581_v37  ;;  %v433_v3 = vshrl.u32 %v428_v51, 16  ;;  %vm434_vm0 = vc.u32 %v426_v44, %v430_v56 }
  0x3e   : > { %v387_v63 = vmul.u32 10, %v386_v58  ;;  %v412_v0 = vadd.s32 %v410_v62, %v408_v59  ;;  %v435_v11 = vsel %vm434_vm0, 1, %v3581_v37  ;;  %v436_v12 = vadd.s32 %v430_v56, %v426_v44 }
  0x3f   : > { %v437_v13 = vadd.s32 %v435_v11, %v429_v54  ;;  %v452_v15 = vand.u32 65535, %v3654_v10  ;;  %v453_v16 = vshrl.u32 %v3654_v10, 16  ;;  %vm478_vm1 = vcmp.ne.s32.totalorder %v3674_v29, 0 }
  0x40   : > { %v3713_v18 = vsub.s32 %v3640_v7, %v387_v63  ;;  %v413_v6 = vadd.s32 %v412_v0, %v402_v46  ;;  %vm438_vm2 = vc.u32 %v436_v12, %v432_v60  ;;  %vm479_vm3 = vcmp.ne.s32.totalorder %v3678_v33, 0 }
  0x41   : > { %v439_v19 = vsel %vm438_vm2, 1, %v3581_v37  ;;  %v455_v20 = vmul.u32 52429, %v452_v15  ;;  %v456_v21 = vmul.u32 52428, %v452_v15  ;;  %v457_v22 = vmul.u32 52429, %v453_v16 }
  0x42   : > { %v414_v23 = vadd.s32 %v413_v6, %v404_v49  ;;  %v441_v17 = vadd.s32 %v439_v19, %v437_v13  ;;  %v458_v24 = vmul.u32 52428, %v453_v16  ;;  %vm480_vm4 = vcmp.ne.s32.totalorder %v3685_v47, 0 }
  0x43   : > { %v459_v25 = vshll.u32 %v456_v21, 16  ;;  %v460_v26 = vshrl.u32 %v456_v21, 16  ;;  %v461_v4 = vshll.u32 %v457_v22, 16  ;;  %v462_v27 = vshrl.u32 %v457_v22, 16 }
  0x44   : > { %v415_v7 = vshrl.u32 %v414_v23, 3  ;;  %v442_v28 = vadd.s32 %v441_v17, %v431_v57  ;;  %vm481_vm5 = vcmp.ne.s32.totalorder %v3690_v14, 0  ;;  %vm482_vm6 = vcmp.ne.s32.totalorder %v3700_v41, 0 }
  0x45   : > { %vm463_vm7 = vc.u32 %v455_v20, %v459_v25  ;;  %v465_v30 = vadd.s32 %v459_v25, %v455_v20  ;;  %vm483_vm8 = vcmp.ne.s32.totalorder %v3705_v61, 0  ;;  %vm488_vm10 = vcmp.lt.s32.totalorder %v3674_v29, 0 }
  0x46   : > { %v416_v31 = vmul.u32 10, %v415_v7  ;;  %v443_v32 = vadd.s32 %v442_v28, %v433_v3  ;;  %v464_v34 = vsel %vm463_vm7, 1, %v3581_v37  ;;  %vm489_vm12 = vcmp.lt.s32.totalorder %v3678_v33, 0  ;;  %vm3728_vm14 = vmand %vm488_vm10, %vm478_vm1 }
  0x47   : > { %v466_v35 = vadd.s32 %v464_v34, %v458_v24  ;;  %vm467_vm11 = vc.u32 %v465_v30, %v461_v4  ;;  %vm490_vm13 = vcmp.lt.s32.totalorder %v3685_v47, 0  ;;  %vm491_vm15 = vcmp.lt.s32.totalorder %v3690_v14, 0  ;;  %vm3737_vm0 = vmand %vm489_vm12, %vm479_vm3 }
  0x48   : > { %v417_v38 = vsub.s32 %v3643_v8, %v416_v31  ;;  %v444_v39 = vshrl.u32 %v443_v32, 3  ;;  %v468_v40 = vsel %vm467_vm11, 1, %v3581_v37  ;;  %vm492_vm2 = vcmp.lt.s32.totalorder %v3700_v41, 0  ;;  %vm3746_vm10 = vmand %vm490_vm13, %vm480_vm4 }
  0x49   : > { %v470_v43 = vadd.s32 %v468_v40, %v466_v35  ;;  %vm493_vm1 = vcmp.lt.s32.totalorder %v3705_v61, 0  ;;  %vm494_vm7 = vcmp.lt.s32.totalorder %v3713_v18, 0  ;;  %vm3752_vm3 = vmand %vm491_vm15, %vm481_vm5  ;;  %v508_v1 = vadd.s32 10, %v3674_v29 }
  0x4a   : > { %v445_v37 = vmul.u32 10, %v444_v39  ;;  %vm485_vm11 = vcmp.ne.s32.totalorder %v417_v38, 0  ;;  %vm495_vm9 = vcmp.lt.s32.totalorder %v417_v38, 0  ;;  %vm3759_vm12 = vmand %vm492_vm2, %vm482_vm6  ;;  %v509_v2 = vadd.s32 10, %v3678_v33 }
  0x4b   : > { %v471_v45 = vadd.s32 %v470_v43, %v460_v26  ;;  %v510_v48 = vadd.s32 10, %v3685_v47  ;;  %v511_v49 = vadd.s32 10, %v3690_v14  ;;  %vm3769_vm4 = vmand %vm493_vm1, %vm483_vm8  ;;  %v512_v52 = vadd.s32 10, %v3700_v41 }
  0x4c   : > { %v446_v50 = vsub.s32 %v3646_v9, %v445_v37  ;;  %v513_v53 = vadd.s32 10, %v3705_v61  ;;  %v514_v54 = vadd.s32 10, %v3713_v18  ;;  %vm4841_vm5 = vcmp.ne.s32.totalorder %v3713_v18, 0  ;;  %vm3792_vm15 = vmand %vm495_vm9, %vm485_vm11 }
  0x4d   : > { %v472_v55 = vadd.s32 %v471_v45, %v462_v27  ;;  %vm3780_vm6 = vmand %vm494_vm7, %vm4841_vm5  ;;  %v515_v9 = vadd.s32 10, %v417_v38  ;;  %v518_v56 = vsel %vm3728_vm14, %v508_v1, %v3674_v29  ;;  %v519_v57 = vsel %vm3737_vm0, %v509_v2, %v3678_v33 }
  0x4e   : > { %vm486_vm8 = vcmp.ne.s32.totalorder %v446_v50, 0  ;;  %vm496_vm13 = vcmp.lt.s32.totalorder %v446_v50, 0  ;;  %v516_v59 = vadd.s32 10, %v446_v50  ;;  %v520_v60 = vsel %vm3746_vm10, %v510_v48, %v3685_v47 }
  0x4f   : > { %v473_v62 = vshrl.u32 %v472_v55, 3  ;;  %vm3799_vm2 = vmand %vm496_vm13, %vm486_vm8  ;;  %v521_v33 = vsel %vm3752_vm3, %v511_v49, %v3690_v14  ;;  %v522_v3 = vsel %vm3759_vm12, %v512_v52, %v3700_v41  ;;  %v523_v63 = vsel %vm3769_vm4, %v513_v53, %v3705_v61 }
  0x50   : > { %v524_v47 = vsel %vm3780_vm6, %v514_v54, %v3713_v18  ;;  %v525_v0 = vsel %vm3792_vm15, %v515_v9, %v417_v38  ;;  %v526_v11 = vsel %vm3799_vm2, %v516_v59, %v446_v50  ;;  %vm528_vm9 = vcmp.lt.s32.totalorder %v518_v56, 8 }
  0x51   : > { %v474_v14 = vmul.u32 10, %v473_v62  ;;  %vm529_vm14 = vcmp.lt.s32.totalorder %v519_v57, 8  ;;  %vm530_vm0 = vcmp.lt.s32.totalorder %v520_v60, 8  ;;  %vm531_vm1 = vcmp.lt.s32.totalorder %v521_v33, 8 }
  0x52   : > { %vm532_vm7 = vcmp.lt.s32.totalorder %v522_v3, 8  ;;  %vm3819_vm10 = vcmp.lt.s32.totalorder %v523_v63, 8  ;;  %vm534_vm11 = vcmp.lt.s32.totalorder %v524_v47, 8  ;;  %vm535_vm3 = vcmp.lt.s32.totalorder %v525_v0, 8 }
  0x53   : > { %v475_v61 = vsub.s32 %v3654_v10, %v474_v14  ;;  %vm536_vm12 = vcmp.lt.s32.totalorder %v526_v11, 8  ;;  %v3582_v12 = vmov 0.0   ;;  %v3846_v24 = vmov 0.0  }
  0x54   : > { %v3824_v13 = vsel %vm528_vm9, 1.0, %v3582_v12  ;;  %v3826_v15 = vsel %vm529_vm14, 1.0, %v3582_v12  ;;  %v3828_v16 = vsel %vm530_vm0, 1.0, %v3582_v12  ;;  %v3830_v18 = vsel %vm531_vm1, 1.0, %v3582_v12 }
  0x55   : > { %vm487_vm4 = vcmp.ne.s32.totalorder %v475_v61, 0  ;;  %vm497_vm5 = vcmp.lt.s32.totalorder %v475_v61, 0  ;;  %v517_v6 = vadd.s32 10, %v475_v61  ;;  %v3832_v19 = vsel %vm532_vm7, 1.0, %v3582_v12 }
  0x56   : > { %vm507_vm6 = vmand %vm497_vm5, %vm487_vm4  ;;  %v3836_v10 = vsel %vm3819_vm10, 1.0, %v3582_v12  ;;  %v3838_v20 = vsel %vm534_vm11, 1.0, %v3582_v12  ;;  %v3840_v21 = vsel %vm535_vm3, 1.0, %v3582_v12  ;;  %v3842_v22 = vsel %vm536_vm12, 1.0, %v3582_v12 }
  0x57   : > { %v527_v23 = vsel %vm507_vm6, %v517_v6, %v475_v61  ;;  %v3848_v25 = vmov 0.0  }
  0x58   : > { %vm537_vm8 = vcmp.lt.s32.totalorder %v527_v23, 8 }
  0x59   : > { %v3844_v17 = vsel %vm537_vm8, 1.0, %v3582_v12 }
  0x5a LB: >> { %vm700_vm13 = vcmask 1041408   ;;  %v3171_v26 = vld [vmem:[%s4823_s1 + $0x4] sm:$0x3]  ;;  %v3160_v4 = vld [vmem:[%s4823_s1 + $0x2] sm:$0x3]  ;;  %s3323_s4 = smul.u32 52, %s3579_s24  ;;  %s3579_s24 = sphi %s3850_s24, %s563_s24   ;;  %v3575_v25 = vphi %v3848_v25, %v4854_v25   ;;  %v3571_v24 = vphi %v3846_v24, %v4853_v24  }
  0x5b   : >> { %v813_v27 = vsel %vm700_vm13, %v3171_v26, 0  ;;  %v702_v7 = vsel %vm700_vm13, %v3160_v4, 0  ;;  %v616_v28 = vld [vmem:[%s4823_s1] sm:$0x3]  ;;  %v3177_v31 = vld [vmem:[%s4823_s1 + $0x6] sm:$0x3] }
  0x5c   : >> { %3500 = vmatpush.bf16.msra.mxu2 %v813_v27  ;;  %711 = vmatpush.bf16.msra.mxu0 %v702_v7  ;;  %v749_v30 = vsel %vm700_vm13, %v616_v28, 0  ;;  %v893_v32 = vsel %vm700_vm13, %v3177_v31, 0  ;;  %v3195_v34 = vld [vmem:[%s4823_s1 + $0xc] sm:$0x3]  ;;  %v3189_v35 = vld [vmem:[%s4823_s1 + $0xa] sm:$0x3]  ;;  %s3885_s11 = scalar_lea.vmem %s3651_s23, %s3323_s4 }
  0x5d   : >> { %3498 = vmatpush.bf16.msra.mxu3 %v702_v7  ;;  %3499 = vmatpush.bf16.msra.mxu1 %v749_v30  ;;  %v1165_v36 = vsel %vm700_vm13, %v3195_v34, 0  ;;  %v1086_v38 = vsel %vm700_vm13, %v3189_v35, 0  ;;  %v3890_v39 = vld [vmem:[%s3885_s11 + $0x8] sm:$0xff]   ;;  %v3893_v40 = vld [vmem:[%s3885_s11 + $0x10] sm:$0xff]   ;;  %vm684_vm15 = vcmask 31744   ;;  %vm787_vm2 = vcmask 1046528  }
  0x5e   : >> { %v3325_v42 = vld [vmem:[%s3885_s11] sm:$0xff]   ;;  %v789_v43 = vrot.slane %v3890_v39, 1  ;;  %v791_v8 = vrot.slane %v3893_v40, 1  ;;  %v653_v1 = vshll.u32 %v3890_v39, 16  ;;  %v657_v45 = vshrl.u32 %v3890_v39, 16  ;;  %v3916_v55 = vld [vmem:[%s3885_s11 + $0x18] sm:$0xff]  }
  0x5f   : >> { %v646_v37 = vshrl.u32 %v3325_v42, 16  ;;  %v648_v44 = vshll.u32 %v3325_v42, 16  ;;  %v661_v46 = vshll.u32 %v3893_v40, 16  ;;  %vm644_vm9 = vsmask.f32 7424  ;;  %v3936_v29 = vld [vmem:[%s3885_s11 + $0x20] sm:$0xff]  }
  0x60   : >> { %758 = vmatpush.bf16.msrb.mxu0 %v749_v30  ;;  %1174 = vmatpush.bf16.msrb.mxu2 %v1165_v36  ;;  %v792_v2 = vsel %vm787_vm2, %v789_v43, %v791_v8  ;;  %v655_v49 = vrot.slane %v653_v1, 1  ;;  %v793_v5 = vrot.slane %v3916_v55, 1  ;;  %v665_v9 = vshrl.u32 %v3893_v40, 16  ;;  %v3183_v62 = vld [vmem:[%s4823_s1 + $0x8] sm:$0x3]  ;;  %v3952_v12 = vld [vmem:[%s3885_s11 + $0xc] sm:$0xff]  }
  0x61   : >> { %902 = vmatpush.bf16.msrb.mxu3 %v893_v32  ;;  %1095 = vmatpush.bf16.msrb.mxu1 %v1086_v38  ;;  %v650_v48 = vrot.slane %v648_v44, 1  ;;  %v663_v50 = vrot.slane %v661_v46, 1  ;;  %v669_v56 = vshll.u32 %v3916_v55, 16  ;;  %v1010_v33 = vsel %vm700_vm13, %v3183_v62, 0  ;;  %v3450_v61 = vld [vmem:[%s3885_s11 + $0x4] sm:$0xff]   ;;  %s563_s24 = sadd.s32 1, %s3579_s24  }
  0x62   : >> { %3167 = vmatmul.msk.bf16.vlgmr.msra.gmra.mxu1 %vm684_vm15, %v3890_v39  ;;  %3173 = vmatmul.msk.bf16.vlgmr.msra.gmra.mxu2 %vm684_vm15, %v792_v2  ;;  %v659_v52 = vor.u32 %v657_v45, %v655_v49  ;;  %v794_v57 = vsel %vm787_vm2, %v791_v8, %v793_v5  ;;  %v795_v3 = vrot.slane %v3936_v29, 1  ;;  %v673_v63 = vshrl.u32 %v3916_v55, 16  ;;  %v3201_v28 = vld [vmem:[%s4823_s1 + $0xe] sm:$0x3]  ;;  %v3219_v30 = vld [vmem:[%s4823_s1 + $0x14] sm:$0x3] }
  0x63   : >> { %v651_v51 = vor.u32 %v650_v48, %v646_v37  ;;  %v667_v58 = vor.u32 %v665_v9, %v663_v50  ;;  %v671_v59 = vrot.slane %v669_v56, 1  ;;  %v677_v47 = vshll.u32 %v3936_v29, 16  ;;  %v3207_v31 = vld [vmem:[%s4823_s1 + $0x10] sm:$0x3]  ;;  %v3213_v36 = vld [vmem:[%s4823_s1 + $0x12] sm:$0x3] }
  0x64   : >> { %v664_v54 = vsel %vm644_vm9, %v659_v52, %v663_v50  ;;  %v796_v0 = vsel %vm787_vm2, %v793_v5, %v795_v3  ;;  %v788_v11 = vrot.slane %v3325_v42, 1  ;;  %v946_v26 = vshrl.u32 %v3450_v61, 16  ;;  %p560_p4 = scmp.ge.s32.totalorder %s563_s24, 8  }
  0x65   : >> { %v656_v53 = vsel %vm644_vm9, %v651_v51, %v655_v49  ;;  %3162 = vmatmul.msk.bf16.vlgmr.msra.gmra.mxu3 %vm684_vm15, %v664_v54  ;;  %v672_v60 = vsel %vm644_vm9, %v667_v58, %v671_v59  ;;  %v675_v14 = vor.u32 %v673_v63, %v671_v59  ;;  %v679_v41 = vrot.slane %v677_v47, 1  ;;  %v3454_v51 = vld [vmem:[%s3885_s11 + $0x14] sm:$0xff]  }
  0x66   : >> { %3161 = vmatmul.msk.bf16.vlgmr.msra.gmra.mxu0 %vm684_vm15, %v656_v53  ;;  %v790_v6 = vsel %vm787_vm2, %v788_v11, %v789_v43  ;;  %v949_v4 = vshll.u32 %v3450_v61, 16  ;;  %v957_v7 = vshll.u32 %v3952_v12, 16  ;;  %v1263_v32 = vsel %vm700_vm13, %v3201_v28, 0 }
  0x67   : >> { %822 = vmatpush.bf16.msra.mxu0 %v813_v27  ;;  %v680_v23 = vsel %vm644_vm9, %v675_v14, %v679_v41  ;;  %v954_v27 = vshrl.u32 %v3952_v12, 16  ;;  %v1526_v34 = vsel %vm700_vm13, %v3219_v30, 0  ;;  %v1339_v35 = vsel %vm700_vm13, %v3207_v31, 0  ;;  %1272 = vmatpush.bf16.msra.mxu3 %v1263_v32 }
  0x68   : >> { %1535 = vmatpush.bf16.msra.mxu2 %v1526_v34  ;;  %v1428_v38 = vsel %vm700_vm13, %v3213_v36, 0  ;;  %v951_v43 = vrot.slane %v949_v4, 2  ;;  %v959_v37 = vrot.slane %v957_v7, 2  ;;  %v681_v44 = vshrl.u32 %v3936_v29, 16  ;;  %v4006_v34 = vld [vmem:[%s3885_s11 + $0x24] sm:$0xff]  }
  0x69   : >> { %1437 = vmatpush.bf16.msra.mxu1 %v1428_v38  ;;  %v956_v8 = vrot.slane %v954_v27, 1  ;;  %vm944_vm14 = vsmask.f32 6400  ;;  %v963_v52 = vshrl.u32 %v3454_v51, 16  ;;  %v966_v53 = vshll.u32 %v3454_v51, 16 }
  0x6a   : >> { %v683_v49 = vor.u32 %v681_v44, %v679_v41  ;;  %v1059_v54 = vrot.slane %v3450_v61, 2  ;;  %v1060_v5 = vrot.slane %v3952_v12, 2  ;;  %vm1058_vm0 = vcmask 1045504   ;;  %v3455_v41 = vld [vmem:[%s3885_s11 + $0x1c] sm:$0xff]  }
  0x6b   : >> { %v960_v48 = vor.u32 %v959_v37, %v956_v8  ;;  %v1139_v58 = vrot.slane %v3893_v40, 2  ;;  %v965_v59 = vrot.slane %v963_v52, 1  ;;  %v869_v11 = vrot.slane %v3952_v12, 1 }
  0x6c   : >> { %v1061_v62 = vsel %vm1058_vm0, %v1059_v54, %v1060_v5  ;;  %v1062_v4 = vrot.slane %v3454_v51, 2  ;;  %v1141_v27 = vrot.slane %v3916_v55, 2  ;;  %v871_v31 = vrot.slane %v3454_v51, 1  ;;  %v4019_v51 = vld [vmem:[%s3885_s11 + $0x28] sm:$0xff]  }
  0x6d   : >> { %v981_v36 = vshrl.u32 %v4006_v34, 16  ;;  %v984_v38 = vshll.u32 %v4006_v34, 16  ;;  %vm1213_vm1 = vsmask.f32 5376  ;;  %vm1311_vm7 = vcmask 1044480  }
  0x6e   : >> { %v1063_v12 = vsel %vm1058_vm0, %v1060_v5, %v1062_v4  ;;  %v1142_v28 = vsel %vm1058_vm0, %v1139_v58, %v1141_v27  ;;  %vm2959_vm10 = vcmask 64512   ;;  %vm2977_vm11 = vcmask 62464  }
  0x6f   : >> { %v983_v8 = vrot.slane %v981_v36, 1  ;;  %v986_v37 = vrot.slane %v984_v38, 2  ;;  %v3237_v36 = vld [vmem:[%s4823_s1 + $0x1a] sm:$0x3]  ;;  %v4072_v38 = vld [vmem:[%s3885_s11 + $0x3c] sm:$0xff]   ;;  %vm3023_vm3 = vcmask (%p560_p4), 57344  }
  0x72   : >> { %3168 = vmatmul.msk.bf16.gmra.mxu1 %vm684_vm15, %v3893_v40  ;;  %3174 = vmatmul.msk.bf16.gmra.mxu2 %vm684_vm15, %v794_v57  ;;  %v1138_v57 = vrot.slane %v3890_v39, 2 }
  0x75   : >> { %3163 = vmatmul.msk.bf16.gmra.mxu3 %vm684_vm15, %v672_v60  ;;  %v968_v60 = vrot.slane %v966_v53, 2  ;;  %v3347_v53 = vunpack.c.h.b16 %v4019_v51 }
  0x76   : >> { %3166 = vmatmul.msk.bf16.vlgmr.msrb.gmra.mxu0 %vm684_vm15, %v3325_v42  ;;  %v948_v42 = vrot.slane %v946_v26, 1  ;;  %v975_v26 = vshll.u32 %v3455_v41, 16 }
  0x77   : >> { %1019 = vmatpush.bf16.msrb.mxu0 %v1010_v33  ;;  %v1140_v33 = vsel %vm1058_vm0, %v1138_v57, %v1139_v58  ;;  %v943_v5 = vpack.c.b16 %v3347_v53, %v3347_v53  ;;  %v1066_v57 = vrot.slane %v4006_v34, 2  ;;  %v1145_v58 = vrot.slane %v4019_v51, 2 }
  0x78   : >> { %v952_v2 = vor.u32 %v951_v43, %v948_v42  ;;  %v977_v7 = vrot.slane %v975_v26, 2  ;;  %v1064_v42 = vrot.slane %v3455_v41, 2  ;;  %v1143_v43 = vrot.slane %v3936_v29, 2 }
  0x7a   : >> { %v961_v50 = vsel %vm944_vm14, %v952_v2, %v960_v48  ;;  %v1065_v2 = vsel %vm1058_vm0, %v1062_v4, %v1064_v42 }
  0x82   : >> { %3169 = vmatmul.msk.bf16.gmra.mxu1 %vm684_vm15, %v3916_v55  ;;  %3175 = vmatmul.msk.bf16.gmra.mxu2 %vm684_vm15, %v796_v0  ;;  %v868_v0 = vrot.slane %v3450_v61, 1 }
  0x85   : >> { %3164 = vmatmul.msk.bf16.gmra.mxu3 %vm684_vm15, %v680_v23  ;;  %v972_v23 = vshrl.u32 %v3455_v41, 16 }
  0x86   : >> { %3172 = vmatmul.msk.bf16.vlgmr.msra.gmra.mxu0 %vm684_vm15, %v790_v6  ;;  %v870_v6 = vsel %vm787_vm2, %v868_v0, %v869_v11  ;;  %v1214_v0 = vrot.slane %v657_v45, 2 }
  0x87   : >> { %1348 = vmatpush.bf16.msra.mxu0 %v1339_v35  ;;  %v974_v61 = vrot.slane %v972_v23, 1  ;;  %v872_v35 = vsel %vm787_vm2, %v869_v11, %v871_v31  ;;  %v1218_v11 = vrot.slane %v661_v46, 3 }
  0x89   : >> { %v978_v30 = vor.u32 %v977_v7, %v974_v61  ;;  %v1068_v61 = vrot.slane %v943_v5, 2 }
  0x92   : >> { %3170 = vmatmul.msk.bf16.gmra.mxu1 %vm684_vm15, %v3936_v29  ;;  %3176 = vmatmul.msk.bf16.gmra.mxu2 %vm684_vm15, %v795_v3  ;;  %v969_v3 = vor.u32 %v968_v60, %v965_v59  ;;  %v990_v59 = vshll.u32 %v943_v5, 16  ;;  %v1067_v60 = vsel %vm1058_vm0, %v1064_v42, %v1066_v57  ;;  %v1795_v42 = vsel %vm700_vm13, %v3237_v36, 0 }
  0x94   : >> { %v970_v14 = vsel %vm944_vm14, %v960_v48, %v969_v3  ;;  %v979_v32 = vsel %vm944_vm14, %v969_v3, %v978_v30  ;;  %v1144_v48 = vsel %vm1058_vm0, %v1141_v27, %v1143_v43  ;;  %v992_v3 = vrot.slane %v990_v59, 2 }
  0x95   : >> { %3165 = vmatmul.msk.bf16.gmra.mxu3 %vm684_vm15, %v683_v49  ;;  %v987_v49 = vor.u32 %v986_v37, %v983_v8  ;;  %v4078_v8 = vld [vmem:[%s3885_s11 + $0x34] sm:$0xff]   ;;  %v1312_v37 = vrot.slane %v3890_v39, 3 }
  0x96   : >> { %3184 = vmatmul.msk.bf16.vlgmr.msrb.gmra.mxu0 %vm684_vm15, %v961_v50  ;;  %v873_v50 = vrot.slane %v3455_v41, 1  ;;  %v875_v41 = vrot.slane %v4006_v34, 1 }
  0x97   : >> { %v988_v52 = vsel %vm944_vm14, %v978_v30, %v987_v49  ;;  %v993_v23 = vsel %vm944_vm14, %v987_v49, %v992_v3  ;;  %v1069_v30 = vsel %vm1058_vm0, %v1066_v57, %v1068_v61  ;;  %v1486_v49 = vshrl.u32 %v4072_v38, 16 }
  0x98   : >> { %v874_v54 = vsel %vm787_vm2, %v871_v31, %v873_v50  ;;  %v876_v26 = vsel %vm787_vm2, %v873_v50, %v875_v41  ;;  %v3243_v31 = vld [vmem:[%s4823_s1 + $0x1c] sm:$0x3] }
  0x99   : >> { %v1870_v34 = vsel %vm700_vm13, %v3243_v31, 0  ;;  %v4087_v5 = vrot.slane %v1486_v49, 2 }
  0xa2   : >> { %3190 = vmatmul.msk.bf16.vlgmr.msrb.gmra.mxu1 %vm684_vm15, %v1061_v62  ;;  %3196 = vmatmul.msk.bf16.vlgmr.msrb.gmra.mxu2 %vm684_vm15, %v1140_v33  ;;  %v1215_v62 = vrot.slane %v653_v1, 3  ;;  %v1146_v33 = vsel %vm1058_vm0, %v1143_v43, %v1145_v58 }
  0xa3   : >> { %1879 = vmatpush.bf16.msrb.mxu2 %v1870_v34  ;;  %1804 = vmatpush.bf16.msrb.mxu1 %v1795_v42 }
  0xa4   : >> { %v1216_v4 = vor.u32 %v1215_v62, %v1214_v0 }
  0xa5   : >> { %3178 = vmatmul.msk.bf16.vlgmr.msrb.gmra.mxu3 %vm684_vm15, %v870_v6  ;;  %v581_v6 = vld [vmem:[%s3885_s11 + $0x30] sm:$0x3] }
  0xa6   : >> { %3185 = vmatmul.msk.bf16.gmra.mxu0 %vm684_vm15, %v970_v14  ;;  %v1217_v14 = vrot.slane %v665_v9, 2  ;;  %v1135_v1 = vunpack.c.l.b16 %v581_v6  ;;  %v3225_v9 = vld [vmem:[%s4823_s1 + $0x16] sm:$0x3] }
  0xa7   : >> { %v1599_v7 = vsel %vm700_vm13, %v3225_v9, 0 }
  0xa8   : >> { %v4044_v27 = vor.u32 %v1218_v11, %v1217_v14  ;;  %v4052_v46 = vpack.c.b16 %v1135_v1, %v1135_v1  ;;  %1608 = vmatpush.bf16.msrb.mxu3 %v1599_v7  ;;  %v4097_v11 = vld [vmem:[%s3885_s11 + $0x44] sm:$0xff]  }
  0xa9   : >> { %v1493_v9 = vshrl.u32 %v4097_v11, 16 }
  0xaa   : >> { %v4049_v45 = vsel %vm1213_vm1, %v1216_v4, %v4044_v27 }
  0xb2   : >> { %3191 = vmatmul.msk.bf16.gmra.mxu1 %vm684_vm15, %v1063_v12  ;;  %3197 = vmatmul.msk.bf16.gmra.mxu2 %vm684_vm15, %v1142_v28  ;;  %v1147_v12 = vrot.slane %v4052_v46, 2 }
  0xb4   : >> { %v1148_v43 = vsel %vm1058_vm0, %v1145_v58, %v1147_v12  ;;  %v1476_v58 = vshrl.u32 %v4078_v8, 16 }
  0xb5   : >> { %3179 = vmatmul.msk.bf16.gmra.mxu3 %vm684_vm15, %v872_v35 }
  0xb6   : >> { %3186 = vmatmul.msk.bf16.gmra.mxu0 %vm684_vm15, %v979_v32  ;;  %v3231_v32 = vld [vmem:[%s4823_s1 + $0x18] sm:$0x3] }
  0xb7   : >> { %v1679_v35 = vsel %vm700_vm13, %v3231_v32, 0 }
  0xb8   : >> { %1688 = vmatpush.bf16.msrb.mxu0 %v1679_v35 }
  0xc2   : >> { %3192 = vmatmul.msk.bf16.gmra.mxu1 %vm684_vm15, %v1065_v2  ;;  %3198 = vmatmul.msk.bf16.gmra.mxu2 %vm684_vm15, %v1144_v48  ;;  %v1313_v2 = vrot.slane %v3893_v40, 3  ;;  %v1482_v48 = vshll.u32 %v4072_v38, 16 }
  0xc4   : >> { %v1314_v53 = vsel %vm1311_vm7, %v1312_v37, %v1313_v2  ;;  %v4089_v39 = vrot.slane %v1482_v48, 3  ;;  %v1484_v0 = vrot.slane %v1482_v48, 1 }
  0xc5   : >> { %3180 = vmatmul.msk.bf16.gmra.mxu3 %vm684_vm15, %v874_v54 }
  0xc6   : >> { %3187 = vmatmul.msk.bf16.gmra.mxu0 %vm684_vm15, %v988_v52  ;;  %v1478_v52 = vshll.u32 %v4078_v8, 16  ;;  %v1999_v57 = vor.u32 %v4089_v39, %v4087_v5  ;;  %v1488_v48 = vor.u32 %v1486_v49, %v1484_v0 }
  0xc8   : >> { %v1480_v59 = vrot.slane %v1478_v52, 1 }
  0xca   : >> { %v1481_v3 = vor.u32 %v1480_v59, %v1476_v58 }
  0xd2   : >> { %3193 = vmatmul.msk.bf16.gmra.mxu1 %vm684_vm15, %v1067_v60  ;;  %3199 = vmatmul.msk.bf16.gmra.mxu2 %vm684_vm15, %v1146_v33 }
  0xd5   : >> { %3181 = vmatmul.msk.bf16.gmra.mxu3 %vm684_vm15, %v876_v26  ;;  %v1315_v26 = vrot.slane %v3916_v55, 3 }
  0xd6   : >> { %3188 = vmatmul.msk.bf16.gmra.mxu0 %vm684_vm15, %v993_v23  ;;  %v1485_v23 = vsel %vm644_vm9, %v1481_v3, %v1484_v0 }
  0xdf   : >> { %v765_v28 = vpop.f32.mrf.mxu1 }
  0xe2   : >> { %3194 = vmatmul.msk.bf16.gmra.mxu1 %vm684_vm15, %v1069_v30  ;;  %3200 = vmatmul.msk.bf16.gmra.mxu2 %vm684_vm15, %v1148_v43  ;;  %v2000_v30 = vrot.slane %v1493_v9, 2 }
  0xe3   : >> { %v713_v50 = vpop.f32.mrf.mxu0 }
  0xe5   : >> { %v829_v40 = vpop.f32.mrf.mxu2  ;;  %3182 = vmatmul.msk.bf16.gmra.mxu3 %vm684_vm15, %v875_v41  ;;  %v1489_v41 = vshll.u32 %v4097_v11, 16 }
  0xe6   : >> { %3208 = vmatmul.msk.bf16.vlgmr.msra.gmra.mxu0 %vm684_vm15, %v1314_v53 }
  0xe7   : >> { %v767_v54 = vpop.f32.mrf.mxu1  ;;  %v2001_v4 = vrot.slane %v1489_v41, 3  ;;  %v1491_v52 = vrot.slane %v1489_v41, 1 }
  0xe8   : >> { %v718_v60 = vpop.f32.mrf.mxu3 }
  0xe9   : >> { %v766_v62 = vadd.f32 %v765_v28, %v718_v60  ;;  %v1316_v28 = vsel %vm1311_vm7, %v1313_v2, %v1315_v26  ;;  %v4109_v35 = vor.u32 %v2001_v4, %v2000_v30  ;;  %v1492_v59 = vsel %vm644_vm9, %v1488_v48, %v1491_v52  ;;  %v4156_v48 = vld [vmem:[%s3885_s11 + $0x54] sm:$0xff]  }
  0xea   : >> { %v1226_v30 = vrot.slane %v677_v47, 3 }
  0xeb   : >> { %v715_v33 = vpop.f32.mrf.mxu0  ;;  %v4099_v1 = vadd.f32 %v829_v40, %v766_v62 }
  0xed   : >> { %v831_v6 = vpop.f32.mrf.mxu2 }
  0xef   : >> { %v770_v14 = vpop.f32.mrf.mxu1 }
  0xf0   : >> { %v720_v61 = vpop.f32.mrf.mxu3 }
  0xf1   : >> { %v768_v7 = vadd.f32 %v767_v54, %v720_v61  ;;  %v1222_v54 = vrot.slane %v669_v56, 3 }
  0xf2   : >> { %3214 = vmatmul.msk.bf16.vlgmr.msra.gmra.mxu1 %vm684_vm15, %v4078_v8  ;;  %3220 = vmatmul.msk.bf16.vlgmr.msra.gmra.mxu2 %vm684_vm15, %v1485_v23 }
  0xf3   : >> { %v760_v12 = vpop.f32.mrf.mxu0  ;;  %v4111_v36 = vadd.f32 %v831_v6, %v768_v7  ;;  %v1495_v7 = vor.u32 %v1493_v9, %v1491_v52  ;;  %v1319_v9 = vrot.slane %v4019_v51, 3 }
  0xf4   : >> { %v761_v31 = vadd.f32 %v760_v12, %v713_v50  ;;  %v1221_v50 = vrot.slane %v673_v63, 2  ;;  %v4128_v63 = vld [vmem:[%s3885_s11 + $0x4c] sm:$0xff]  }
  0xf5   : >> { %v834_v34 = vpop.f32.mrf.mxu2  ;;  %3202 = vmatmul.msk.bf16.vlgmr.msra.gmra.mxu3 %vm684_vm15, %v4049_v45  ;;  %v1317_v45 = vrot.slane %v3936_v29, 3  ;;  %v1496_v23 = vshll.u32 %v4128_v63, 16 }
  0xf6   : >> { %3209 = vmatmul.msk.bf16.gmra.mxu0 %vm684_vm15, %v1316_v28  ;;  %v1223_v49 = vor.u32 %v1222_v54, %v1221_v50  ;;  %v1500_v50 = vshrl.u32 %v4128_v63, 16  ;;  %v4826_v54 = vshll.u32 %v4156_v48, 16 }
  0xf7   : >> { %v772_v32 = vpop.f32.mrf.mxu1  ;;  %v1318_v55 = vsel %vm1311_vm7, %v1315_v26, %v1317_v45  ;;  %v1498_v26 = vrot.slane %v1496_v23, 1  ;;  %v1320_v29 = vsel %vm1311_vm7, %v1317_v45, %v1319_v9 }
  0xf8   : >> { %v723_v42 = vpop.f32.mrf.mxu3  ;;  %v1224_v3 = vsel %vm1213_vm1, %v4044_v27, %v1223_v49  ;;  %v1225_v27 = vrot.slane %v681_v44, 2 }
  0xf9   : >> { %v771_v43 = vadd.f32 %v770_v14, %v723_v42 }
  0xfa   : >> { %v1227_v42 = vor.u32 %v1226_v30, %v1225_v27 }
  0xfb   : >> { %v762_v37 = vpop.f32.mrf.mxu0  ;;  %v4120_v58 = vadd.f32 %v834_v34, %v771_v43  ;;  %v1499_v34 = vsel %vm644_vm9, %v1495_v7, %v1498_v26 }
  0xfc   : >> { %v763_v2 = vadd.f32 %v762_v37, %v715_v33  ;;  %v1228_v47 = vsel %vm1213_vm1, %v1223_v49, %v1227_v42  ;;  %v1502_v49 = vor.u32 %v1500_v50, %v1498_v26 }
  0xfd   : >> { %v836_v40 = vpop.f32.mrf.mxu2 }
  0xff   : >> { %v775_v53 = vpop.f32.mrf.mxu1 }
 0x100   : >> { %v725_v60 = vpop.f32.mrf.mxu3 }
 0x101   : >> { %v773_v62 = vadd.f32 %v772_v32, %v725_v60 }
 0x102   : >> { %3215 = vmatmul.msk.bf16.gmra.mxu1 %vm684_vm15, %v4072_v38  ;;  %3221 = vmatmul.msk.bf16.gmra.mxu2 %vm684_vm15, %v1492_v59  ;;  %v1233_v59 = vshll.u32 %v4019_v51, 16 }
 0x103   : >> { %v824_v33 = vpop.f32.mrf.mxu0  ;;  %v4135_v6 = vadd.f32 %v836_v40, %v773_v62  ;;  %v1230_v40 = vshrl.u32 %v4019_v51, 16  ;;  %v1505_v62 = vrot.slane %v4826_v54, 1  ;;  %v1321_v51 = vrot.slane %v4052_v46, 3 }
 0x104   : >> { %v4131_v56 = vadd.f32 %v824_v33, %v761_v31 }
 0x105   : >> { %v839_v14 = vpop.f32.mrf.mxu2  ;;  %3203 = vmatmul.msk.bf16.gmra.mxu3 %vm684_vm15, %v1224_v3  ;;  %v1232_v3 = vrot.slane %v1230_v40, 2 }
 0x106   : >> { %3210 = vmatmul.msk.bf16.gmra.mxu0 %vm684_vm15, %v1318_v55 }
 0x107   : >> { %v777_v0 = vpop.f32.mrf.mxu1 }
 0x108   : >> { %v728_v41 = vpop.f32.mrf.mxu3 }
 0x109   : >> { %v776_v4 = vadd.f32 %v775_v53, %v728_v41 }
 0x10b   : >> { %v826_v61 = vpop.f32.mrf.mxu0  ;;  %v4148_v32 = vadd.f32 %v839_v14, %v776_v4  ;;  %v1506_v4 = vsel %vm644_vm9, %v1502_v49, %v1505_v62  ;;  %v3397_v49 = vld [vmem:[%s3885_s11 + $0x38] sm:$0xff]  }
 0x10c   : >> { %v4144_v12 = vadd.f32 %v826_v61, %v763_v2 }
 0x10d   : >> { %v841_v31 = vpop.f32.mrf.mxu2 }
 0x10f   : >> { %v780_v28 = vpop.f32.mrf.mxu1 }
 0x110   : >> { %v730_v43 = vpop.f32.mrf.mxu3 }
 0x111   : >> { %v778_v44 = vadd.f32 %v777_v0, %v730_v43  ;;  %v1235_v0 = vrot.slane %v1233_v59, 3 }
 0x112   : >> { %3216 = vmatmul.msk.bf16.gmra.mxu1 %vm684_vm15, %v4097_v11  ;;  %3222 = vmatmul.msk.bf16.gmra.mxu2 %vm684_vm15, %v1499_v34 }
 0x113   : >> { %v1021_v37 = vpop.f32.mrf.mxu0  ;;  %v4160_v53 = vadd.f32 %v841_v31, %v778_v44  ;;  %v1236_v61 = vor.u32 %v1235_v0, %v1232_v3  ;;  %v1239_v44 = vshrl.u32 %v4052_v46, 16  ;;  %v4201_v3 = vld [vmem:[%s3885_s11 + $0x40] sm:$0xff]  }
 0x115   : >> { %v844_v2 = vpop.f32.mrf.mxu2  ;;  %3204 = vmatmul.msk.bf16.gmra.mxu3 %vm684_vm15, %v1228_v47  ;;  %v1237_v30 = vsel %vm1213_vm1, %v1227_v42, %v1236_v61  ;;  %v1241_v40 = vrot.slane %v1239_v44, 2  ;;  %v1655_v44 = vrot.slane %v4201_v3, 1 }
 0x116   : >> { %3211 = vmatmul.msk.bf16.gmra.mxu0 %vm684_vm15, %v1320_v29  ;;  %v1242_v29 = vshll.u32 %v4052_v46, 16 }
 0x117   : >> { %v782_v52 = vpop.f32.mrf.mxu1 }
 0x118   : >> { %v733_v60 = vpop.f32.mrf.mxu3  ;;  %v1244_v59 = vrot.slane %v1242_v29, 3 }
 0x119   : >> { %v781_v45 = vadd.f32 %v780_v28, %v733_v60  ;;  %v1322_v28 = vsel %vm1311_vm7, %v1319_v9, %v1321_v51  ;;  %v3249_v9 = vld [vmem:[%s4823_s1 + $0x1e] sm:$0x3] }
 0x11a   : >> { %v1949_v42 = vsel %vm700_vm13, %v3249_v9, 0  ;;  %v1731_v9 = vshrl.u32 %v3397_v49, 16 }
 0x11b   : >> { %v4172_v33 = vpop.f32.mrf.mxu0  ;;  %v4174_v41 = vadd.f32 %v844_v2, %v781_v45  ;;  %1958 = vmatpush.bf16.msra.mxu3 %v1949_v42  ;;  %v1734_v42 = vshll.u32 %v3397_v49, 16 }
 0x11d   : >> { %v846_v14 = vpop.f32.mrf.mxu2 }
 0x11f   : >> { %v1097_v55 = vpop.f32.mrf.mxu1 }
 0x120   : >> { %v735_v7 = vpop.f32.mrf.mxu3 }
 0x121   : >> { %v783_v26 = vadd.f32 %v782_v52, %v735_v7  ;;  %v4827_v52 = vshrl.u32 %v4156_v48, 16 }
 0x122   : >> { %3217 = vmatmul.msk.bf16.gmra.mxu1 %vm684_vm15, %v4128_v63  ;;  %3223 = vmatmul.msk.bf16.gmra.mxu2 %vm684_vm15, %v1506_v4  ;;  %v3255_v4 = vld [vmem:[%s4823_s1 + $0x20] sm:$0x3] }
 0x123   : >> { %v4181_v27 = vpop.f32.mrf.mxu0  ;;  %v4186_v43 = vadd.f32 %v846_v14, %v783_v26  ;;  %v3267_v14 = vld [vmem:[%s4823_s1 + $0x24] sm:$0x3]  ;;  %v1509_v51 = vor.u32 %v4827_v52, %v1505_v62  ;;  %v1742_v62 = vshll.u32 %v4201_v3, 16 }
 0x124   : >> { %v2210_v7 = vsel %vm700_vm13, %v3267_v14, 0 }
 0x125   : >> { %v1176_v34 = vpop.f32.mrf.mxu2  ;;  %3205 = vmatmul.msk.bf16.gmra.mxu3 %vm684_vm15, %v1237_v30  ;;  %v1654_v30 = vrot.slane %v3397_v49, 1  ;;  %2219 = vmatpush.bf16.msra.mxu2 %v2210_v7  ;;  %v1736_v7 = vrot.slane %v1734_v42, 2  ;;  %v1744_v52 = vrot.slane %v1742_v62, 2 }
 0x126   : >> { %3212 = vmatmul.msk.bf16.gmra.mxu0 %vm684_vm15, %v1322_v28  ;;  %v1245_v28 = vor.u32 %v1244_v59, %v1241_v40 }
 0x127   : >> { %v1099_v31 = vpop.f32.mrf.mxu1 }
 0x128   : >> { %v904_v47 = vpop.f32.mrf.mxu3  ;;  %v1246_v59 = vsel %vm1213_vm1, %v1236_v61, %v1245_v28 }
 0x129   : >> { %v929_v2 = vadd.f32 %v904_v47, %v4131_v56  ;;  %v3261_v56 = vld [vmem:[%s4823_s1 + $0x22] sm:$0x3]  ;;  %v1739_v47 = vshrl.u32 %v4201_v3, 16 }
 0x12a   : >> { %v2121_v26 = vsel %vm700_vm13, %v3261_v56, 0  ;;  %v1733_v56 = vrot.slane %v1731_v9, 1  ;;  %v1844_v9 = vrot.slane %v4201_v3, 2 }
 0x12b   : >> { %v4197_v60 = vpop.f32.mrf.mxu0  ;;  %v1046_v46 = vadd.f32 %v1021_v37, %v929_v2  ;;  %v2046_v37 = vsel %vm700_vm13, %v3255_v4, 0  ;;  %2130 = vmatpush.bf16.msra.mxu1 %v2121_v26  ;;  %v1741_v54 = vrot.slane %v1739_v47, 1 }
 0x12c   : >> { %2055 = vmatpush.bf16.msra.mxu0 %v2046_v37 }
 0x12d   : >> { %v1178_v0 = vpop.f32.mrf.mxu2  ;;  %v1122_v29 = vadd.f32 %v1097_v55, %v1046_v46  ;;  %v1656_v55 = vsel %vm787_vm2, %v1654_v30, %v1655_v44 }
 0x12f   : >> { %v1102_v45 = vpop.f32.mrf.mxu1  ;;  %v4222_v2 = vadd.f32 %v1176_v34, %v1122_v29  ;;  %v1843_v29 = vrot.slane %v3397_v49, 2  ;;  %v1575_v49 = vrot.slane %v4072_v38, 1 }
 0x130   : >> { %v906_v14 = vpop.f32.mrf.mxu3 }
 0x131   : >> { %v930_v40 = vadd.f32 %v906_v14, %v4144_v12  ;;  %v1737_v12 = vor.u32 %v1736_v7, %v1733_v56 }
 0x132   : >> { %3218 = vmatmul.msk.bf16.gmra.mxu1 %vm684_vm15, %v4156_v48  ;;  %3224 = vmatmul.msk.bf16.gmra.mxu2 %vm684_vm15, %v1509_v51  ;;  %v1745_v51 = vor.u32 %v1744_v52, %v1741_v54 }
 0x133   : >> { %v1031_v4 = vpop.f32.mrf.mxu0  ;;  %v1047_v37 = vadd.f32 %v4172_v33, %v930_v40  ;;  %v4238_v40 = vld [vmem:[%s3885_s11 + $0x48] sm:$0xff]  }
 0x134   : >> { %v1746_v33 = vsel %vm944_vm14, %v1737_v12, %v1745_v51  ;;  %v1657_v54 = vrot.slane %v4238_v40, 1  ;;  %v1748_v3 = vshrl.u32 %v4238_v40, 16 }
 0x135   : >> { %v1181_v26 = vpop.f32.mrf.mxu2  ;;  %3206 = vmatmul.msk.bf16.gmra.mxu3 %vm684_vm15, %v1246_v59  ;;  %v1123_v34 = vadd.f32 %v1099_v31, %v1047_v37  ;;  %v1845_v31 = vsel %vm1058_vm0, %v1843_v29, %v1844_v9 }
 0x136   : >> { %3232 = vmatmul.msk.bf16.vlgmr.msrb.gmra.mxu0 %vm684_vm15, %v1656_v55  ;;  %v1658_v7 = vsel %vm787_vm2, %v1655_v44, %v1657_v54 }
 0x137   : >> { %v1104_v46 = vpop.f32.mrf.mxu1  ;;  %v4231_v61 = vadd.f32 %v1178_v0, %v1123_v34  ;;  %v1751_v0 = vshll.u32 %v4238_v40, 16 }
 0x138   : >> { %v909_v28 = vpop.f32.mrf.mxu3 }
 0x139   : >> { %v931_v30 = vadd.f32 %v909_v28, %v4099_v1  ;;  %v1574_v1 = vrot.slane %v4078_v8, 1  ;;  %v1750_v8 = vrot.slane %v1748_v3, 1  ;;  %v1753_v34 = vrot.slane %v1751_v0, 2  ;;  %v4262_v3 = vld [vmem:[%s3885_s11 + $0x50] sm:$0xff]  }
 0x13b   : >> { %v1033_v42 = vpop.f32.mrf.mxu0  ;;  %v1048_v62 = vadd.f32 %v4181_v27, %v931_v30  ;;  %v1754_v30 = vor.u32 %v1753_v34, %v1750_v8 }
 0x13d   : >> { %v1183_v14 = vpop.f32.mrf.mxu2  ;;  %v1124_v52 = vadd.f32 %v1102_v45, %v1048_v62  ;;  %v1576_v45 = vsel %vm787_vm2, %v1574_v1, %v1575_v49 }
 0x13f   : >> { %v1107_v47 = vpop.f32.mrf.mxu1  ;;  %v4247_v59 = vadd.f32 %v1181_v26, %v1124_v52  ;;  %v1755_v52 = vsel %vm944_vm14, %v1745_v51, %v1754_v30 }
 0x140   : >> { %v911_v27 = vpop.f32.mrf.mxu3 }
 0x141   : >> { %v932_v55 = vadd.f32 %v911_v27, %v4111_v36  ;;  %v1577_v27 = vrot.slane %v4097_v11, 1 }
 0x142   : >> { %3238 = vmatmul.msk.bf16.vlgmr.msrb.gmra.mxu1 %vm684_vm15, %v1746_v33  ;;  %3244 = vmatmul.msk.bf16.vlgmr.msrb.gmra.mxu2 %vm684_vm15, %v1845_v31  ;;  %v1846_v33 = vrot.slane %v4238_v40, 2  ;;  %v1760_v40 = vshll.u32 %v4262_v3, 16 }
 0x143   : >> { %v1036_v56 = vpop.f32.mrf.mxu0  ;;  %v1049_v12 = vadd.f32 %v4197_v60, %v932_v55 }
 0x144   : >> { %v1847_v0 = vsel %vm1058_vm0, %v1844_v9, %v1846_v33  ;;  %v1762_v34 = vrot.slane %v1760_v40, 2 }
 0x145   : >> { %v1186_v28 = vpop.f32.mrf.mxu2  ;;  %3226 = vmatmul.msk.bf16.vlgmr.msrb.gmra.mxu3 %vm684_vm15, %v1576_v45  ;;  %v1125_v26 = vadd.f32 %v1104_v46, %v1049_v12  ;;  %v1659_v46 = vrot.slane %v4262_v3, 1  ;;  %v1578_v45 = vsel %vm787_vm2, %v1575_v49, %v1577_v27 }
 0x146   : >> { %3233 = vmatmul.msk.bf16.gmra.mxu0 %vm684_vm15, %v1658_v7 }
 0x147   : >> { %v1109_v37 = vpop.f32.mrf.mxu1  ;;  %v4256_v29 = vadd.f32 %v1183_v14, %v1125_v26  ;;  %v1660_v9 = vsel %vm787_vm2, %v1657_v54, %v1659_v46  ;;  %v1848_v54 = vrot.slane %v4262_v3, 2 }
 0x148   : >> { %v914_v36 = vpop.f32.mrf.mxu3 }
 0x149   : >> { %v933_v44 = vadd.f32 %v914_v36, %v4120_v58  ;;  %v1757_v58 = vshrl.u32 %v4262_v3, 16  ;;  %v1849_v40 = vsel %vm1058_vm0, %v1846_v33, %v1848_v54 }
 0x14b   : >> { %v1038_v62 = vpop.f32.mrf.mxu0  ;;  %v1050_v1 = vadd.f32 %v1031_v4, %v933_v44 }
 0x14d   : >> { %v1188_v60 = vpop.f32.mrf.mxu2  ;;  %v1126_v14 = vadd.f32 %v1107_v47, %v1050_v1  ;;  %v1759_v47 = vrot.slane %v1757_v58, 1  ;;  %v4284_v58 = vld [vmem:[%s3885_s11 + $0x58] sm:$0xff]  }
 0x14e   : >> { %v1769_v3 = vshll.u32 %v4284_v58, 16 }
 0x14f   : >> { %v1112_v31 = vpop.f32.mrf.mxu1  ;;  %v4270_v55 = vadd.f32 %v1186_v28, %v1126_v14  ;;  %v1763_v36 = vor.u32 %v1762_v34, %v1759_v47 }
 0x150   : >> { %v916_v51 = vpop.f32.mrf.mxu3  ;;  %v1771_v34 = vrot.slane %v1769_v3, 2 }
 0x151   : >> { %v934_v4 = vadd.f32 %v916_v51, %v4135_v6  ;;  %v1579_v51 = vrot.slane %v4128_v63, 1 }
 0x152   : >> { %3239 = vmatmul.msk.bf16.gmra.mxu1 %vm684_vm15, %v1755_v52  ;;  %3245 = vmatmul.msk.bf16.gmra.mxu2 %vm684_vm15, %v1847_v0  ;;  %v1764_v0 = vsel %vm944_vm14, %v1754_v30, %v1763_v36 }
 0x153   : >> { %v1041_v7 = vpop.f32.mrf.mxu0  ;;  %v1051_v12 = vadd.f32 %v1033_v42, %v934_v4 }
 0x155   : >> { %v1191_v26 = vpop.f32.mrf.mxu2  ;;  %3227 = vmatmul.msk.bf16.gmra.mxu3 %vm684_vm15, %v1578_v45  ;;  %v1127_v28 = vadd.f32 %v1109_v37, %v1051_v12  ;;  %v1661_v37 = vrot.slane %v4284_v58, 1  ;;  %v1580_v45 = vsel %vm787_vm2, %v1577_v27, %v1579_v51  ;;  %v3145_v27 = vld [vmem:[%s3885_s11 + $0x60] sm:$0xf] }
 0x156   : >> { %3234 = vmatmul.msk.bf16.gmra.mxu0 %vm684_vm15, %v1660_v9  ;;  %v4306_v3 = vunpack.c.l.b16 %v3145_v27 }
 0x157   : >> { %v1114_v8 = vpop.f32.mrf.mxu1  ;;  %v4278_v44 = vadd.f32 %v1188_v60, %v1127_v28  ;;  %v1662_v33 = vsel %vm787_vm2, %v1659_v46, %v1661_v37  ;;  %v1850_v46 = vrot.slane %v4284_v58, 2 }
 0x158   : >> { %v919_v6 = vpop.f32.mrf.mxu3 }
 0x159   : >> { %v935_v52 = vadd.f32 %v919_v6, %v4148_v32  ;;  %v1766_v32 = vshrl.u32 %v4284_v58, 16 }
 0x15b   : >> { %v1043_v49 = vpop.f32.mrf.mxu0  ;;  %v1052_v14 = vadd.f32 %v1036_v56, %v935_v52  ;;  %v1768_v47 = vrot.slane %v1766_v32, 1 }
 0x15d   : >> { %v1193_v42 = vpop.f32.mrf.mxu2  ;;  %v1128_v60 = vadd.f32 %v1112_v31, %v1052_v14  ;;  %v1772_v6 = vor.u32 %v1771_v34, %v1768_v47 }
 0x15f   : >> { %v1117_v1 = vpop.f32.mrf.mxu1  ;;  %v4292_v4 = vadd.f32 %v1191_v26, %v1128_v60  ;;  %v1773_v60 = vsel %vm944_vm14, %v1763_v36, %v1772_v6 }
 0x160   : >> { %v921_v30 = vpop.f32.mrf.mxu3 }
 0x161   : >> { %v936_v56 = vadd.f32 %v921_v30, %v4160_v53  ;;  %v1851_v30 = vsel %vm1058_vm0, %v1848_v54, %v1850_v46 }
 0x162   : >> { %3240 = vmatmul.msk.bf16.gmra.mxu1 %vm684_vm15, %v1764_v0  ;;  %3246 = vmatmul.msk.bf16.gmra.mxu2 %vm684_vm15, %v1849_v40 }
 0x163   : >> { %v1350_v9 = vpop.f32.mrf.mxu0  ;;  %v1053_v12 = vadd.f32 %v1038_v62, %v936_v56 }
 0x165   : >> { %v1196_v28 = vpop.f32.mrf.mxu2  ;;  %3228 = vmatmul.msk.bf16.gmra.mxu3 %vm684_vm15, %v1580_v45  ;;  %v1129_v26 = vadd.f32 %v1114_v8, %v1053_v12 }
 0x166   : >> { %3235 = vmatmul.msk.bf16.gmra.mxu0 %vm684_vm15, %v1662_v33  ;;  %v1729_v33 = vpack.c.b16 %v4306_v3, %v4306_v3 }
 0x167   : >> { %v1119_v31 = vpop.f32.mrf.mxu1  ;;  %v4300_v52 = vadd.f32 %v1193_v42, %v1129_v26  ;;  %v1581_v42 = vrot.slane %v4156_v48, 1 }
 0x168   : >> { %v924_v53 = vpop.f32.mrf.mxu3  ;;  %v1775_v54 = vshll.u32 %v1729_v33, 16 }
 0x169   : >> { %v937_v0 = vadd.f32 %v924_v53, %v4174_v41  ;;  %v1582_v45 = vsel %vm787_vm2, %v1579_v51, %v1581_v42 }
 0x16b   : >> { %v1352_v14 = vpop.f32.mrf.mxu0  ;;  %v1054_v62 = vadd.f32 %v1041_v7, %v937_v0  ;;  %v1852_v0 = vrot.slane %v1729_v33, 2 }
 0x16d   : >> { %v1198_v32 = vpop.f32.mrf.mxu2  ;;  %v1130_v8 = vadd.f32 %v1117_v1, %v1054_v62  ;;  %v2003_v1 = vsel %vm1213_vm1, %v1999_v57, %v4109_v35  ;;  %v3291_v62 = vld [vmem:[%s4823_s1 + $0x2c] sm:$0x3] }
 0x16f   : >> { %v1439_v40 = vpop.f32.mrf.mxu1  ;;  %v4311_v56 = vadd.f32 %v1196_v28, %v1130_v8  ;;  %v1777_v28 = vrot.slane %v1775_v54, 2 }
 0x170   : >> { %v926_v41 = vpop.f32.mrf.mxu3 }
 0x171   : >> { %v938_v7 = vadd.f32 %v926_v41, %v4186_v43  ;;  %v3273_v43 = vld [vmem:[%s4823_s1 + $0x26] sm:$0x3]  ;;  %v1778_v5 = vsel %vm944_vm14, %v1772_v6, %v1777_v28 }
 0x172   : >> { %3241 = vmatmul.msk.bf16.gmra.mxu1 %vm684_vm15, %v1773_v60  ;;  %3247 = vmatmul.msk.bf16.gmra.mxu2 %vm684_vm15, %v1851_v30  ;;  %v2308_v51 = vsel %vm700_vm13, %v3273_v43, 0 }
 0x173   : >> { %v1355_v36 = vpop.f32.mrf.mxu0  ;;  %v1055_v34 = vadd.f32 %v1043_v49, %v938_v7  ;;  %2317 = vmatpush.bf16.msrb.mxu3 %v2308_v51 }
 0x175   : >> { %v1537_v12 = vpop.f32.mrf.mxu2  ;;  %3229 = vmatmul.msk.bf16.gmra.mxu3 %vm684_vm15, %v1582_v45  ;;  %v1131_v26 = vadd.f32 %v1119_v31, %v1055_v34  ;;  %v3279_v31 = vld [vmem:[%s4823_s1 + $0x28] sm:$0x3] }
 0x176   : >> { %3236 = vmatmul.msk.bf16.gmra.mxu0 %vm684_vm15, %v1661_v37  ;;  %v2381_v30 = vsel %vm700_vm13, %v3279_v31, 0 }
 0x177   : >> { %v1441_v47 = vpop.f32.mrf.mxu1  ;;  %v4329_v53 = vadd.f32 %v1198_v32, %v1131_v26  ;;  %v3285_v32 = vld [vmem:[%s4823_s1 + $0x2a] sm:$0x3]  ;;  %2390 = vmatpush.bf16.msrb.mxu0 %v2381_v30 }
 0x178   : >> { %v1274_v49 = vpop.f32.mrf.mxu3  ;;  %v2461_v6 = vsel %vm700_vm13, %v3285_v32, 0 }
 0x179   : >> { %v1299_v37 = vadd.f32 %v1274_v49, %v4222_v2  ;;  %v2577_v2 = vsel %vm700_vm13, %v3291_v62, 0  ;;  %2470 = vmatpush.bf16.msrb.mxu1 %v2461_v6  ;;  %v2005_v49 = vrot.slane %v1496_v23, 3 }
 0x17a   : >> { %2586 = vmatpush.bf16.msrb.mxu2 %v2577_v2 }
 0x17b   : >> { %v1357_v27 = vpop.f32.mrf.mxu0  ;;  %v1375_v39 = vadd.f32 %v1350_v9, %v1299_v37  ;;  %v1853_v9 = vsel %vm1058_vm0, %v1850_v46, %v1852_v0  ;;  %v4364_v0 = vld [vmem:[%s3885_s11 + $0x68] sm:$0xff]  }
 0x17d   : >> { %v1539_v57 = vpop.f32.mrf.mxu2  ;;  %v1464_v8 = vadd.f32 %v1439_v40, %v1375_v39  ;;  %v2094_v40 = vrot.slane %v4072_v38, 3 }
 0x17f   : >> { %v1444_v60 = vpop.f32.mrf.mxu1  ;;  %v4347_v41 = vadd.f32 %v1537_v12, %v1464_v8  ;;  %v2095_v12 = vrot.slane %v4097_v11, 3 }
 0x180   : >> { %v1276_v33 = vpop.f32.mrf.mxu3 }
 0x181   : >> { %v1300_v7 = vadd.f32 %v1276_v33, %v4231_v61 }
 0x182   : >> { %3242 = vmatmul.msk.bf16.gmra.mxu1 %vm684_vm15, %v1778_v5  ;;  %3248 = vmatmul.msk.bf16.gmra.mxu2 %vm684_vm15, %v1853_v9 }
 0x183   : >> { %v1360_v45 = vpop.f32.mrf.mxu0  ;;  %v1376_v34 = vadd.f32 %v1352_v14, %v1300_v7  ;;  %v2004_v14 = vrot.slane %v1500_v50, 2 }
 0x185   : >> { %v1542_v43 = vpop.f32.mrf.mxu2  ;;  %3230 = vmatmul.msk.bf16.gmra.mxu3 %vm684_vm15, %v1581_v42  ;;  %v1465_v46 = vadd.f32 %v1441_v47, %v1376_v34  ;;  %v2096_v42 = vsel %vm1311_vm7, %v2094_v40, %v2095_v12  ;;  %v2006_v5 = vor.u32 %v2005_v49, %v2004_v14  ;;  %v1925_v14 = vrot.slane %v4128_v63, 2 }
 0x186   : >> { %3256 = vmatmul.msk.bf16.vlgmr.msra.gmra.mxu0 %vm684_vm15, %v2003_v1 }
 0x187   : >> { %v1446_v54 = vpop.f32.mrf.mxu1  ;;  %v4355_v28 = vadd.f32 %v1539_v57, %v1465_v46  ;;  %v1923_v57 = vrot.slane %v4097_v11, 2  ;;  %v2007_v31 = vsel %vm1213_vm1, %v4109_v35, %v2006_v5  ;;  %v2097_v11 = vrot.slane %v4128_v63, 3 }
 0x188   : >> { %v1279_v51 = vpop.f32.mrf.mxu3  ;;  %v4850_v35 = vshrl.u32 %v4156_v48, 16 }
 0x189   : >> { %v1301_v26 = vadd.f32 %v1279_v51, %v4247_v59  ;;  %v1922_v59 = vrot.slane %v4072_v38, 2  ;;  %v4390_v51 = vld [vmem:[%s3885_s11 + $0x70] sm:$0xff]  }
 0x18a   : >> { %v2008_v33 = vrot.slane %v4850_v35, 2  ;;  %v4415_v35 = vld [vmem:[%s3885_s11 + $0x78] sm:$0xff]  }
 0x18b   : >> { %v1362_v61 = vpop.f32.mrf.mxu0  ;;  %v1377_v47 = vadd.f32 %v1355_v36, %v1301_v26  ;;  %v1924_v32 = vsel %vm1058_vm0, %v1922_v59, %v1923_v57 }
 0x18d   : >> { %v1544_v37 = vpop.f32.mrf.mxu2  ;;  %v1466_v39 = vadd.f32 %v1444_v60, %v1377_v47 }
 0x18f   : >> { %v1449_v1 = vpop.f32.mrf.mxu1  ;;  %v4369_v62 = vadd.f32 %v1542_v43, %v1466_v39  ;;  %v2098_v43 = vsel %vm1311_vm7, %v2095_v12, %v2097_v11 }
 0x190   : >> { %v1281_v50 = vpop.f32.mrf.mxu3 }
 0x191   : >> { %v1302_v23 = vadd.f32 %v1281_v50, %v4256_v29 }
 0x192   : >> { %3262 = vmatmul.msk.bf16.vlgmr.msra.gmra.mxu1 %vm684_vm15, %v2096_v42  ;;  %3268 = vmatmul.msk.bf16.vlgmr.msra.gmra.mxu2 %vm684_vm15, %v4364_v0 }
 0x193   : >> { %v1365_v36 = vpop.f32.mrf.mxu0  ;;  %v1378_v60 = vadd.f32 %v1357_v27, %v1302_v23  ;;  %v4851_v27 = vshll.u32 %v4156_v48, 16 }
 0x195   : >> { %v1547_v30 = vpop.f32.mrf.mxu2  ;;  %3250 = vmatmul.msk.bf16.vlgmr.msra.gmra.mxu3 %vm684_vm15, %v1924_v32  ;;  %v1467_v38 = vadd.f32 %v1446_v54, %v1378_v60  ;;  %v2009_v7 = vrot.slane %v4851_v27, 3  ;;  %v3367_v54 = vunpack.c.h.b16 %v4284_v58 }
 0x196   : >> { %3257 = vmatmul.msk.bf16.gmra.mxu0 %vm684_vm15, %v2007_v31 }
 0x197   : >> { %v1451_v2 = vpop.f32.mrf.mxu1  ;;  %v4380_v6 = vadd.f32 %v1544_v37, %v1467_v38  ;;  %v2010_v26 = vor.u32 %v2009_v7, %v2008_v33  ;;  %v4399_v12 = vpack.c.b16 %v4306_v3, %v3367_v54  ;;  %v1926_v37 = vsel %vm1058_vm0, %v1923_v57, %v1925_v14  ;;  %v3146_v38 = vld [vmem:[%s3885_s11 + $0x64] sm:$0x3] }
 0x198   : >> { %v1284_v29 = vpop.f32.mrf.mxu3  ;;  %v1919_v33 = vunpack.c.l.b16 %v3146_v38  ;;  %v1927_v7 = vrot.slane %v4156_v48, 2 }
 0x199   : >> { %v1303_v9 = vadd.f32 %v1284_v29, %v4270_v55  ;;  %v2011_v47 = vsel %vm1213_vm1, %v2006_v5, %v2010_v26  ;;  %v2013_v59 = vshrl.u32 %v4399_v12, 16  ;;  %v2016_v3 = vshll.u32 %v4399_v12, 16 }
 0x19a   : >> { %v1928_v54 = vsel %vm1058_vm0, %v1925_v14, %v1927_v7 }
 0x19b   : >> { %v1367_v8 = vpop.f32.mrf.mxu0  ;;  %v1379_v46 = vadd.f32 %v1360_v45, %v1303_v9  ;;  %v2015_v31 = vrot.slane %v2013_v59, 2  ;;  %v2018_v32 = vrot.slane %v2016_v3, 3 }
 0x19d   : >> { %v1549_v40 = vpop.f32.mrf.mxu2  ;;  %v1468_v55 = vadd.f32 %v1449_v1, %v1379_v46 }
 0x19f   : >> { %v1454_v34 = vpop.f32.mrf.mxu1  ;;  %v4394_v49 = vadd.f32 %v1547_v30, %v1468_v55 }
 0x1a0   : >> { %v1286_v42 = vpop.f32.mrf.mxu3 }
 0x1a1   : >> { %v1304_v45 = vadd.f32 %v1286_v42, %v4278_v44  ;;  %v2099_v44 = vrot.slane %v4156_v48, 3 }
 0x1a2   : >> { %3263 = vmatmul.msk.bf16.gmra.mxu1 %vm684_vm15, %v2098_v43  ;;  %3269 = vmatmul.msk.bf16.gmra.mxu2 %vm684_vm15, %v4390_v51 }
 0x1a3   : >> { %v1370_v58 = vpop.f32.mrf.mxu0  ;;  %v1380_v1 = vadd.f32 %v1362_v61, %v1304_v45  ;;  %v2100_v30 = vsel %vm1311_vm7, %v2097_v11, %v2099_v44 }
 0x1a5   : >> { %v1552_v63 = vpop.f32.mrf.mxu2  ;;  %3251 = vmatmul.msk.bf16.gmra.mxu3 %vm684_vm15, %v1926_v37  ;;  %v1469_v50 = vadd.f32 %v1451_v2, %v1380_v1  ;;  %v2019_v2 = vor.u32 %v2018_v32, %v2015_v31  ;;  %v1929_v31 = vrot.slane %v4399_v12, 2 }
 0x1a6   : >> { %3258 = vmatmul.msk.bf16.gmra.mxu0 %vm684_vm15, %v2011_v47  ;;  %v2101_v47 = vrot.slane %v4399_v12, 3  ;;  %v3297_v12 = vld [vmem:[%s4823_s1 + $0x2e] sm:$0x3] }
 0x1a7   : >> { %v1456_v39 = vpop.f32.mrf.mxu1  ;;  %v4409_v23 = vadd.f32 %v1549_v40, %v1469_v50  ;;  %v4425_v40 = vpack.c.b16 %v1919_v33, %v1919_v33 }
 0x1a8   : >> { %v1289_v5 = vpop.f32.mrf.mxu3  ;;  %v2102_v3 = vsel %vm1311_vm7, %v2099_v44, %v2101_v47  ;;  %v1930_v44 = vsel %vm1058_vm0, %v1927_v7, %v1929_v31 }
 0x1a9   : >> { %v1305_v57 = vadd.f32 %v1289_v5, %v4292_v4  ;;  %v2022_v48 = vshrl.u32 %v4425_v40, 16  ;;  %v2025_v45 = vshll.u32 %v4425_v40, 16 }
 0x1ab   : >> { %v1372_v61 = vpop.f32.mrf.mxu0  ;;  %v1381_v29 = vadd.f32 %v1365_v36, %v1305_v57  ;;  %v2020_v36 = vsel %vm1213_vm1, %v2010_v26, %v2019_v2  ;;  %v4440_v57 = vld [vmem:[%s3885_s11 + $0x80] sm:$0xff]  }
 0x1ad   : >> { %v1554_v9 = vpop.f32.mrf.mxu2  ;;  %v1470_v27 = vadd.f32 %v1454_v34, %v1381_v29 }
 0x1af   : >> { %v1459_v60 = vpop.f32.mrf.mxu1  ;;  %v4419_v43 = vadd.f32 %v1552_v63, %v1470_v27  ;;  %v2027_v63 = vrot.slane %v2025_v45, 3  ;;  %v4476_v45 = vld [vmem:[%s3885_s11 + $0x6c] sm:$0xff]  }
 0x1b0   : >> { %v1291_v4 = vpop.f32.mrf.mxu3 }
 0x1b1   : >> { %v1306_v11 = vadd.f32 %v1291_v4, %v4300_v52  ;;  %v2652_v4 = vsel %vm700_vm13, %v3297_v12, 0 }
 0x1b2   : >> { %3264 = vmatmul.msk.bf16.gmra.mxu1 %vm684_vm15, %v2100_v30  ;;  %3270 = vmatmul.msk.bf16.gmra.mxu2 %vm684_vm15, %v4415_v35 }
 0x1b3   : >> { %v1690_v46 = vpop.f32.mrf.mxu0  ;;  %v1382_v42 = vadd.f32 %v1367_v8, %v1306_v11  ;;  %v2024_v8 = vrot.slane %v2022_v48, 2  ;;  %2661 = vmatpush.bf16.msra.mxu3 %v2652_v4  ;;  %v3303_v48 = vld [vmem:[%s4823_s1 + $0x30] sm:$0x3] }
 0x1b5   : >> { %v1557_v34 = vpop.f32.mrf.mxu2  ;;  %3252 = vmatmul.msk.bf16.gmra.mxu3 %vm684_vm15, %v1928_v54  ;;  %v1471_v52 = vadd.f32 %v1456_v39, %v1382_v42  ;;  %v2028_v39 = vor.u32 %v2027_v63, %v2024_v8  ;;  %v4487_v8 = vld [vmem:[%s3885_s11 + $0x74] sm:$0xff]   ;;  %v2357_v63 = vrot.slane %v4390_v51, 1 }
 0x1b6   : >> { %3259 = vmatmul.msk.bf16.gmra.mxu0 %vm684_vm15, %v2020_v36 }
 0x1b7   : >> { %v1461_v55 = vpop.f32.mrf.mxu1  ;;  %v4433_v26 = vadd.f32 %v1554_v9, %v1471_v52 }
 0x1b8   : >> { %v1294_v37 = vpop.f32.mrf.mxu3 }
 0x1b9   : >> { %v1307_v14 = vadd.f32 %v1294_v37, %v4311_v56  ;;  %v2356_v37 = vrot.slane %v4364_v0, 1 }
 0x1bb   : >> { %v4436_v1 = vpop.f32.mrf.mxu0  ;;  %v1383_v50 = vadd.f32 %v1370_v58, %v1307_v14  ;;  %v2029_v58 = vsel %vm1213_vm1, %v2019_v2, %v2028_v39  ;;  %v4483_v14 = vld [vmem:[%s3885_s11 + $0x88] sm:$0xff]  }
 0x1bd   : >> { %v1559_v5 = vpop.f32.mrf.mxu2  ;;  %v1472_v32 = vadd.f32 %v1459_v60, %v1383_v50  ;;  %v1931_v50 = vrot.slane %v4425_v40, 2 }
 0x1bf   : >> { %v1806_v59 = vpop.f32.mrf.mxu1  ;;  %v4446_v56 = vadd.f32 %v1557_v34, %v1472_v32  ;;  %v2513_v32 = vshrl.u32 %v4476_v45, 16 }
 0x1c0   : >> { %v1296_v30 = vpop.f32.mrf.mxu3 }
 0x1c1   : >> { %v1308_v38 = vadd.f32 %v1296_v30, %v4329_v53  ;;  %v2103_v53 = vrot.slane %v4425_v40, 3  ;;  %v2516_v30 = vshll.u32 %v4476_v45, 16  ;;  %v2524_v40 = vshll.u32 %v4487_v8, 16 }
 0x1c2   : >> { %3265 = vmatmul.msk.bf16.gmra.mxu1 %vm684_vm15, %v2102_v3  ;;  %3271 = vmatmul.msk.bf16.gmra.mxu2 %vm684_vm15, %v4440_v57 }
 0x1c3   : >> { %v4449_v29 = vpop.f32.mrf.mxu0  ;;  %v1384_v33 = vadd.f32 %v1372_v61, %v1308_v38  ;;  %v2104_v54 = vsel %vm1311_vm7, %v2101_v47, %v2103_v53  ;;  %v2731_v47 = vsel %vm700_vm13, %v3303_v48, 0  ;;  %v2515_v53 = vrot.slane %v2513_v32, 1 }
 0x1c4   : >> { %2740 = vmatpush.bf16.msra.mxu0 %v2731_v47 }
 0x1c5   : >> { %v1881_v27 = vpop.f32.mrf.mxu2  ;;  %3253 = vmatmul.msk.bf16.gmra.mxu3 %vm684_vm15, %v1930_v44  ;;  %v1473_v60 = vadd.f32 %v1461_v55, %v1384_v33  ;;  %v3315_v55 = vld [vmem:[%s4823_s1 + $0x34] sm:$0x3]  ;;  %v2358_v44 = vsel %vm787_vm2, %v2356_v37, %v2357_v63  ;;  %v1932_v33 = vsel %vm1058_vm0, %v1929_v31, %v1931_v50  ;;  %v2264_v50 = vshll.u32 %v4390_v51, 16 }
 0x1c6   : >> { %3260 = vmatmul.msk.bf16.gmra.mxu0 %vm684_vm15, %v2029_v58  ;;  %v2903_v52 = vsel %vm700_vm13, %v3315_v55, 0 }
 0x1c7   : >> { %v1808_v9 = vpop.f32.mrf.mxu1  ;;  %v4460_v2 = vadd.f32 %v1559_v5, %v1473_v60  ;;  %2912 = vmatpush.bf16.msra.mxu2 %v2903_v52 }
 0x1c8   : >> { %v1610_v61 = vpop.f32.mrf.mxu3 }
 0x1c9   : >> { %v1635_v7 = vadd.f32 %v1610_v61, %v4347_v41  ;;  %v3309_v41 = vld [vmem:[%s4823_s1 + $0x32] sm:$0x3]  ;;  %v2526_v61 = vrot.slane %v2524_v40, 2 }
 0x1cb   : >> { %v4463_v11 = vpop.f32.mrf.mxu0  ;;  %v1715_v42 = vadd.f32 %v1690_v46, %v1635_v7  ;;  %v2828_v46 = vsel %vm700_vm13, %v3309_v41, 0  ;;  %v2260_v7 = vshll.u32 %v4364_v0, 16 }
 0x1cc   : >> { %2837 = vmatpush.bf16.msra.mxu1 %v2828_v46  ;;  %v2258_v46 = vshrl.u32 %v4364_v0, 16  ;;  %v2266_v0 = vrot.slane %v2264_v50, 1 }
 0x1cd   : >> { %v1883_v34 = vpop.f32.mrf.mxu2  ;;  %v1831_v3 = vadd.f32 %v1806_v59, %v1715_v42  ;;  %v2521_v59 = vshrl.u32 %v4487_v8, 16  ;;  %v2437_v42 = vrot.slane %v4487_v8, 1  ;;  %v2262_v37 = vrot.slane %v2260_v7, 1 }
 0x1cf   : >> { %v1811_v36 = vpop.f32.mrf.mxu1  ;;  %v4491_v5 = vadd.f32 %v1881_v27, %v1831_v3  ;;  %v2523_v4 = vrot.slane %v2521_v59, 1  ;;  %v2263_v59 = vor.u32 %v2262_v37, %v2258_v46 }
 0x1d0   : >> { %v1612_v39 = vpop.f32.mrf.mxu3 }
 0x1d1   : >> { %v1636_v38 = vadd.f32 %v1612_v39, %v4355_v28  ;;  %v2518_v28 = vrot.slane %v2516_v30, 2  ;;  %v2527_v52 = vor.u32 %v2526_v61, %v2523_v4 }
 0x1d2   : >> { %3266 = vmatmul.msk.bf16.gmra.mxu1 %vm684_vm15, %v2104_v54  ;;  %3272 = vmatmul.msk.bf16.gmra.mxu2 %vm684_vm15, %v4483_v14  ;;  %v2436_v54 = vrot.slane %v4476_v45, 1 }
 0x1d3   : >> { %v4498_v58 = vpop.f32.mrf.mxu0  ;;  %v1716_v12 = vadd.f32 %v4436_v1, %v1636_v38  ;;  %v2519_v41 = vor.u32 %v2518_v28, %v2515_v53 }
 0x1d4   : >> { %v2438_v39 = vsel %vm787_vm2, %v2436_v54, %v2437_v42 }
 0x1d5   : >> { %v1886_v60 = vpop.f32.mrf.mxu2  ;;  %3254 = vmatmul.msk.bf16.gmra.mxu3 %vm684_vm15, %v1932_v33  ;;  %v1832_v55 = vadd.f32 %v1808_v9, %v1716_v12  ;;  %v2528_v30 = vsel %vm944_vm14, %v2519_v41, %v2527_v52 }
 0x1d6   : >> { %3280 = vmatmul.msk.bf16.vlgmr.msrb.gmra.mxu0 %vm684_vm15, %v2358_v44 }
 0x1d7   : >> { %v1813_v27 = vpop.f32.mrf.mxu1  ;;  %v4510_v48 = vadd.f32 %v1883_v34, %v1832_v55  ;;  %v4520_v34 = vld [vmem:[%s3885_s11 + $0x7c] sm:$0xff]  }
 0x1d8   : >> { %v1615_v31 = vpop.f32.mrf.mxu3  ;;  %v2530_v12 = vshrl.u32 %v4520_v34, 16  ;;  %v2533_v53 = vshll.u32 %v4520_v34, 16  ;;  %v2439_v55 = vrot.slane %v4520_v34, 1 }
 0x1d9   : >> { %v1637_v1 = vadd.f32 %v1615_v31, %v4369_v62  ;;  %v2359_v62 = vrot.slane %v4415_v35, 1 }
 0x1da   : >> { %v2535_v54 = vrot.slane %v2533_v53, 2 }
 0x1db   : >> { %v1702_v47 = vpop.f32.mrf.mxu0  ;;  %v1717_v32 = vadd.f32 %v4449_v29, %v1637_v1  ;;  %v2360_v28 = vsel %vm787_vm2, %v2357_v63, %v2359_v62 }
 0x1dd   : >> { %v1888_v9 = vpop.f32.mrf.mxu2  ;;  %v1833_v38 = vadd.f32 %v1811_v36, %v1717_v32  ;;  %v2267_v36 = vsel %vm644_vm9, %v2263_v59, %v2266_v0  ;;  %v2440_v32 = vsel %vm787_vm2, %v2437_v42, %v2439_v55 }
 0x1df   : >> { %v1816_v3 = vpop.f32.mrf.mxu1  ;;  %v4525_v40 = vadd.f32 %v1886_v60, %v1833_v38  ;;  %v2532_v60 = vrot.slane %v2530_v12, 1 }
 0x1e0   : >> { %v1617_v44 = vpop.f32.mrf.mxu3 }
 0x1e1   : >> { %v1638_v29 = vadd.f32 %v1617_v44, %v4380_v6  ;;  %v2536_v41 = vor.u32 %v2535_v54, %v2532_v60 }
 0x1e2   : >> { %3286 = vmatmul.msk.bf16.vlgmr.msrb.gmra.mxu1 %vm684_vm15, %v2438_v39  ;;  %3292 = vmatmul.msk.bf16.vlgmr.msrb.gmra.mxu2 %vm684_vm15, %v2528_v30  ;;  %v2271_v39 = vshll.u32 %v4415_v35, 16 }
 0x1e3   : >> { %v1705_v33 = vpop.f32.mrf.mxu0  ;;  %v1718_v61 = vadd.f32 %v4463_v11, %v1638_v29  ;;  %v2268_v11 = vshrl.u32 %v4390_v51, 16 }
 0x1e4   : >> { %v2273_v29 = vrot.slane %v2271_v39, 1 }
 0x1e5   : >> { %v1891_v7 = vpop.f32.mrf.mxu2  ;;  %3274 = vmatmul.msk.bf16.vlgmr.msrb.gmra.mxu3 %vm684_vm15, %v2267_v36  ;;  %v1834_v6 = vadd.f32 %v1813_v27, %v1718_v61  ;;  %v2537_v27 = vsel %vm944_vm14, %v2527_v52, %v2536_v41  ;;  %v2270_v44 = vor.u32 %v2268_v11, %v2266_v0 }
 0x1e6   : >> { %3281 = vmatmul.msk.bf16.gmra.mxu0 %vm684_vm15, %v2360_v28 }
 0x1e7   : >> { %v1818_v4 = vpop.f32.mrf.mxu1  ;;  %v4537_v31 = vadd.f32 %v1888_v9, %v1834_v6  ;;  %v4547_v9 = vld [vmem:[%s3885_s11 + $0x84] sm:$0xff]   ;;  %v2274_v36 = vsel %vm644_vm9, %v2270_v44, %v2273_v29 }
 0x1e8   : >> { %v1620_v1 = vpop.f32.mrf.mxu3  ;;  %v2539_v53 = vshrl.u32 %v4547_v9, 16  ;;  %v2542_v28 = vshll.u32 %v4547_v9, 16  ;;  %v2441_v6 = vrot.slane %v4547_v9, 1 }
 0x1e9   : >> { %v1639_v63 = vadd.f32 %v1620_v1, %v4394_v49  ;;  %v2361_v49 = vrot.slane %v4440_v57, 1 }
 0x1ea   : >> { %v2544_v54 = vrot.slane %v2542_v28, 2  ;;  %v2442_v44 = vsel %vm787_vm2, %v2439_v55, %v2441_v6 }
 0x1eb   : >> { %v1707_v46 = vpop.f32.mrf.mxu0  ;;  %v1719_v30 = vadd.f32 %v4498_v58, %v1639_v63 }
 0x1ed   : >> { %v1893_v38 = vpop.f32.mrf.mxu2  ;;  %v1835_v59 = vadd.f32 %v1816_v3, %v1719_v30  ;;  %v2362_v3 = vsel %vm787_vm2, %v2359_v62, %v2361_v49 }
 0x1ef   : >> { %v1821_v37 = vpop.f32.mrf.mxu1  ;;  %v4554_v12 = vadd.f32 %v1891_v7, %v1835_v59  ;;  %v2541_v7 = vrot.slane %v2539_v53, 1  ;;  %v2278_v59 = vshll.u32 %v4440_v57, 16  ;;  %v2363_v53 = vrot.slane %v4483_v14, 1 }
 0x1f0   : >> { %v1622_v42 = vpop.f32.mrf.mxu3 }
 0x1f1   : >> { %v1640_v58 = vadd.f32 %v1622_v42, %v4409_v23 }
 0x1f2   : >> { %3287 = vmatmul.msk.bf16.gmra.mxu1 %vm684_vm15, %v2440_v32  ;;  %3293 = vmatmul.msk.bf16.gmra.mxu2 %vm684_vm15, %v2537_v27  ;;  %v2545_v32 = vor.u32 %v2544_v54, %v2541_v7 }
 0x1f3   : >> { %v1710_v52 = vpop.f32.mrf.mxu0  ;;  %v1720_v61 = vadd.f32 %v1702_v47, %v1640_v58  ;;  %v2275_v47 = vshrl.u32 %v4415_v35, 16 }
 0x1f5   : >> { %v1896_v60 = vpop.f32.mrf.mxu2  ;;  %3275 = vmatmul.msk.bf16.gmra.mxu3 %vm684_vm15, %v2274_v36  ;;  %v1836_v23 = vadd.f32 %v1818_v4, %v1720_v61  ;;  %v2546_v4 = vsel %vm944_vm14, %v2536_v41, %v2545_v32  ;;  %v2277_v28 = vor.u32 %v2275_v47, %v2273_v29 }
 0x1f6   : >> { %3282 = vmatmul.msk.bf16.gmra.mxu0 %vm684_vm15, %v2362_v3  ;;  %v2280_v3 = vrot.slane %v2278_v59, 1 }
 0x1f7   : >> { %v1823_v0 = vpop.f32.mrf.mxu1  ;;  %v4565_v1 = vadd.f32 %v1893_v38, %v1836_v23  ;;  %v4574_v38 = vld [vmem:[%s3885_s11 + $0x8c] sm:$0xff]  }
 0x1f8   : >> { %v1625_v63 = vpop.f32.mrf.mxu3  ;;  %v2548_v61 = vshrl.u32 %v4574_v38, 16  ;;  %v2551_v7 = vshll.u32 %v4574_v38, 16  ;;  %v2281_v54 = vsel %vm644_vm9, %v2277_v28, %v2280_v3 }
 0x1f9   : >> { %v1641_v62 = vadd.f32 %v1625_v63, %v4419_v43 }
 0x1fb   : >> { %v1712_v30 = vpop.f32.mrf.mxu0  ;;  %v1721_v42 = vadd.f32 %v1705_v33, %v1641_v62  ;;  %v2553_v62 = vrot.slane %v2551_v7, 2 }
 0x1fd   : >> { %v1898_v58 = vpop.f32.mrf.mxu2  ;;  %v1837_v43 = vadd.f32 %v1821_v37, %v1721_v42  ;;  %v2364_v37 = vsel %vm787_vm2, %v2361_v49, %v2363_v53 }
 0x1ff   : >> { %v1826_v27 = vpop.f32.mrf.mxu1  ;;  %v4581_v36 = vadd.f32 %v1896_v60, %v1837_v43  ;;  %v2550_v60 = vrot.slane %v2548_v61, 1 }
 0x200   : >> { %v1627_v55 = vpop.f32.mrf.mxu3 }
 0x201   : >> { %v1642_v33 = vadd.f32 %v1627_v55, %v4433_v26  ;;  %v2554_v43 = vor.u32 %v2553_v62, %v2550_v60 }
 0x202   : >> { %3288 = vmatmul.msk.bf16.gmra.mxu1 %vm684_vm15, %v2442_v44  ;;  %3294 = vmatmul.msk.bf16.gmra.mxu2 %vm684_vm15, %v2546_v4  ;;  %v2443_v44 = vrot.slane %v4574_v38, 1 }
 0x203   : >> { %v2057_v41 = vpop.f32.mrf.mxu0  ;;  %v1722_v23 = vadd.f32 %v1707_v46, %v1642_v33  ;;  %v2282_v46 = vshrl.u32 %v4440_v57, 16  ;;  %v4828_v33 = vshll.u32 %v4483_v14, 16  ;;  %v2555_v7 = vsel %vm944_vm14, %v2545_v32, %v2554_v43 }
 0x205   : >> { %v1901_v63 = vpop.f32.mrf.mxu2  ;;  %3276 = vmatmul.msk.bf16.gmra.mxu3 %vm684_vm15, %v2281_v54  ;;  %v1838_v26 = vadd.f32 %v1823_v0, %v1722_v23  ;;  %v4599_v54 = vld [vmem:[%s3885_s11 + $0x90] sm:$0xff]   ;;  %v2284_v23 = vor.u32 %v2282_v46, %v2280_v3  ;;  %v2287_v60 = vrot.slane %v4828_v33, 1 }
 0x206   : >> { %3283 = vmatmul.msk.bf16.gmra.mxu0 %vm684_vm15, %v2364_v37  ;;  %v2444_v37 = vsel %vm787_vm2, %v2441_v6, %v2443_v44 }
 0x207   : >> { %v1828_v29 = vpop.f32.mrf.mxu1  ;;  %v4592_v42 = vadd.f32 %v1898_v58, %v1838_v26  ;;  %v3391_v58 = vunpack.c.h.b16 %v4599_v54 }
 0x208   : >> { %v1630_v4 = vpop.f32.mrf.mxu3 }
 0x209   : >> { %v1643_v49 = vadd.f32 %v1630_v4, %v4446_v56  ;;  %v4612_v32 = vpack.c.b16 %v3391_v58, %v3391_v58  ;;  %v2288_v4 = vsel %vm644_vm9, %v2284_v23, %v2287_v60 }
 0x20b   : >> { %v2059_v28 = vpop.f32.mrf.mxu0  ;;  %v1723_v61 = vadd.f32 %v1710_v52, %v1643_v49  ;;  %v2557_v3 = vshll.u32 %v4612_v32, 16 }
 0x20d   : >> { %v1903_v0 = vpop.f32.mrf.mxu2  ;;  %v1839_v56 = vadd.f32 %v1826_v27, %v1723_v61 }
 0x20f   : >> { %v2132_v55 = vpop.f32.mrf.mxu1  ;;  %v4608_v62 = vadd.f32 %v1901_v63, %v1839_v56  ;;  %v2559_v56 = vrot.slane %v2557_v3, 2 }
 0x210   : >> { %v1632_v6 = vpop.f32.mrf.mxu3 }
 0x211   : >> { %v1644_v52 = vadd.f32 %v1632_v6, %v4460_v2 }
 0x212   : >> { %3289 = vmatmul.msk.bf16.gmra.mxu1 %vm684_vm15, %v2444_v37  ;;  %3295 = vmatmul.msk.bf16.gmra.mxu2 %vm684_vm15, %v2555_v7 }
 0x213   : >> { %v2062_v26 = vpop.f32.mrf.mxu0  ;;  %v1724_v27 = vadd.f32 %v1712_v30, %v1644_v52  ;;  %v2289_v30 = vshrl.u32 %v4483_v14, 16  ;;  %v2560_v52 = vsel %vm944_vm14, %v2554_v43, %v2559_v56 }
 0x215   : >> { %v2221_v37 = vpop.f32.mrf.mxu2  ;;  %3277 = vmatmul.msk.bf16.gmra.mxu3 %vm684_vm15, %v2288_v4  ;;  %v1840_v63 = vadd.f32 %v1828_v29, %v1724_v27  ;;  %v2705_v29 = vrot.slane %v4415_v35, 2 }
 0x216   : >> { %3284 = vmatmul.msk.bf16.gmra.mxu0 %vm684_vm15, %v2363_v53  ;;  %v2704_v53 = vrot.slane %v4390_v51, 2 }
 0x217   : >> { %v2134_v49 = vpop.f32.mrf.mxu1  ;;  %v4618_v61 = vadd.f32 %v1903_v0, %v1840_v63  ;;  %v2783_v63 = vrot.slane %v2271_v39, 3 }
 0x218   : >> { %v1960_v7 = vpop.f32.mrf.mxu3  ;;  %v2706_v43 = vsel %vm1058_vm0, %v2704_v53, %v2705_v29  ;;  %v2877_v53 = vrot.slane %v4415_v35, 3 }
 0x219   : >> { %v1985_v2 = vadd.f32 %v1960_v7, %v4491_v5 }
 0x21b   : >> { %v2064_v58 = vpop.f32.mrf.mxu0  ;;  %v2082_v33 = vadd.f32 %v2057_v41, %v1985_v2  ;;  %v2291_v41 = vor.u32 %v2289_v30, %v2287_v60 }
 0x21d   : >> { %v2223_v23 = vpop.f32.mrf.mxu2  ;;  %v2157_v0 = vadd.f32 %v2132_v55, %v2082_v33  ;;  %v2782_v55 = vrot.slane %v2275_v47, 2  ;;  %v2876_v47 = vrot.slane %v4390_v51, 3 }
 0x21f   : >> { %v2137_v6 = vpop.f32.mrf.mxu1  ;;  %v4626_v4 = vadd.f32 %v2221_v37, %v2157_v0  ;;  %v2780_v37 = vrot.slane %v2264_v50, 3  ;;  %v2784_v56 = vor.u32 %v2783_v63, %v2782_v55 }
 0x220   : >> { %v1962_v27 = vpop.f32.mrf.mxu3 }
 0x221   : >> { %v1986_v5 = vadd.f32 %v1962_v27, %v4510_v48 }
 0x222   : >> { %3290 = vmatmul.msk.bf16.gmra.mxu1 %vm684_vm15, %v2443_v44  ;;  %3296 = vmatmul.msk.bf16.gmra.mxu2 %vm684_vm15, %v2560_v52  ;;  %v2779_v44 = vrot.slane %v2268_v11, 2 }
 0x223   : >> { %v2067_v3 = vpop.f32.mrf.mxu0  ;;  %v2083_v48 = vadd.f32 %v2059_v28, %v1986_v5 }
 0x224   : >> { %v2781_v2 = vor.u32 %v2780_v37, %v2779_v44 }
 0x225   : >> { %v2226_v7 = vpop.f32.mrf.mxu2  ;;  %3278 = vmatmul.msk.bf16.gmra.mxu3 %vm684_vm15, %v2291_v41  ;;  %v2158_v60 = vadd.f32 %v2134_v49, %v2083_v48  ;;  %v2878_v41 = vsel %vm1311_vm7, %v2876_v47, %v2877_v53  ;;  %v2707_v49 = vrot.slane %v4440_v57, 2 }
 0x226   : >> { %3304 = vmatmul.msk.bf16.vlgmr.msra.gmra.mxu0 %vm684_vm15, %v2706_v43  ;;  %v2785_v28 = vsel %vm1213_vm1, %v2781_v2, %v2784_v56  ;;  %v2625_v43 = vrot.slane %v4476_v45, 2  ;;  %v2787_v45 = vrot.slane %v2278_v59, 3 }
 0x227   : >> { %v2139_v33 = vpop.f32.mrf.mxu1  ;;  %v4643_v11 = vadd.f32 %v2223_v23, %v2158_v60  ;;  %v2708_v63 = vsel %vm1058_vm0, %v2705_v29, %v2707_v49 }
 0x228   : >> { %v1965_v52 = vpop.f32.mrf.mxu3 }
 0x229   : >> { %v1987_v39 = vadd.f32 %v1965_v52, %v4525_v40  ;;  %v2626_v40 = vrot.slane %v4487_v8, 2  ;;  %v2879_v52 = vrot.slane %v4440_v57, 3 }
 0x22b   : >> { %v2069_v0 = vpop.f32.mrf.mxu0  ;;  %v2084_v27 = vadd.f32 %v2062_v26, %v1987_v39  ;;  %v2627_v55 = vsel %vm1058_vm0, %v2625_v43, %v2626_v40  ;;  %v2790_v43 = vrot.slane %v2289_v30, 2 }
 0x22d   : >> { %v2228_v5 = vpop.f32.mrf.mxu2  ;;  %v2159_v23 = vadd.f32 %v2137_v6, %v2084_v27  ;;  %v2786_v6 = vrot.slane %v2282_v46, 2 }
 0x22f   : >> { %v2142_v50 = vpop.f32.mrf.mxu1  ;;  %v4654_v51 = vadd.f32 %v2226_v7, %v2159_v23 }
 0x230   : >> { %v1967_v35 = vpop.f32.mrf.mxu3 }
 0x231   : >> { %v1988_v44 = vadd.f32 %v1967_v35, %v4537_v31  ;;  %v2788_v31 = vor.u32 %v2787_v45, %v2786_v6  ;;  %v2881_v6 = vrot.slane %v4483_v14, 3 }
 0x232   : >> { %3310 = vmatmul.msk.bf16.vlgmr.msra.gmra.mxu1 %vm684_vm15, %v2785_v28  ;;  %3316 = vmatmul.msk.bf16.vlgmr.msra.gmra.mxu2 %vm684_vm15, %v2878_v41  ;;  %v2880_v28 = vsel %vm1311_vm7, %v2877_v53, %v2879_v52 }
 0x233   : >> { %v2072_v26 = vpop.f32.mrf.mxu0  ;;  %v2085_v8 = vadd.f32 %v2064_v58, %v1988_v44  ;;  %v2789_v47 = vsel %vm1213_vm1, %v2784_v56, %v2788_v31 }
 0x235   : >> { %v2231_v48 = vpop.f32.mrf.mxu2  ;;  %3298 = vmatmul.msk.bf16.vlgmr.msra.gmra.mxu3 %vm684_vm15, %v2627_v55  ;;  %v2160_v7 = vadd.f32 %v2139_v33, %v2085_v8  ;;  %v2709_v33 = vrot.slane %v4483_v14, 2 }
 0x236   : >> { %3305 = vmatmul.msk.bf16.gmra.mxu0 %vm684_vm15, %v2708_v63 }
 0x237   : >> { %v2144_v37 = vpop.f32.mrf.mxu1  ;;  %v4666_v60 = vadd.f32 %v2228_v5, %v2160_v7  ;;  %v2628_v5 = vrot.slane %v4520_v34, 2  ;;  %v2882_v7 = vsel %vm1311_vm7, %v2879_v52, %v2881_v6 }
 0x238   : >> { %v1970_v29 = vpop.f32.mrf.mxu3 }
 0x239   : >> { %v1989_v2 = vadd.f32 %v1970_v29, %v4554_v12  ;;  %v2629_v56 = vsel %vm1058_vm0, %v2626_v40, %v2628_v5 }
 0x23b   : >> { %v2074_v39 = vpop.f32.mrf.mxu0  ;;  %v2086_v59 = vadd.f32 %v2067_v3, %v1989_v2  ;;  %v2710_v3 = vsel %vm1058_vm0, %v2707_v49, %v2709_v33  ;;  %v2630_v2 = vrot.slane %v4547_v9, 2 }
 0x23d   : >> { %v2233_v58 = vpop.f32.mrf.mxu2  ;;  %v2161_v27 = vadd.f32 %v2142_v50, %v2086_v59  ;;  %v4852_v50 = vshll.u32 %v4483_v14, 16  ;;  %v2798_v14 = vshll.u32 %v4599_v54, 16 }
 0x23f   : >> { %v2147_v46 = vpop.f32.mrf.mxu1  ;;  %v4675_v41 = vadd.f32 %v2231_v48, %v2161_v27  ;;  %v2791_v35 = vrot.slane %v4852_v50, 3  ;;  %v2800_v27 = vrot.slane %v2798_v14, 3 }
 0x240   : >> { %v1972_v12 = vpop.f32.mrf.mxu3 }
 0x241   : >> { %v1990_v57 = vadd.f32 %v1972_v12, %v4565_v1  ;;  %v2792_v1 = vor.u32 %v2791_v35, %v2790_v43 }
 0x242   : >> { %3311 = vmatmul.msk.bf16.gmra.mxu1 %vm684_vm15, %v2789_v47  ;;  %3317 = vmatmul.msk.bf16.gmra.mxu2 %vm684_vm15, %v2880_v28 }
 0x243   : >> { %v2077_v23 = vpop.f32.mrf.mxu0  ;;  %v2087_v34 = vadd.f32 %v2069_v0, %v1990_v57  ;;  %v2793_v8 = vsel %vm1213_vm1, %v2788_v31, %v2792_v1  ;;  %v3159_v57 = vld [vmem:[%s3885_s11 + $0x98] sm:$0x3] }
 0x244   : >> { %v2701_v43 = vunpack.c.l.b16 %v3159_v57 }
 0x245   : >> { %v2236_v44 = vpop.f32.mrf.mxu2  ;;  %3299 = vmatmul.msk.bf16.gmra.mxu3 %vm684_vm15, %v2629_v56  ;;  %v2162_v63 = vadd.f32 %v2144_v37, %v2087_v34  ;;  %v2711_v37 = vrot.slane %v4599_v54, 2 }
 0x246   : >> { %3306 = vmatmul.msk.bf16.gmra.mxu0 %vm684_vm15, %v2710_v3 }
 0x247   : >> { %v2149_v53 = vpop.f32.mrf.mxu1  ;;  %v4687_v55 = vadd.f32 %v2233_v58, %v2162_v63  ;;  %v2712_v52 = vsel %vm1058_vm0, %v2709_v33, %v2711_v37  ;;  %v2631_v58 = vsel %vm1058_vm0, %v2628_v5, %v2630_v2  ;;  %v2883_v5 = vrot.slane %v4599_v54, 3 }
 0x248   : >> { %v1975_v49 = vpop.f32.mrf.mxu3 }
 0x249   : >> { %v1991_v40 = vadd.f32 %v1975_v49, %v4581_v36  ;;  %v2795_v36 = vshrl.u32 %v4599_v54, 16 }
 0x24b   : >> { %v2079_v45 = vpop.f32.mrf.mxu0  ;;  %v2088_v48 = vadd.f32 %v2072_v26, %v1991_v40  ;;  %v2797_v28 = vrot.slane %v2795_v36, 2  ;;  %v2884_v40 = vsel %vm1311_vm7, %v2881_v6, %v2883_v5 }
 0x24d   : >> { %v2238_v0 = vpop.f32.mrf.mxu2  ;;  %v2163_v29 = vadd.f32 %v2147_v46, %v2088_v48  ;;  %v2801_v56 = vor.u32 %v2800_v27, %v2797_v28  ;;  %v2632_v48 = vrot.slane %v4574_v38, 2 }
 0x24f   : >> { %v2152_v30 = vpop.f32.mrf.mxu1  ;;  %v4698_v47 = vadd.f32 %v2236_v44, %v2163_v29  ;;  %v2703_v44 = vpack.c.b16 %v2701_v43, %v2701_v43  ;;  %v2633_v6 = vsel %vm1058_vm0, %v2630_v2, %v2632_v48 }
 0x250   : >> { %v1977_v59 = vpop.f32.mrf.mxu3 }
 0x251   : >> { %v1992_v26 = vadd.f32 %v1977_v59, %v4592_v42  ;;  %v2885_v27 = vrot.slane %v2703_v44, 3 }
 0x252   : >> { %3312 = vmatmul.msk.bf16.gmra.mxu1 %vm684_vm15, %v2793_v8  ;;  %3318 = vmatmul.msk.bf16.gmra.mxu2 %vm684_vm15, %v2882_v7  ;;  %v2807_v7 = vshll.u32 %v2703_v44, 16 }
 0x253   : >> { %v2392_v31 = vpop.f32.mrf.mxu0  ;;  %v2089_v9 = vadd.f32 %v2074_v39, %v1992_v26  ;;  %v2802_v39 = vsel %vm1213_vm1, %v2792_v1, %v2801_v56 }
 0x254   : >> { %v2809_v59 = vrot.slane %v2807_v7, 3 }
 0x255   : >> { %v2241_v12 = vpop.f32.mrf.mxu2  ;;  %3300 = vmatmul.msk.bf16.gmra.mxu3 %vm684_vm15, %v2631_v58  ;;  %v2164_v3 = vadd.f32 %v2149_v53, %v2089_v9  ;;  %v2713_v53 = vrot.slane %v2703_v44, 2 }
 0x256   : >> { %3307 = vmatmul.msk.bf16.gmra.mxu0 %vm684_vm15, %v2712_v52 }
 0x257   : >> { %v2154_v46 = vpop.f32.mrf.mxu1  ;;  %v4707_v50 = vadd.f32 %v2238_v0, %v2164_v3  ;;  %v2804_v0 = vshrl.u32 %v2703_v44, 16 }
 0x258   : >> { %v1980_v42 = vpop.f32.mrf.mxu3 }
 0x259   : >> { %v1993_v33 = vadd.f32 %v1980_v42, %v4608_v62  ;;  %v2806_v14 = vrot.slane %v2804_v0, 2 }
 0x25b   : >> { %v2394_v35 = vpop.f32.mrf.mxu0  ;;  %v2090_v63 = vadd.f32 %v2077_v23, %v1993_v33  ;;  %v2714_v23 = vsel %vm1058_vm0, %v2711_v37, %v2713_v53  ;;  %v2810_v52 = vor.u32 %v2809_v59, %v2806_v14 }
 0x25d   : >> { %v2243_v49 = vpop.f32.mrf.mxu2  ;;  %v2165_v8 = vadd.f32 %v2152_v30, %v2090_v63  ;;  %v2811_v2 = vsel %vm1213_vm1, %v2801_v56, %v2810_v52 }
 0x25f   : >> { %v2472_v34 = vpop.f32.mrf.mxu1  ;;  %v4715_v62 = vadd.f32 %v2241_v12, %v2165_v8 }
 0x260   : >> { %v1982_v54 = vpop.f32.mrf.mxu3 }
 0x261   : >> { %v1994_v1 = vadd.f32 %v1982_v54, %v4618_v61 }
 0x262   : >> { %3313 = vmatmul.msk.bf16.gmra.mxu1 %vm684_vm15, %v2802_v39  ;;  %3319 = vmatmul.msk.bf16.gmra.mxu2 %vm684_vm15, %v2884_v40 }
 0x263   : >> { %v2397_v29 = vpop.f32.mrf.mxu0  ;;  %v2091_v30 = vadd.f32 %v2079_v45, %v1994_v1  ;;  %v2886_v45 = vsel %vm1311_vm7, %v2883_v5, %v2885_v27 }
 0x265   : >> { %v2588_v26 = vpop.f32.mrf.mxu2  ;;  %3301 = vmatmul.msk.bf16.gmra.mxu3 %vm684_vm15, %v2633_v6  ;;  %v2166_v38 = vadd.f32 %v2154_v46, %v2091_v30  ;;  %v2634_v46 = vrot.slane %v4612_v32, 2 }
 0x266   : >> { %3308 = vmatmul.msk.bf16.gmra.mxu0 %vm684_vm15, %v2714_v23 }
 0x267   : >> { %v2474_v36 = vpop.f32.mrf.mxu1  ;;  %v4723_v58 = vadd.f32 %v2243_v49, %v2166_v38  ;;  %v2635_v39 = vsel %vm1058_vm0, %v2632_v48, %v2634_v46 }
 0x268   : >> { %v2319_v28 = vpop.f32.mrf.mxu3 }
 0x269   : >> { %v2344_v61 = vadd.f32 %v2319_v28, %v4626_v4 }
 0x26b   : >> { %v2399_v37 = vpop.f32.mrf.mxu0  ;;  %v2417_v12 = vadd.f32 %v2392_v31, %v2344_v61 }
 0x26d   : >> { %v2590_v57 = vpop.f32.mrf.mxu2  ;;  %v2497_v3 = vadd.f32 %v2472_v34, %v2417_v12 }
 0x26f   : >> { %v2477_v9 = vpop.f32.mrf.mxu1  ;;  %v4730_v43 = vadd.f32 %v2588_v26, %v2497_v3 }
 0x270   : >> { %v2321_v42 = vpop.f32.mrf.mxu3 }
 0x271   : >> { %v2345_v4 = vadd.f32 %v2321_v42, %v4643_v11 }
 0x272   : >> { %3314 = vmatmul.msk.bf16.gmra.mxu1 %vm684_vm15, %v2811_v2  ;;  %3320 = vmatmul.msk.bf16.gmra.mxu2 %vm684_vm15, %v2886_v45 }
 0x273   : >> { %v2402_v33 = vpop.f32.mrf.mxu0  ;;  %v2418_v31 = vadd.f32 %v2394_v35, %v2345_v4 }
 0x275   : >> { %v2593_v44 = vpop.f32.mrf.mxu2  ;;  %3302 = vmatmul.msk.bf16.gmra.mxu3 %vm684_vm15, %v2635_v39  ;;  %v2498_v5 = vadd.f32 %v2474_v36, %v2418_v31 }
 0x277   : >> { %v2479_v56 = vpop.f32.mrf.mxu1  ;;  %v4736_v63 = vadd.f32 %v2590_v57, %v2498_v5 }
 0x278   : >> { %v2324_v34 = vpop.f32.mrf.mxu3 }
 0x279   : >> { %v2346_v32 = vadd.f32 %v2324_v34, %v4654_v51 }
 0x27b   : >> { %v2404_v49 = vpop.f32.mrf.mxu0  ;;  %v2419_v53 = vadd.f32 %v2397_v29, %v2346_v32 }
 0x27d   : >> { %v2595_v8 = vpop.f32.mrf.mxu2  ;;  %v2499_v0 = vadd.f32 %v2477_v9, %v2419_v53 }
 0x27f   : >> { %v2482_v40 = vpop.f32.mrf.mxu1  ;;  %v4739_v11 = vadd.f32 %v2593_v44, %v2499_v0 }
 0x280   : >> { %v2326_v7 = vpop.f32.mrf.mxu3 }
 0x281   : >> { %v2347_v48 = vadd.f32 %v2326_v7, %v4666_v60 }
 0x283   : >> { %v2407_v35 = vpop.f32.mrf.mxu0  ;;  %v2420_v1 = vadd.f32 %v2399_v37, %v2347_v48 }
 0x285   : >> { %v2598_v23 = vpop.f32.mrf.mxu2  ;;  %v2500_v6 = vadd.f32 %v2479_v56, %v2420_v1 }
 0x287   : >> { %v2484_v54 = vpop.f32.mrf.mxu1  ;;  %v4742_v36 = vadd.f32 %v2595_v8, %v2500_v6 }
 0x288   : >> { %v2329_v14 = vpop.f32.mrf.mxu3 }
 0x289   : >> { %v2348_v51 = vadd.f32 %v2329_v14, %v4675_v41 }
 0x28b   : >> { %v2409_v30 = vpop.f32.mrf.mxu0  ;;  %v2421_v29 = vadd.f32 %v2402_v33, %v2348_v51 }
 0x28d   : >> { %v2600_v26 = vpop.f32.mrf.mxu2  ;;  %v2501_v38 = vadd.f32 %v2482_v40, %v2421_v29 }
 0x28f   : >> { %v2487_v59 = vpop.f32.mrf.mxu1  ;;  %v4745_v52 = vadd.f32 %v2598_v23, %v2501_v38 }
 0x290   : >> { %v2331_v28 = vpop.f32.mrf.mxu3 }
 0x291   : >> { %v2349_v60 = vadd.f32 %v2331_v28, %v4687_v55 }
 0x293   : >> { %v2422_v27 = vadd.f32 %v2404_v49, %v2349_v60  ;;  %v2412_v9 = vpop.f32.mrf.mxu0 }
 0x295   : >> { %v2603_v37 = vpop.f32.mrf.mxu2  ;;  %v2502_v2 = vadd.f32 %v2484_v54, %v2422_v27 }
 0x297   : >> { %v2489_v61 = vpop.f32.mrf.mxu1  ;;  %v4748_v12 = vadd.f32 %v2600_v26, %v2502_v2 }
 0x298   : >> { %v2334_v57 = vpop.f32.mrf.mxu3 }
 0x299   : >> { %v2350_v41 = vadd.f32 %v2334_v57, %v4698_v47 }
 0x29b   : >> { %v2423_v3 = vadd.f32 %v2407_v35, %v2350_v41  ;;  %v2414_v4 = vpop.f32.mrf.mxu0 }
 0x29d   : >> { %v2605_v46 = vpop.f32.mrf.mxu2  ;;  %v2503_v42 = vadd.f32 %v2487_v59, %v2423_v3 }
 0x29f   : >> { %v2492_v45 = vpop.f32.mrf.mxu1  ;;  %v4751_v33 = vadd.f32 %v2603_v37, %v2503_v42 }
 0x2a0   : >> { %v2336_v39 = vpop.f32.mrf.mxu3 }
 0x2a1   : >> { %v2351_v55 = vadd.f32 %v2336_v39, %v4707_v50 }
 0x2a3   : >> { %v2424_v31 = vadd.f32 %v2409_v30, %v2351_v55  ;;  %v2742_v49 = vpop.f32.mrf.mxu0 }
 0x2a5   : >> { %v2608_v44 = vpop.f32.mrf.mxu2  ;;  %v2504_v5 = vadd.f32 %v2489_v61, %v2424_v31 }
 0x2a7   : >> { %v2494_v56 = vpop.f32.mrf.mxu1  ;;  %v4754_v34 = vadd.f32 %v2605_v46, %v2504_v5 }
 0x2a8   : >> { %v2339_v32 = vpop.f32.mrf.mxu3 }
 0x2a9   : >> { %v2352_v47 = vadd.f32 %v2339_v32, %v4715_v62 }
 0x2ab   : >> { %v2425_v53 = vadd.f32 %v2412_v9, %v2352_v47  ;;  %v2744_v50 = vpop.f32.mrf.mxu0 }
 0x2ad   : >> { %v2610_v8 = vpop.f32.mrf.mxu2  ;;  %v2505_v0 = vadd.f32 %v2492_v45, %v2425_v53 }
 0x2af   : >> { %v2839_v40 = vpop.f32.mrf.mxu1  ;;  %v4757_v7 = vadd.f32 %v2608_v44, %v2505_v0 }
 0x2b0   : >> { %v2341_v48 = vpop.f32.mrf.mxu3 }
 0x2b1   : >> { %v2353_v35 = vadd.f32 %v2341_v48, %v4723_v58 }
 0x2b3   : >> { %v2426_v54 = vadd.f32 %v2414_v4, %v2353_v35  ;;  %v2747_v29 = vpop.f32.mrf.mxu0 }
 0x2b5   : >> { %v2914_v1 = vpop.f32.mrf.mxu2  ;;  %v2506_v6 = vadd.f32 %v2494_v56, %v2426_v54 }
 0x2b7   : >> { %v2841_v23 = vpop.f32.mrf.mxu1  ;;  %v4760_v14 = vadd.f32 %v2610_v8, %v2506_v6 }
 0x2b8   : >> { %v2663_v51 = vpop.f32.mrf.mxu3 }
 0x2b9   : >> { %v2688_v59 = vadd.f32 %v2663_v51, %v4730_v43 }
 0x2bb   : >> { %v2767_v62 = vadd.f32 %v2742_v49, %v2688_v59  ;;  %v2749_v2 = vpop.f32.mrf.mxu0 }
 0x2bd   : >> { %v2916_v30 = vpop.f32.mrf.mxu2  ;;  %v2864_v26 = vadd.f32 %v2839_v40, %v2767_v62 }
 0x2bf   : >> { %v2844_v38 = vpop.f32.mrf.mxu1  ;;  %v2939_v60 = vadd.f32 %v2914_v1, %v2864_v26 }
 0x2c0   : >> { %v2665_v28 = vpop.f32.mrf.mxu3 }
 0x2c1   : >> { %v2689_v61 = vadd.f32 %v2665_v28, %v4736_v63  ;;  %v2949_v37 = vmul.f32 %v3824_v13, %v2939_v60 }
 0x2c3   : >> { %v2768_v58 = vadd.f32 %v2744_v50, %v2689_v61  ;;  %v2987_v43 = vmul.f32 %v2949_v37, %v2939_v60  ;;  %v2960_v42 = vsel %vm2959_vm10, %v2949_v37, 0.0  ;;  %v2752_v40 = vpop.f32.mrf.mxu0 }
 0x2c5   : >> { %v2919_v27 = vpop.f32.mrf.mxu2  ;;  %v2865_v9 = vadd.f32 %v2841_v23, %v2768_v58  ;;  %v2997_v31 = vsel %vm2959_vm10, %v2987_v43, 0.0 }
 0x2c7   : >> { %v2940_v57 = vadd.f32 %v2916_v30, %v2865_v9  ;;  %v2846_v45 = vpop.f32.mrf.mxu1 }
 0x2c8   : >> { %v2668_v41 = vpop.f32.mrf.mxu3 }
 0x2c9   : >> { %v2950_v3 = vmul.f32 %v3826_v15, %v2940_v57  ;;  %v2690_v46 = vadd.f32 %v2668_v41, %v4739_v11 }
 0x2cb   : >> { %v2961_v4 = vsel %vm2959_vm10, %v2950_v3, 0.0  ;;  %v2988_v63 = vmul.f32 %v2950_v3, %v2940_v57  ;;  %v2769_v39 = vadd.f32 %v2747_v29, %v2690_v46  ;;  %v2754_v29 = vpop.f32.mrf.mxu0 }
 0x2cc   : >> { %v2962_v56 = vadd.f32 %v2961_v4, %v2960_v42 }
 0x2cd   : >> { %v2921_v55 = vpop.f32.mrf.mxu2  ;;  %v2998_v44 = vsel %vm2959_vm10, %v2988_v63, 0.0  ;;  %v2866_v5 = vadd.f32 %v2844_v38, %v2769_v39 }
 0x2ce   : >> { %v2999_v32 = vadd.f32 %v2998_v44, %v2997_v31 }
 0x2cf   : >> { %v2941_v49 = vadd.f32 %v2919_v27, %v2866_v5  ;;  %v2849_v8 = vpop.f32.mrf.mxu1 }
 0x2d0   : >> { %v2670_v47 = vpop.f32.mrf.mxu3 }
 0x2d1   : >> { %v2951_v53 = vmul.f32 %v3828_v16, %v2941_v49  ;;  %v2691_v11 = vadd.f32 %v2670_v47, %v4742_v36 }
 0x2d3   : >> { %v2963_v0 = vsel %vm2959_vm10, %v2951_v53, 0.0  ;;  %v2989_v48 = vmul.f32 %v2951_v53, %v2941_v49  ;;  %v2770_v35 = vadd.f32 %v2749_v2, %v2691_v11  ;;  %v2757_v46 = vpop.f32.mrf.mxu0 }
 0x2d4   : >> { %v2964_v50 = vadd.f32 %v2963_v0, %v2962_v56 }
 0x2d5   : >> { %v2924_v54 = vpop.f32.mrf.mxu2  ;;  %v3000_v1 = vsel %vm2959_vm10, %v2989_v48, 0.0  ;;  %v2867_v23 = vadd.f32 %v2846_v45, %v2770_v35 }
 0x2d6   : >> { %v3001_v6 = vadd.f32 %v3000_v1, %v2999_v32 }
 0x2d7   : >> { %v2942_v51 = vadd.f32 %v2921_v55, %v2867_v23  ;;  %v2851_v60 = vpop.f32.mrf.mxu1 }
 0x2d8   : >> { %v2673_v59 = vpop.f32.mrf.mxu3 }
 0x2d9   : >> { %v2952_v62 = vmul.f32 %v3830_v18, %v2942_v51  ;;  %v2692_v30 = vadd.f32 %v2673_v59, %v4745_v52 }
 0x2db   : >> { %v2965_v36 = vsel %vm2959_vm10, %v2952_v62, 0.0  ;;  %v2990_v26 = vmul.f32 %v2952_v62, %v2942_v51  ;;  %v2771_v38 = vadd.f32 %v2752_v40, %v2692_v30 }
 0x2dc   : >> { %v2966_v28 = vadd.f32 %v2965_v36, %v2964_v50 }
 0x2dd   : >> { %v3002_v61 = vsel %vm2959_vm10, %v2990_v26, 0.0  ;;  %v2868_v58 = vadd.f32 %v2849_v8, %v2771_v38  ;;  %v2926_v37 = vpop.f32.mrf.mxu2  ;;  %v2759_v8 = vpop.f32.mrf.mxu0 }
 0x2de   : >> { %v3003_v27 = vadd.f32 %v3002_v61, %v3001_v6 }
 0x2df   : >> { %v2943_v9 = vadd.f32 %v2924_v54, %v2868_v58  ;;  %v2854_v39 = vpop.f32.mrf.mxu1 }
 0x2e0   : >> { %v2675_v2 = vpop.f32.mrf.mxu3 }
 0x2e1   : >> { %v2953_v57 = vmul.f32 %v3832_v19, %v2943_v9  ;;  %v2693_v41 = vadd.f32 %v2675_v2, %v4748_v12 }
 0x2e3   : >> { %v2967_v52 = vsel %vm2959_vm10, %v2953_v57, 0.0  ;;  %v2991_v45 = vmul.f32 %v2953_v57, %v2943_v9  ;;  %v2772_v43 = vadd.f32 %v2754_v29, %v2693_v41 }
 0x2e4   : >> { %v2968_v3 = vadd.f32 %v2967_v52, %v2966_v28 }
 0x2e5   : >> { %v3004_v42 = vsel %vm2959_vm10, %v2991_v45, 0.0  ;;  %v2869_v4 = vadd.f32 %v2851_v60, %v2772_v43  ;;  %v2929_v56 = vpop.f32.mrf.mxu2  ;;  %v2762_v36 = vpop.f32.mrf.mxu0 }
 0x2e6   : >> { %v3005_v63 = vadd.f32 %v3004_v42, %v3003_v27 }
 0x2e7   : >> { %v2944_v55 = vadd.f32 %v2926_v37, %v2869_v4  ;;  %v2856_v48 = vpop.f32.mrf.mxu1 }
 0x2e8   : >> { %v2678_v31 = vpop.f32.mrf.mxu3 }
 0x2e9   : >> { %v2954_v44 = vmul.f32 %v3836_v10, %v2944_v55  ;;  %v2694_v5 = vadd.f32 %v2678_v31, %v4751_v33 }
 0x2eb   : >> { %v2969_v12 = vsel %vm2959_vm10, %v2954_v44, 0.0  ;;  %v2992_v32 = vmul.f32 %v2954_v44, %v2944_v55  ;;  %v2773_v49 = vadd.f32 %v2757_v46, %v2694_v5 }
 0x2ec   : >> { %v2970_v47 = vadd.f32 %v2969_v12, %v2968_v3 }
 0x2ed   : >> { %v3006_v40 = vsel %vm2959_vm10, %v2992_v32, 0.0  ;;  %v2870_v53 = vadd.f32 %v2854_v39, %v2773_v49  ;;  %v2931_v1 = vpop.f32.mrf.mxu2  ;;  %v2764_v3 = vpop.f32.mrf.mxu0 }
 0x2ee   : >> { %v3007_v11 = vadd.f32 %v3006_v40, %v3005_v63 }
 0x2ef   : >> { %v2945_v0 = vadd.f32 %v2929_v56, %v2870_v53  ;;  %v2859_v60 = vpop.f32.mrf.mxu1 }
 0x2f0   : >> { %v2680_v35 = vpop.f32.mrf.mxu3 }
 0x2f1   : >> { %v2955_v50 = vmul.f32 %v3838_v20, %v2945_v0  ;;  %v2695_v54 = vadd.f32 %v2680_v35, %v4754_v34 }
 0x2f3   : >> { %v2971_v33 = vsel %vm2959_vm10, %v2955_v50, 0.0  ;;  %v2993_v23 = vmul.f32 %v2955_v50, %v2945_v0  ;;  %v2774_v6 = vadd.f32 %v2759_v8, %v2695_v54 }
 0x2f4   : >> { %v2972_v51 = vadd.f32 %v2971_v33, %v2970_v47 }
 0x2f5   : >> { %v3008_v59 = vsel %vm2959_vm10, %v2993_v23, 0.0  ;;  %v2871_v62 = vadd.f32 %v2856_v48, %v2774_v6  ;;  %v2934_v37 = vpop.f32.mrf.mxu2 }
 0x2f6   : >> { %v3009_v30 = vadd.f32 %v3008_v59, %v3007_v11 }
 0x2f7   : >> { %v2946_v29 = vadd.f32 %v2931_v1, %v2871_v62  ;;  %v2861_v63 = vpop.f32.mrf.mxu1 }
 0x2f8   : >> { %v2683_v26 = vpop.f32.mrf.mxu3 }
 0x2f9   : >> { %v2956_v38 = vmul.f32 %v3840_v21, %v2946_v29  ;;  %v2696_v28 = vadd.f32 %v2683_v26, %v4757_v7 }
 0x2fb   : >> { %v2973_v34 = vsel %vm2959_vm10, %v2956_v38, 0.0  ;;  %v2994_v61 = vmul.f32 %v2956_v38, %v2946_v29  ;;  %v2775_v58 = vadd.f32 %v2762_v36, %v2696_v28 }
 0x2fc   : >> { %v2974_v27 = vadd.f32 %v2973_v34, %v2972_v51 }
 0x2fd   : >> { %v3010_v9 = vsel %vm2959_vm10, %v2994_v61, 0.0  ;;  %v2872_v2 = vadd.f32 %v2859_v60, %v2775_v58  ;;  %v2936_v31 = vpop.f32.mrf.mxu2 }
 0x2fe   : >> { %v3011_v57 = vadd.f32 %v3010_v9, %v3009_v30 }
 0x2ff   : >> { %v2947_v41 = vadd.f32 %v2934_v37, %v2872_v2 }
 0x300   : >> { %v2685_v52 = vpop.f32.mrf.mxu3 }
 0x301   : >> { %v2957_v45 = vmul.f32 %v3842_v22, %v2947_v41  ;;  %v2697_v43 = vadd.f32 %v2685_v52, %v4760_v14 }
 0x303   : >> { %v2975_v7 = vsel %vm2959_vm10, %v2957_v45, 0.0  ;;  %v2995_v46 = vmul.f32 %v2957_v45, %v2947_v41  ;;  %v2776_v42 = vadd.f32 %v2764_v3, %v2697_v43 }
 0x304   : >> { %v2976_v4 = vadd.f32 %v2975_v7, %v2974_v27 }
 0x305   : >> { %v3012_v39 = vsel %vm2959_vm10, %v2995_v46, 0.0  ;;  %v2873_v55 = vadd.f32 %v2861_v63, %v2776_v42 }
 0x306   : >> { %v3013_v56 = vadd.f32 %v3012_v39, %v3011_v57 }
 0x307   : >> { %v2948_v44 = vadd.f32 %v2936_v31, %v2873_v55 }
 0x309   : >> { %v2958_v5 = vmul.f32 %v3844_v17, %v2948_v44 }
 0x30b   : >> { %v2978_v12 = vsel %vm2977_vm11, %v2958_v5, 0.0  ;;  %v2996_v32 = vmul.f32 %v2958_v5, %v2948_v44 }
 0x30c   : >> { %v2979_v49 = vadd.f32 %v2978_v12, %v2976_v4 }
 0x30d   : >> { %v3014_v14 = vsel %vm2977_vm11, %v2996_v32, 0.0 }
 0x30e   : >> { %v2980_v47 = vrot.slane %v2979_v49, 4  ;;  %v3015_v40 = vadd.f32 %v3014_v14, %v3013_v56 }
 0x310   : >> { %v2981_v53 = vadd.f32 %v2980_v47, %v2979_v49  ;;  %v3016_v11 = vrot.slane %v3015_v40, 4 }
 0x312   : >> { %v2982_v8 = vrot.slane %v2981_v53, 2  ;;  %v3017_v0 = vadd.f32 %v3016_v11, %v3015_v40 }
 0x314   : >> { %v2983_v48 = vadd.f32 %v2982_v8, %v2981_v53  ;;  %v3018_v35 = vrot.slane %v3017_v0, 2 }
 0x316   : >> { %v2984_v50 = vrot.slane %v2983_v48, 1  ;;  %v3019_v54 = vadd.f32 %v3018_v35, %v3017_v0 }
 0x318   : >> { %v2985_v1 = vadd.f32 %v2984_v50, %v2983_v48  ;;  %v3020_v33 = vrot.slane %v3019_v54, 1 }
 0x31a   : >> { %v2986_v23 = vadd.f32 %v3575_v25, %v2985_v1   ;;  %v3021_v6 = vadd.f32 %v3020_v33, %v3019_v54  ;;  %562 = sbr.rel (!%p560_p4) target bundleno = 90 (0x5a), region = 106 }
 0x31c   : >> { %v3022_v51 = vadd.f32 %v3571_v24, %v3021_v6   ;;  %v4854_v25 = vmov %v2986_v23  ;;  %3024 = vst.msk [vmem:[%s172_s17] sm:$0x1] (%p560_p4), %vm3023_vm3, %v2986_v23 }
 0x31e   : >> { %v4853_v24 = vmov %v3022_v51  ;;  %3025 = vst.msk [vmem:[%s175_s20] sm:$0x1] (%p560_p4), %vm3023_vm3, %v3022_v51 }
 0x31f PF: > { %s14_s12 = sadd.s32 1, %s3567_s12  }
 0x320   : > { %p11_p5 = scmp.ge.s32.totalorder %s14_s12, 4  }
 0x322   :  { %13 = sbr.rel (!%p11_p5) target bundleno = 1 (0x1), region = 117 }

</bundles_post_ra>
